<compile_context>
chip_gen: v5e
topology: v5e:2x2
jax: 0.10.0
libtpu: 0.0.40
codegen_flags: <defaults>
</compile_context>

<pallas_src>
import functools

import jax
import jax.numpy as jnp
import numpy as np
from jax.experimental import pallas as pl
from jax.experimental.pallas import tpu as pltpu


def _capsule_kernel(x_ref, w_ref, out_ref, *, routings):
    # x_ref  : (TB, D_in, N_in)            batch tile; N_in on lanes
    # w_ref  : (N_out*D_out, D_in, N_in)   full weight tensor (VMEM resident)
    # out_ref: (TB, N_out*D_out)           lane-dense output slab
    x = x_ref[...].astype(jnp.float32)
    w = w_ref[...].astype(jnp.float32)

    # u_hat[b, j*D_out+d, i] = sum_k W[j, i, d, k] * x[b, i, k]
    # D_in is tiny/unaligned, so contract on the VPU/XLU (sublane reduction)
    # rather than the MXU; the intermediate stays N_in-lane-dense.
    u_hat = jnp.sum(w[None, :, :, :] * x[:, None, :, :], axis=2)   # (TB, JD, N_in)

    # b has the same shape as inputs_hat[..., 0] in the torch code.
    b_log = jnp.zeros_like(u_hat)
    v = jnp.zeros(u_hat.shape[:2] + (1,), jnp.float32)

    for r in range(routings):
        # softmax over the input-capsule axis (torch dim=2 -> lane axis here)
        m = jnp.max(b_log, axis=-1, keepdims=True)
        e = jnp.exp(b_log - m)
        c = e * pl.reciprocal(jnp.sum(e, axis=-1, keepdims=True), approx=True)

        s = jnp.sum(c * u_hat, axis=-1, keepdims=True)             # (TB, JD, 1)

        # squash over the trailing size-1 dim of the torch tensor (elementwise):
        #   v = (sq / (1+sq)) * s / sqrt(sq + 1e-9)
        sq = s * s
        v = s * sq * pl.reciprocal(1.0 + sq, approx=True) * jax.lax.rsqrt(sq + 1e-9)

        if r < routings - 1:
            b_log = b_log + u_hat * v                              # bcast over N_in

    out_ref[...] = v[..., 0].astype(out_ref.dtype)                 # (TB, JD)


def capsule_layer(inputs, W, routings=3, batch_tile=32):
    """inputs: (B, N_in, D_in) f32; W: (1, N_out, N_in, D_out, D_in) f32."""
    B, N_in, D_in = inputs.shape
    _, N_out, _, D_out, _ = W.shape
    JD = N_out * D_out

    # Lane-dense layouts, prepared once in the wrapper (plain XLA, cheap):
    #   w_t[j*D_out + d, k, i] = W[0, j, i, d, k]
    w_t = jnp.transpose(W[0], (0, 2, 3, 1)).reshape(JD, D_in, N_in)
    #   x_t[b, k, i] = inputs[b, i, k]
    x_t = jnp.transpose(inputs, (0, 2, 1))

    # Batch tiling: whole batch per step if small, else TB (multiple of 8).
    TB = B if B <= batch_tile else batch_tile
    B_pad = pl.cdiv(B, TB) * TB
    if B_pad != B:
        x_t = jnp.pad(x_t, ((0, B_pad - B), (0, 0), (0, 0)))

    out = pl.pallas_call(
        functools.partial(_capsule_kernel, routings=routings),
        out_shape=jax.ShapeDtypeStruct((B_pad, JD), jnp.float32),
        grid_spec=pltpu.PrefetchScalarGridSpec(
            num_scalar_prefetch=0,
            grid=(B_pad // TB,),
            in_specs=[
                pl.BlockSpec((TB, D_in, N_in), lambda b: (b, 0, 0)),
                # W is grid-invariant (constant index_map) -> DMA'd once per core.
                pl.BlockSpec((JD, D_in, N_in), lambda b: (0, 0, 0)),
            ],
            out_specs=pl.BlockSpec((TB, JD), lambda b: (b, 0)),
        ),
        compiler_params=pltpu.CompilerParams(
            # Independent batch tiles -> shard across both TensorCores on v7x;
            # neutral on v5e/v6e.
            dimension_semantics=("parallel",),
        ),
    )(x_t, w_t)

    # torch returns outputs.squeeze(2) of shape (B, N_out, D_out, 1)
    return out[:B].reshape(B, N_out, D_out)[..., None]


def capsule_layer_ref(inputs, W, routings=3):
    """Pure-JAX transcription of the torch forward, for verification."""
    x = inputs[:, None, :, :, None]                        # (B,1,N_in,D_in,1)
    u_hat = jnp.matmul(W, x)                               # (B,N_out,N_in,D_out,1)
    b = jnp.zeros(u_hat.shape[:-1], u_hat.dtype)           # (B,N_out,N_in,D_out)
    outputs = None
    for i in range(routings):
        c = jax.nn.softmax(b, axis=2)
        s = jnp.sum(c[..., None] * u_hat, axis=2, keepdims=True)
        sq = jnp.sum(s * s, axis=-1, keepdims=True)
        outputs = (sq / (1.0 + sq)) * s / jnp.sqrt(sq + 1e-9)
        if i < routings - 1:
            b = b + jnp.sum(u_hat * outputs, axis=-1)
    return jnp.squeeze(outputs, axis=2)                    # (B,N_out,D_out,1)


if __name__ == "__main__":
    key = jax.random.PRNGKey(0)
    B, N_in, D_in = 2, 8, 16        # batch, input_num_capsule, input_dim_capsule
    N_out, D_out = 4, 8             # num_capsule, dim_capsule
    routings = 3

    kx, kw = jax.random.split(key)
    x = jax.random.normal(kx, (B, N_in, D_in), jnp.float32)
    # Deterministic stand-in for the lazily-created nn.Parameter(torch.randn(...)).
    W = jax.random.normal(kw, (1, N_out, N_in, D_out, D_in), jnp.float32)

    out = jax.block_until_ready(capsule_layer(x, W, routings=routings))
    ref = capsule_layer_ref(x, W, routings=routings)

    assert out.shape == (B, N_out, D_out, 1), out.shape
    # Slightly loosened tolerance: the kernel uses approximate EUP
    # reciprocal/rsqrt (pl.reciprocal(approx=True), lax.rsqrt) in softmax/squash.
    np.testing.assert_allclose(np.asarray(out), np.asarray(ref),
                               rtol=5e-3, atol=5e-3)
    print("KERNEL_OK")
</pallas_src>

<mosaic_0001>
module attributes {stable_mosaic.version = 11 : i64} {
  func.func @_capsule_kernel(%arg0: i32, %arg1: memref<2x16x8xf32, #tpu.memory_space<vmem>>, %arg2: memref<32x16x8xf32, #tpu.memory_space<vmem>>, %arg3: memref<2x32xf32, #tpu.memory_space<vmem>>) attributes {dimension_semantics = [#tpu.dimension_semantics<parallel>], iteration_bounds = array<i64: 1>, scalar_prefetch = 0 : i64, scratch_operands = 0 : i64, tpu.core_type = #tpu.core_type<tc>, window_params = [{transform_indices = @transform_0, window_bounds = array<i64: 2, 16, 8>}, {pipeline_mode = #tpu.pipeline_mode<synchronous>, transform_indices = @transform_1, window_bounds = array<i64: 32, 16, 8>}, {transform_indices = @transform_2, window_bounds = array<i64: 2, 32>}]} {
    %c0 = arith.constant 0 : index
    %c0_0 = arith.constant 0 : index
    %c0_1 = arith.constant 0 : index
    %0 = vector.load %arg1[%c0, %c0_0, %c0_1] : memref<2x16x8xf32, #tpu.memory_space<vmem>>, vector<2x16x8xf32>
    %c0_2 = arith.constant 0 : index
    %c0_3 = arith.constant 0 : index
    %c0_4 = arith.constant 0 : index
    %1 = vector.load %arg2[%c0_2, %c0_3, %c0_4] : memref<32x16x8xf32, #tpu.memory_space<vmem>>, vector<32x16x8xf32>
    %2 = vector.shape_cast %1 : vector<32x16x8xf32> to vector<1x32x16x8xf32>
    %3 = vector.shape_cast %0 : vector<2x16x8xf32> to vector<2x1x16x8xf32>
    %4 = vector.broadcast %2 : vector<1x32x16x8xf32> to vector<2x32x16x8xf32>
    %5 = vector.broadcast %3 : vector<2x1x16x8xf32> to vector<2x32x16x8xf32>
    %6 = arith.mulf %4, %5 : vector<2x32x16x8xf32>
    %cst = arith.constant dense<0.000000e+00> : vector<2x32x8xf32>
    %7 = vector.multi_reduction <add>, %6, %cst [2] : vector<2x32x16x8xf32> to vector<2x32x8xf32>
    %cst_5 = arith.constant 0.000000e+00 : f32
    %8 = vector.broadcast %cst_5 : f32 to vector<2x32x8xf32>
    %cst_6 = arith.constant dense<0xFF800000> : vector<2x32xf32>
    %9 = vector.multi_reduction <maximumf>, %8, %cst_6 [2] : vector<2x32x8xf32> to vector<2x32xf32>
    %10 = vector.shape_cast %9 : vector<2x32xf32> to vector<2x32x1xf32>
    %11 = vector.broadcast %10 : vector<2x32x1xf32> to vector<2x32x8xf32>
    %12 = arith.subf %8, %11 : vector<2x32x8xf32>
    %13 = math.exp %12 : vector<2x32x8xf32>
    %cst_7 = arith.constant dense<0.000000e+00> : vector<2x32xf32>
    %14 = vector.multi_reduction <add>, %13, %cst_7 [2] : vector<2x32x8xf32> to vector<2x32xf32>
    %15 = vector.shape_cast %14 : vector<2x32xf32> to vector<2x32x1xf32>
    %16 = tpu.reciprocal %15 {approx = true} : vector<2x32x1xf32> -> vector<2x32x1xf32>
    %17 = vector.broadcast %16 : vector<2x32x1xf32> to vector<2x32x8xf32>
    %18 = arith.mulf %13, %17 : vector<2x32x8xf32>
    %19 = arith.mulf %18, %7 : vector<2x32x8xf32>
    %cst_8 = arith.constant dense<0.000000e+00> : vector<2x32xf32>
    %20 = vector.multi_reduction <add>, %19, %cst_8 [2] : vector<2x32x8xf32> to vector<2x32xf32>
    %21 = vector.shape_cast %20 : vector<2x32xf32> to vector<2x32x1xf32>
    %22 = arith.mulf %21, %21 : vector<2x32x1xf32>
    %23 = arith.mulf %21, %22 : vector<2x32x1xf32>
    %cst_9 = arith.constant 1.000000e+00 : f32
    %24 = vector.broadcast %cst_9 : f32 to vector<2x32x1xf32>
    %25 = arith.addf %24, %22 : vector<2x32x1xf32>
    %26 = tpu.reciprocal %25 {approx = true} : vector<2x32x1xf32> -> vector<2x32x1xf32>
    %27 = arith.mulf %23, %26 : vector<2x32x1xf32>
    %cst_10 = arith.constant 9.99999971E-10 : f32
    %28 = vector.broadcast %cst_10 : f32 to vector<2x32x1xf32>
    %29 = arith.addf %22, %28 : vector<2x32x1xf32>
    %30 = math.rsqrt %29 : vector<2x32x1xf32>
    %31 = arith.mulf %27, %30 : vector<2x32x1xf32>
    %32 = vector.broadcast %31 : vector<2x32x1xf32> to vector<2x32x8xf32>
    %33 = arith.mulf %7, %32 : vector<2x32x8xf32>
    %34 = arith.addf %8, %33 : vector<2x32x8xf32>
    %cst_11 = arith.constant dense<0xFF800000> : vector<2x32xf32>
    %35 = vector.multi_reduction <maximumf>, %34, %cst_11 [2] : vector<2x32x8xf32> to vector<2x32xf32>
    %36 = vector.shape_cast %35 : vector<2x32xf32> to vector<2x32x1xf32>
    %37 = vector.broadcast %36 : vector<2x32x1xf32> to vector<2x32x8xf32>
    %38 = arith.subf %34, %37 : vector<2x32x8xf32>
    %39 = math.exp %38 : vector<2x32x8xf32>
    %cst_12 = arith.constant dense<0.000000e+00> : vector<2x32xf32>
    %40 = vector.multi_reduction <add>, %39, %cst_12 [2] : vector<2x32x8xf32> to vector<2x32xf32>
    %41 = vector.shape_cast %40 : vector<2x32xf32> to vector<2x32x1xf32>
    %42 = tpu.reciprocal %41 {approx = true} : vector<2x32x1xf32> -> vector<2x32x1xf32>
    %43 = vector.broadcast %42 : vector<2x32x1xf32> to vector<2x32x8xf32>
    %44 = arith.mulf %39, %43 : vector<2x32x8xf32>
    %45 = arith.mulf %44, %7 : vector<2x32x8xf32>
    %cst_13 = arith.constant dense<0.000000e+00> : vector<2x32xf32>
    %46 = vector.multi_reduction <add>, %45, %cst_13 [2] : vector<2x32x8xf32> to vector<2x32xf32>
    %47 = vector.shape_cast %46 : vector<2x32xf32> to vector<2x32x1xf32>
    %48 = arith.mulf %47, %47 : vector<2x32x1xf32>
    %49 = arith.mulf %47, %48 : vector<2x32x1xf32>
    %cst_14 = arith.constant 1.000000e+00 : f32
    %50 = vector.broadcast %cst_14 : f32 to vector<2x32x1xf32>
    %51 = arith.addf %50, %48 : vector<2x32x1xf32>
    %52 = tpu.reciprocal %51 {approx = true} : vector<2x32x1xf32> -> vector<2x32x1xf32>
    %53 = arith.mulf %49, %52 : vector<2x32x1xf32>
    %cst_15 = arith.constant 9.99999971E-10 : f32
    %54 = vector.broadcast %cst_15 : f32 to vector<2x32x1xf32>
    %55 = arith.addf %48, %54 : vector<2x32x1xf32>
    %56 = math.rsqrt %55 : vector<2x32x1xf32>
    %57 = arith.mulf %53, %56 : vector<2x32x1xf32>
    %58 = vector.broadcast %57 : vector<2x32x1xf32> to vector<2x32x8xf32>
    %59 = arith.mulf %7, %58 : vector<2x32x8xf32>
    %60 = arith.addf %34, %59 : vector<2x32x8xf32>
    %cst_16 = arith.constant dense<0xFF800000> : vector<2x32xf32>
    %61 = vector.multi_reduction <maximumf>, %60, %cst_16 [2] : vector<2x32x8xf32> to vector<2x32xf32>
    %62 = vector.shape_cast %61 : vector<2x32xf32> to vector<2x32x1xf32>
    %63 = vector.broadcast %62 : vector<2x32x1xf32> to vector<2x32x8xf32>
    %64 = arith.subf %60, %63 : vector<2x32x8xf32>
    %65 = math.exp %64 : vector<2x32x8xf32>
    %cst_17 = arith.constant dense<0.000000e+00> : vector<2x32xf32>
    %66 = vector.multi_reduction <add>, %65, %cst_17 [2] : vector<2x32x8xf32> to vector<2x32xf32>
    %67 = vector.shape_cast %66 : vector<2x32xf32> to vector<2x32x1xf32>
    %68 = tpu.reciprocal %67 {approx = true} : vector<2x32x1xf32> -> vector<2x32x1xf32>
    %69 = vector.broadcast %68 : vector<2x32x1xf32> to vector<2x32x8xf32>
    %70 = arith.mulf %65, %69 : vector<2x32x8xf32>
    %71 = arith.mulf %70, %7 : vector<2x32x8xf32>
    %cst_18 = arith.constant dense<0.000000e+00> : vector<2x32xf32>
    %72 = vector.multi_reduction <add>, %71, %cst_18 [2] : vector<2x32x8xf32> to vector<2x32xf32>
    %73 = vector.shape_cast %72 : vector<2x32xf32> to vector<2x32x1xf32>
    %74 = arith.mulf %73, %73 : vector<2x32x1xf32>
    %75 = arith.mulf %73, %74 : vector<2x32x1xf32>
    %cst_19 = arith.constant 1.000000e+00 : f32
    %76 = vector.broadcast %cst_19 : f32 to vector<2x32x1xf32>
    %77 = arith.addf %76, %74 : vector<2x32x1xf32>
    %78 = tpu.reciprocal %77 {approx = true} : vector<2x32x1xf32> -> vector<2x32x1xf32>
    %79 = arith.mulf %75, %78 : vector<2x32x1xf32>
    %cst_20 = arith.constant 9.99999971E-10 : f32
    %80 = vector.broadcast %cst_20 : f32 to vector<2x32x1xf32>
    %81 = arith.addf %74, %80 : vector<2x32x1xf32>
    %82 = math.rsqrt %81 : vector<2x32x1xf32>
    %83 = arith.mulf %79, %82 : vector<2x32x1xf32>
    %84 = vector.shape_cast %83 : vector<2x32x1xf32> to vector<2x32xf32>
    %c0_21 = arith.constant 0 : index
    %c0_22 = arith.constant 0 : index
    %85 = vector.load %arg3[%c0_21, %c0_22] : memref<2x32xf32, #tpu.memory_space<vmem>>, vector<2x32xf32>
    tpu.vector_store %arg3[%c0_21, %c0_22], %84 {strides = array<i32>} : memref<2x32xf32, #tpu.memory_space<vmem>>, vector<2x32xf32>,
    return
  }
  func.func @transform_0(%arg0: i32) -> (i32, i32, i32) {
    %c0_i32 = arith.constant 0 : i32
    %c0_i32_0 = arith.constant 0 : i32
    %c0_i32_1 = arith.constant 0 : i32
    return %arg0, %c0_i32, %c0_i32_0 : i32, i32, i32
  }
  func.func @transform_1(%arg0: i32) -> (i32, i32, i32) {
    %c0_i32 = arith.constant 0 : i32
    %c0_i32_0 = arith.constant 0 : i32
    %c0_i32_1 = arith.constant 0 : i32
    %c0_i32_2 = arith.constant 0 : i32
    return %c0_i32, %c0_i32_0, %c0_i32_1 : i32, i32, i32
  }
  func.func @transform_2(%arg0: i32) -> (i32, i32) {
    %c0_i32 = arith.constant 0 : i32
    %c0_i32_0 = arith.constant 0 : i32
    return %arg0, %c0_i32 : i32, i32
  }
}

</mosaic_0001>

<bundles_post_ra>
// kernel: tpu_custom_call.1
= control target key start
LH: loop header
LB: loop body
LE: loop exit
PB: predicated region body
PF: predicated region fallthrough
CT: control target
= control target key end

     0   :  { %vm8717_vm0 = vcmask 64512   ;;  %s8624_s0 = inlined_call_operand.vmem [shape: f32[2,16,8], index: 0, kind: input, shape index: {}]   ;;  %s8625_s1 = inlined_call_operand.vmem [shape: f32[32,16,8], index: 1, kind: input, shape index: {}]   ;;  %s8626_s2 = inlined_call_operand.hbm [shape: f32[2,32], index: 2, kind: output, shape index: {}]  }
   0x1   :  { %7 = vsyncpa [#allocation3], 0  ;;  %v4816_v0 = vmov 0.0   ;;  %v4837_v2 = vld [vmem:[%s8624_s0 + $0x10] sm:$0xff]  ;;  %v4842_v3 = vld [vmem:[%s8624_s0 + $0x18] sm:$0xff]  ;;  %vm917_vm1 = vcmask 1041409  }
   0x2   :  { %v785_v1 = vsel %vm8717_vm0, 1.0, %v4816_v0  ;;  %v4847_v4 = vld [vmem:[%s8625_s1 + $0x80] sm:$0xff]  ;;  %v4852_v5 = vld [vmem:[%s8625_s1 + $0x88] sm:$0xff]  ;;  %v4857_v6 = vld [vmem:[%s8625_s1 + $0x90] sm:$0xff]  ;;  %vm919_vm2 = vcmask 1042434   ;;  %vm921_vm3 = vcmask 1043459  }
   0x3   :  { %786 = vadd.xlane.f32.xlu0 %v785_v1  ;;  %v4862_v7 = vld [vmem:[%s8625_s1 + $0x98] sm:$0xff]  ;;  %v160_v8 = vmul.f32 %v4847_v4, %v4837_v2  ;;  %v4869_v9 = vld [vmem:[%s8625_s1 + $0xa0] sm:$0xff]  ;;  %v4874_v10 = vld [vmem:[%s8625_s1 + $0xa8] sm:$0xff]  ;;  %v161_v12 = vmul.f32 %v4852_v5, %v4842_v3  ;;  %v162_v13 = vmul.f32 %v4857_v6, %v4837_v2  ;;  %vm923_vm4 = vcmask 1044484   ;;  %s4389_s15 = sshll.u32 %s8626_s2, 4  ;;  %s4390_s15 = int_to_ptr.hbm [resolvable:$true] %s4389_s15 }
   0x4   :  { %v4879_v11 = vld [vmem:[%s8625_s1 + $0xb0] sm:$0xff]  ;;  %v163_v14 = vmul.f32 %v4862_v7, %v4842_v3  ;;  %v4890_v15 = vld [vmem:[%s8625_s1 + $0xb8] sm:$0xff]  ;;  %v4895_v16 = vld [vmem:[%s8625_s1 + $0xc0] sm:$0xff]  ;;  %v164_v18 = vmul.f32 %v4869_v9, %v4837_v2  ;;  %v165_v19 = vmul.f32 %v4874_v10, %v4842_v3  ;;  %vm925_vm5 = vcmask 1045509  }
   0x5   :  { %v4900_v17 = vld [vmem:[%s8625_s1 + $0xc8] sm:$0xff]  ;;  %v166_v20 = vmul.f32 %v4879_v11, %v4837_v2  ;;  %v569_v21 = vsel %vm8717_vm0, %v160_v8, 0.0  ;;  %v4912_v22 = vld [vmem:[%s8625_s1 + $0xd0] sm:$0xff]  ;;  %v4917_v23 = vld [vmem:[%s8625_s1 + $0xd8] sm:$0xff]  ;;  %v167_v25 = vmul.f32 %v4890_v15, %v4842_v3  ;;  %v168_v26 = vmul.f32 %v4895_v16, %v4837_v2 }
   0x6   :  { %v4922_v24 = vld [vmem:[%s8625_s1 + $0xe0] sm:$0xff]  ;;  %v169_v27 = vmul.f32 %v4900_v17, %v4842_v3  ;;  %v570_v28 = vsel %vm8717_vm0, %v161_v12, 0.0  ;;  %v4934_v29 = vld [vmem:[%s8625_s1 + $0xe8] sm:$0xff]  ;;  %v4939_v30 = vld [vmem:[%s8625_s1 + $0xf0] sm:$0xff]  ;;  %v170_v32 = vmul.f32 %v4912_v22, %v4837_v2  ;;  %v171_v33 = vmul.f32 %v4917_v23, %v4842_v3 }
   0x7   :  { %v4944_v31 = vld [vmem:[%s8625_s1 + $0xf8] sm:$0xff]  ;;  %v172_v34 = vmul.f32 %v4922_v24, %v4837_v2  ;;  %v571_v35 = vadd.f32 %v570_v28, %v569_v21  ;;  %v173_v36 = vmul.f32 %v4934_v29, %v4842_v3  ;;  %v174_v37 = vmul.f32 %v4939_v30, %v4837_v2 }
   0x8   :  { %v175_v38 = vmul.f32 %v4944_v31, %v4842_v3  ;;  %v578_v39 = vsel %vm8717_vm0, %v162_v13, 0.0  ;;  %v579_v41 = vsel %vm8717_vm0, %v163_v14, 0.0  ;;  %v587_v42 = vsel %vm8717_vm0, %v164_v18, 0.0 }
   0x9   :  { %v572_v40 = vrot.slane %v571_v35, 4  ;;  %v588_v43 = vsel %vm8717_vm0, %v165_v19, 0.0  ;;  %v580_v44 = vadd.f32 %v579_v41, %v578_v39  ;;  %v596_v46 = vsel %vm8717_vm0, %v166_v20, 0.0 }
   0xa   :  { %v589_v45 = vadd.f32 %v588_v43, %v587_v42  ;;  %v597_v47 = vsel %vm8717_vm0, %v167_v25, 0.0  ;;  %v605_v50 = vsel %vm8717_vm0, %v168_v26, 0.0  ;;  %v606_v51 = vsel %vm8717_vm0, %v169_v27, 0.0 }
   0xb   :  { %v573_v48 = vadd.f32 %v572_v40, %v571_v35  ;;  %v598_v49 = vadd.f32 %v597_v47, %v596_v46  ;;  %v581_v52 = vrot.slane %v580_v44, 4  ;;  %v607_v54 = vadd.f32 %v606_v51, %v605_v50 }
   0xc   :  { %v590_v53 = vrot.slane %v589_v45, 4  ;;  %v614_v55 = vsel %vm8717_vm0, %v170_v32, 0.0  ;;  %v615_v58 = vsel %vm8717_vm0, %v171_v33, 0.0  ;;  %v623_v59 = vsel %vm8717_vm0, %v172_v34, 0.0 }
   0xd   :  { %v574_v56 = vrot.slane %v573_v48, 2  ;;  %v599_v57 = vrot.slane %v598_v49, 4  ;;  %v582_v60 = vadd.f32 %v581_v52, %v580_v44  ;;  %v608_v62 = vrot.slane %v607_v54, 4 }
   0xe   :  { %v591_v61 = vadd.f32 %v590_v53, %v589_v45  ;;  %v616_v63 = vadd.f32 %v615_v58, %v614_v55  ;;  %v624_v8 = vsel %vm8717_vm0, %v173_v36, 0.0  ;;  %v632_v12 = vsel %vm8717_vm0, %v174_v37, 0.0 }
   0xf   :  { %v575_v0 = vadd.f32 %v574_v56, %v573_v48  ;;  %v600_v1 = vadd.f32 %v599_v57, %v598_v49  ;;  %v583_v13 = vrot.slane %v582_v60, 2  ;;  %v609_v18 = vadd.f32 %v608_v62, %v607_v54  ;;  %v4980_v49 = vld [vmem:[%s8624_s0 + $0x8] sm:$0xff] }
  0x10   :  { %v592_v14 = vrot.slane %v591_v61, 2  ;;  %v617_v19 = vrot.slane %v616_v63, 4  ;;  %v625_v21 = vadd.f32 %v624_v8, %v623_v59  ;;  %v633_v25 = vsel %vm8717_vm0, %v175_v38, 0.0  ;;  %v4975_v38 = vld [vmem:[%s8624_s0] sm:$0xff] }
  0x11   :  { %v601_v20 = vrot.slane %v600_v1, 2  ;;  %v584_v26 = vadd.f32 %v583_v13, %v582_v60  ;;  %v610_v28 = vrot.slane %v609_v18, 2  ;;  %v634_v35 = vadd.f32 %v633_v25, %v632_v12 }
  0x12   :  { %v593_v27 = vadd.f32 %v592_v14, %v591_v61  ;;  %v618_v32 = vadd.f32 %v617_v19, %v616_v63  ;;  %v626_v34 = vrot.slane %v625_v21, 4  ;;  %v576_v39 = vrot.slane %v575_v0, 1 }
  0x13   :  { %v602_v33 = vadd.f32 %v601_v20, %v600_v1  ;;  %v585_v40 = vrot.slane %v584_v26, 1  ;;  %v611_v36 = vadd.f32 %v610_v28, %v609_v18  ;;  %v635_v44 = vrot.slane %v634_v35, 4 }
  0x14   :  { %v619_v41 = vrot.slane %v618_v32, 2  ;;  %v594_v37 = vrot.slane %v593_v27, 1  ;;  %v627_v43 = vadd.f32 %v626_v34, %v625_v21  ;;  %v4982_v50 = vadd.f32 %v576_v39, %v575_v0 }
  0x15   :  { %v603_v42 = vrot.slane %v602_v33, 1  ;;  %v612_v45 = vrot.slane %v611_v36, 1  ;;  %v636_v48 = vadd.f32 %v635_v44, %v634_v35  ;;  %v4984_v51 = vadd.f32 %v585_v40, %v584_v26 }
  0x16   :  { %v620_v46 = vadd.f32 %v619_v41, %v618_v32  ;;  %v628_v47 = vrot.slane %v627_v43, 2  ;;  %8936 = vst [vmem:[#allocation5_spill] sm:$0xff] %v4982_v50  ;;  %v4986_v53 = vadd.f32 %v594_v37, %v593_v27  ;;  %v96_v59 = vmul.f32 %v4847_v4, %v4975_v38 }
  0x17   :  { %8937 = vst [vmem:[#allocation6_spill] sm:$0xff] %v4984_v51  ;;  %v4988_v54 = vadd.f32 %v603_v42, %v602_v33  ;;  %v637_v56 = vrot.slane %v636_v48, 2  ;;  %v4990_v57 = vadd.f32 %v612_v45, %v611_v36  ;;  %v97_v60 = vmul.f32 %v4852_v5, %v4980_v49 }
  0x18   :  { %v621_v52 = vrot.slane %v620_v46, 1  ;;  %8938 = vst [vmem:[#allocation7_spill] sm:$0xff] %v4986_v53  ;;  %v629_v55 = vadd.f32 %v628_v47, %v627_v43  ;;  %v98_v63 = vmul.f32 %v4857_v6, %v4975_v38  ;;  %v99_v0 = vmul.f32 %v4862_v7, %v4980_v49 }
  0x19   :  { %8939 = vst [vmem:[#allocation8_spill] sm:$0xff] %v4988_v54  ;;  %v638_v62 = vadd.f32 %v637_v56, %v636_v48  ;;  %v100_v1 = vmul.f32 %v4869_v9, %v4975_v38  ;;  %v101_v8 = vmul.f32 %v4874_v10, %v4980_v49  ;;  %v102_v4 = vmul.f32 %v4879_v11, %v4975_v38 }
  0x1a   :  { %8940 = vst [vmem:[#allocation9_spill] sm:$0xff] %v4990_v57  ;;  %v4992_v58 = vadd.f32 %v621_v52, %v620_v46  ;;  %v630_v61 = vrot.slane %v629_v55, 1  ;;  %v103_v5 = vmul.f32 %v4890_v15, %v4980_v49  ;;  %v104_v6 = vmul.f32 %v4895_v16, %v4975_v38 }
  0x1b   :  { %v639_v13 = vrot.slane %v638_v62, 1  ;;  %v105_v7 = vmul.f32 %v4900_v17, %v4980_v49  ;;  %v106_v9 = vmul.f32 %v4912_v22, %v4975_v38  ;;  %v107_v10 = vmul.f32 %v4917_v23, %v4980_v49 }
  0x1c   :  { %8941 = vst [vmem:[#allocation10_spill] sm:$0xff] %v4992_v58  ;;  %v5010_v12 = vadd.f32 %v630_v61, %v629_v55  ;;  %v108_v11 = vmul.f32 %v4922_v24, %v4975_v38  ;;  %v109_v15 = vmul.f32 %v4934_v29, %v4980_v49  ;;  %v110_v16 = vmul.f32 %v4939_v30, %v4975_v38 }
  0x1d   :  { %v5024_v14 = vadd.f32 %v639_v13, %v638_v62  ;;  %v111_v17 = vmul.f32 %v4944_v31, %v4980_v49  ;;  %v281_v18 = vsel %vm8717_vm0, %v96_v59, 0.0  ;;  %v282_v22 = vsel %vm8717_vm0, %v97_v60, 0.0 }
  0x1e   :  { %8942 = vst [vmem:[#allocation11_spill] sm:$0xff] %v5010_v12  ;;  %v290_v23 = vsel %vm8717_vm0, %v98_v63, 0.0  ;;  %v291_v19 = vsel %vm8717_vm0, %v99_v0, 0.0  ;;  %v299_v24 = vsel %vm8717_vm0, %v100_v1, 0.0  ;;  %v283_v20 = vadd.f32 %v282_v22, %v281_v18 }
  0x1f   :  { %8943 = vst [vmem:[#allocation12_spill] sm:$0xff] %v5024_v14  ;;  %v292_v29 = vadd.f32 %v291_v19, %v290_v23  ;;  %v300_v21 = vsel %vm8717_vm0, %v101_v8, 0.0  ;;  %v308_v25 = vsel %vm8717_vm0, %v102_v4, 0.0  ;;  %v309_v26 = vsel %vm8717_vm0, %v103_v5, 0.0  ;;  %v5054_v19 = vld [vmem:[%s8625_s1 + $0x8] sm:$0xff] }
  0x20   :  { %v301_v30 = vadd.f32 %v300_v21, %v299_v24  ;;  %v317_v31 = vsel %vm8717_vm0, %v104_v6, 0.0  ;;  %v318_v27 = vsel %vm8717_vm0, %v105_v7, 0.0  ;;  %v284_v28 = vrot.slane %v283_v20, 4  ;;  %v5063_v21 = vld [vmem:[%s8625_s1 + $0x10] sm:$0xff] }
  0x21   :  { %v293_v32 = vrot.slane %v292_v29, 4  ;;  %v310_v33 = vadd.f32 %v309_v26, %v308_v25  ;;  %v319_v34 = vadd.f32 %v318_v27, %v317_v31  ;;  %v326_v39 = vsel %vm8717_vm0, %v106_v9, 0.0  ;;  %v5070_v27 = vld [vmem:[%s8625_s1 + $0x18] sm:$0xff] }
  0x22   :  { %v302_v35 = vrot.slane %v301_v30, 4  ;;  %v327_v40 = vsel %vm8717_vm0, %v107_v10, 0.0  ;;  %v335_v36 = vsel %vm8717_vm0, %v108_v11, 0.0  ;;  %v285_v41 = vadd.f32 %v284_v28, %v283_v20  ;;  %v5075_v28 = vld [vmem:[%s8625_s1 + $0x20] sm:$0xff] }
  0x23   :  { %v294_v37 = vadd.f32 %v293_v32, %v292_v29  ;;  %v311_v42 = vrot.slane %v310_v33, 4  ;;  %v320_v43 = vrot.slane %v319_v34, 4  ;;  %v328_v45 = vadd.f32 %v327_v40, %v326_v39  ;;  %v5080_v32 = vld [vmem:[%s8625_s1 + $0x28] sm:$0xff]  ;;  %v5092_v39 = vld [vmem:[%s8625_s1 + $0x38] sm:$0xff] }
  0x24   :  { %v303_v44 = vadd.f32 %v302_v35, %v301_v30  ;;  %v336_v46 = vsel %vm8717_vm0, %v109_v15, 0.0  ;;  %v344_v47 = vsel %vm8717_vm0, %v110_v16, 0.0  ;;  %v286_v48 = vrot.slane %v285_v41, 2  ;;  %v5087_v35 = vld [vmem:[%s8625_s1 + $0x30] sm:$0xff] }
  0x25   :  { %v295_v52 = vrot.slane %v294_v37, 2  ;;  %v312_v55 = vadd.f32 %v311_v42, %v310_v33  ;;  %v321_v56 = vadd.f32 %v320_v43, %v319_v34  ;;  %v329_v60 = vrot.slane %v328_v45, 4  ;;  %v5107_v43 = vld [vmem:[%s8625_s1 + $0x40] sm:$0xff] }
  0x26   :  { %v304_v59 = vrot.slane %v303_v44, 2  ;;  %v337_v61 = vadd.f32 %v336_v46, %v335_v36  ;;  %v345_v62 = vsel %vm8717_vm0, %v111_v17, 0.0  ;;  %v287_v63 = vadd.f32 %v286_v48, %v285_v41  ;;  %v5049_v17 = vld [vmem:[%s8625_s1] sm:$0xff] }
  0x27   :  { %v296_v0 = vadd.f32 %v295_v52, %v294_v37  ;;  %v313_v1 = vrot.slane %v312_v55, 2  ;;  %v322_v8 = vrot.slane %v321_v56, 2  ;;  %v330_v5 = vadd.f32 %v329_v60, %v328_v45  ;;  %v5117_v45 = vld [vmem:[%s8625_s1 + $0x50] sm:$0xff] }
  0x28   :  { %v305_v4 = vadd.f32 %v304_v59, %v303_v44  ;;  %v338_v13 = vrot.slane %v337_v61, 4  ;;  %v346_v6 = vadd.f32 %v345_v62, %v344_v47  ;;  %v288_v7 = vrot.slane %v287_v63, 1  ;;  %v5112_v44 = vld [vmem:[%s8625_s1 + $0x48] sm:$0xff] }
  0x29   :  { %v297_v9 = vrot.slane %v296_v0, 1  ;;  %v314_v10 = vadd.f32 %v313_v1, %v312_v55  ;;  %v323_v11 = vadd.f32 %v322_v8, %v321_v56  ;;  %v331_v18 = vrot.slane %v330_v5, 2 }
  0x2a   :  { %v306_v16 = vrot.slane %v305_v4, 1  ;;  %v339_v22 = vadd.f32 %v338_v13, %v337_v61  ;;  %v347_v23 = vrot.slane %v346_v6, 4  ;;  %v5056_v24 = vadd.f32 %v288_v7, %v287_v63 }
  0x2b   :  { %v5058_v20 = vadd.f32 %v297_v9, %v296_v0  ;;  %v315_v29 = vrot.slane %v314_v10, 1  ;;  %v324_v30 = vrot.slane %v323_v11, 1  ;;  %v332_v26 = vadd.f32 %v331_v18, %v330_v5 }
  0x2c   :  { %8944 = vst [vmem:[#allocation13_spill] sm:$0xff] %v5056_v24  ;;  %v5065_v25 = vadd.f32 %v306_v16, %v305_v4  ;;  %v340_v31 = vrot.slane %v339_v22, 2  ;;  %v348_v34 = vadd.f32 %v347_v23, %v346_v6  ;;  %v5096_v40 = vmul.f32 %v5049_v17, %v4975_v38  ;;  %v5173_v23 = vld [vmem:[%s8625_s1 + $0x58] sm:$0xff] }
  0x2d   :  { %8945 = vst [vmem:[#allocation14_spill] sm:$0xff] %v5058_v20  ;;  %v5082_v33 = vadd.f32 %v315_v29, %v314_v10  ;;  %v5100_v36 = vmul.f32 %v5054_v19, %v4980_v49  ;;  %vm927_vm6 = vcmask 1046534   ;;  %v5102_v41 = vadd.f32 %v324_v30, %v323_v11 }
  0x2e   :  { %8946 = vst [vmem:[#allocation15_spill] sm:$0xff] %v5065_v25  ;;  %v333_v37 = vrot.slane %v332_v26, 1  ;;  %v341_v42 = vadd.f32 %v340_v31, %v339_v22  ;;  %v82_v46 = vmul.f32 %v5063_v21, %v4975_v38  ;;  %vm8718_vm7 = vcmask 1047559  }
  0x2f   :  { %8947 = vst [vmem:[#allocation16_spill] sm:$0xff] %v5082_v33  ;;  %v349_v47 = vrot.slane %v348_v34, 2  ;;  %v83_v48 = vmul.f32 %v5070_v27, %v4980_v49  ;;  %v84_v52 = vmul.f32 %v5075_v28, %v4975_v38  ;;  %v85_v55 = vmul.f32 %v5080_v32, %v4980_v49 }
  0x30   :  { %8948 = vst [vmem:[#allocation17_spill] sm:$0xff] %v5102_v41  ;;  %v5127_v56 = vadd.f32 %v333_v37, %v332_v26  ;;  %v342_v59 = vrot.slane %v341_v42, 1  ;;  %v86_v60 = vmul.f32 %v5087_v35, %v4975_v38  ;;  %v5133_v61 = vmul.f32 %v5092_v39, %v4980_v49 }
  0x31   :  { %v350_v63 = vadd.f32 %v349_v47, %v348_v34  ;;  %v5139_v0 = vmul.f32 %v5107_v43, %v4975_v38  ;;  %v5143_v1 = vmul.f32 %v5112_v44, %v4980_v49  ;;  %v5147_v8 = vmul.f32 %v5117_v45, %v4975_v38  ;;  %v5185_v34 = vld [vmem:[%s8625_s1 + $0x60] sm:$0xff] }
  0x32   :  { %8949 = vst [vmem:[#allocation18_spill] sm:$0xff] %v5127_v56  ;;  %v5166_v16 = vadd.f32 %v342_v59, %v341_v42 }
  0x33   :  { %v351_v18 = vrot.slane %v350_v63, 1 }
  0x34   :  { %8950 = vst [vmem:[#allocation19_spill] sm:$0xff] %v5166_v16 }
  0x35   :  { %v5188_v42 = vadd.f32 %v351_v18, %v350_v63  ;;  %v91_v18 = vmul.f32 %v5173_v23, %v4980_v49 }
  0x37   :  { %8951 = vst [vmem:[#allocation20_spill] sm:$0xff] %v5188_v42 }
  0x76   :  { %v787_v15 = vpop.xlane.xlu0 %786 }
  0x77   :  { %4400 = vrcp.f32 %v787_v15 }
  0x7d   :  { %v5135_v62 = vpop.eup %4400 }
  0x7e   :  { %v829_v4 = vmul.f32 %v5135_v62, %v4982_v50  ;;  %v830_v5 = vmul.f32 %v5135_v62, %v4984_v51  ;;  %v831_v13 = vmul.f32 %v5135_v62, %v4986_v53  ;;  %v832_v6 = vmul.f32 %v5135_v62, %v4988_v54  ;;  %v5371_v54 = vld [vmem:[%s8625_s1 + $0x170] sm:$0xff]  ;;  %v5376_v53 = vld [vmem:[%s8625_s1 + $0x178] sm:$0xff] }
  0x7f   :  { %v833_v7 = vmul.f32 %v5135_v62, %v4990_v57  ;;  %v834_v9 = vmul.f32 %v5135_v62, %v4992_v58  ;;  %v835_v10 = vmul.f32 %v5135_v62, %v5010_v12  ;;  %v836_v11 = vmul.f32 %v5135_v62, %v5024_v14  ;;  %8959 = vst [vmem:[#allocation28_spill] sm:$0xff] %v5371_v54 }
  0x80   :  { %v959_v15 = vsel %vm917_vm1, %v830_v5, %v829_v4  ;;  %v797_v22 = vmul.f32 %v5135_v62, %v5056_v24  ;;  %v798_v30 = vmul.f32 %v5135_v62, %v5058_v20  ;;  %v799_v26 = vmul.f32 %v5135_v62, %v5065_v25  ;;  %v5197_v4 = vld [vmem:[%s8625_s1 + $0x68] sm:$0xff]  ;;  %v5202_v5 = vld [vmem:[%s8625_s1 + $0x70] sm:$0xff]  ;;  %8960 = vst [vmem:[#allocation29_spill] sm:$0xff] %v5376_v53 }
  0x81   :  { %v960_v29 = vsel %vm919_vm2, %v831_v13, %v959_v15  ;;  %v800_v31 = vmul.f32 %v5135_v62, %v5082_v33  ;;  %v801_v47 = vmul.f32 %v5135_v62, %v5102_v41  ;;  %v802_v59 = vmul.f32 %v5135_v62, %v5127_v56  ;;  %v5211_v15 = vld [vmem:[%s8625_s1 + $0x78] sm:$0xff] }
  0x82   :  { %v961_v37 = vsel %vm921_vm3, %v832_v6, %v960_v29  ;;  %v803_v63 = vmul.f32 %v5135_v62, %v5166_v16  ;;  %v931_v6 = vsel %vm917_vm1, %v798_v30, %v797_v22  ;;  %v804_v14 = vmul.f32 %v5135_v62, %v5188_v42 }
  0x83   :  { %v962_v13 = vsel %vm923_vm4, %v833_v7, %v961_v37  ;;  %v932_v7 = vsel %vm919_vm2, %v799_v26, %v931_v6  ;;  %v92_v37 = vmul.f32 %v5185_v34, %v4975_v38  ;;  %v93_v50 = vmul.f32 %v5197_v4, %v4980_v49 }
  0x84   :  { %v963_v29 = vsel %vm925_vm5, %v834_v9, %v962_v13  ;;  %v933_v30 = vsel %vm921_vm3, %v800_v31, %v932_v7  ;;  %v94_v12 = vmul.f32 %v5202_v5, %v4975_v38  ;;  %v95_v26 = vmul.f32 %v5211_v15, %v4980_v49 }
  0x85   :  { %v964_v22 = vsel %vm927_vm6, %v835_v10, %v963_v29  ;;  %v934_v13 = vsel %vm923_vm4, %v801_v47, %v933_v30  ;;  %v209_v6 = vsel %vm8717_vm0, %v5096_v40, 0.0  ;;  %v210_v29 = vsel %vm8717_vm0, %v5100_v36, 0.0 }
  0x86   :  { %v965_v9 = vsel %vm8718_vm7, %v836_v11, %v964_v22  ;;  %v935_v31 = vsel %vm925_vm5, %v802_v59, %v934_v13  ;;  %v218_v7 = vsel %vm8717_vm0, %v82_v46, 0.0  ;;  %v211_v22 = vadd.f32 %v210_v29, %v209_v6 }
  0x87   :  { %v1003_v10 = vsel %vm8717_vm0, %v965_v9, 0.0  ;;  %v936_v11 = vsel %vm927_vm6, %v803_v63, %v935_v31  ;;  %v219_v47 = vsel %vm8717_vm0, %v83_v48, 0.0  ;;  %v227_v30 = vsel %vm8717_vm0, %v84_v52, 0.0 }
  0x88   :  { %1004 = vadd.xlane.f32.xlu2 %v1003_v10  ;;  %v937_v58 = vsel %vm8718_vm7, %v804_v14, %v936_v11  ;;  %v220_v40 = vadd.f32 %v219_v47, %v218_v7  ;;  %v228_v9 = vsel %vm8717_vm0, %v85_v55, 0.0  ;;  %v236_v59 = vsel %vm8717_vm0, %v86_v60, 0.0 }
  0x89   :  { %v991_v13 = vsel %vm8717_vm0, %v937_v58, 0.0  ;;  %v212_v36 = vrot.slane %v211_v22, 4  ;;  %v229_v57 = vadd.f32 %v228_v9, %v227_v30  ;;  %v237_v46 = vsel %vm8717_vm0, %v5133_v61, 0.0 }
  0x8a   :  { %992 = vadd.xlane.f32.xlu1 %v991_v13  ;;  %v221_v63 = vrot.slane %v220_v40, 4  ;;  %v238_v6 = vadd.f32 %v237_v46, %v236_v59  ;;  %v245_v48 = vsel %vm8717_vm0, %v5139_v0, 0.0  ;;  %v246_v14 = vsel %vm8717_vm0, %v5143_v1, 0.0 }
  0x8b   :  { %v213_v52 = vadd.f32 %v212_v36, %v211_v22  ;;  %v230_v55 = vrot.slane %v229_v57, 4  ;;  %v247_v10 = vadd.f32 %v246_v14, %v245_v48  ;;  %v254_v58 = vsel %vm8717_vm0, %v5147_v8, 0.0 }
  0x8c   :  { %v222_v60 = vadd.f32 %v221_v63, %v220_v40  ;;  %v239_v31 = vrot.slane %v238_v6, 4  ;;  %v255_v29 = vsel %vm8717_vm0, %v91_v18, 0.0  ;;  %v263_v61 = vsel %vm8717_vm0, %v92_v37, 0.0 }
  0x8d   :  { %v214_v7 = vrot.slane %v213_v52, 2  ;;  %v231_v11 = vadd.f32 %v230_v55, %v229_v57  ;;  %v248_v47 = vrot.slane %v247_v10, 4  ;;  %v256_v30 = vadd.f32 %v255_v29, %v254_v58 }
  0x8e   :  { %v223_v0 = vrot.slane %v222_v60, 2  ;;  %v240_v9 = vadd.f32 %v239_v31, %v238_v6  ;;  %v264_v1 = vsel %vm8717_vm0, %v93_v50, 0.0  ;;  %v272_v22 = vsel %vm8717_vm0, %v94_v12, 0.0 }
  0x8f   :  { %v215_v59 = vadd.f32 %v214_v7, %v213_v52  ;;  %v232_v13 = vrot.slane %v231_v11, 2  ;;  %v249_v36 = vadd.f32 %v248_v47, %v247_v10  ;;  %v257_v8 = vrot.slane %v256_v30, 4 }
  0x90   :  { %v224_v40 = vadd.f32 %v223_v0, %v222_v60  ;;  %v241_v46 = vrot.slane %v240_v9, 2  ;;  %v265_v63 = vadd.f32 %v264_v1, %v263_v61  ;;  %v273_v18 = vsel %vm8717_vm0, %v95_v26, 0.0  ;;  %v5265_v26 = vld [vmem:[%s8625_s1 + $0x100] sm:$0xff] }
  0x91   :  { %v216_v37 = vrot.slane %v215_v59, 1  ;;  %v233_v48 = vadd.f32 %v232_v13, %v231_v11  ;;  %v250_v57 = vrot.slane %v249_v36, 2  ;;  %v258_v14 = vadd.f32 %v257_v8, %v256_v30  ;;  %v5278_v13 = vld [vmem:[%s8625_s1 + $0x108] sm:$0xff] }
  0x92   :  { %v225_v55 = vrot.slane %v224_v40, 1  ;;  %v242_v58 = vadd.f32 %v241_v46, %v240_v9  ;;  %v266_v6 = vrot.slane %v265_v63, 4  ;;  %v274_v31 = vadd.f32 %v273_v18, %v272_v22  ;;  %v5287_v46 = vld [vmem:[%s8625_s1 + $0x110] sm:$0xff] }
  0x93   :  { %v5258_v50 = vadd.f32 %v216_v37, %v215_v59  ;;  %v234_v12 = vrot.slane %v233_v48, 1  ;;  %v251_v52 = vadd.f32 %v250_v57, %v249_v36  ;;  %v259_v29 = vrot.slane %v258_v14, 2 }
  0x94   :  { %v5260_v10 = vadd.f32 %v225_v55, %v224_v40  ;;  %v243_v60 = vrot.slane %v242_v58, 1  ;;  %v267_v7 = vadd.f32 %v266_v6, %v265_v63  ;;  %v275_v61 = vrot.slane %v274_v31, 4  ;;  %v5302_v55 = vld [vmem:[%s8625_s1 + $0x120] sm:$0xff] }
  0x95   :  { %8952 = vst [vmem:[#allocation21_spill] sm:$0xff] %v5258_v50  ;;  %v5267_v11 = vadd.f32 %v234_v12, %v233_v48  ;;  %v252_v47 = vrot.slane %v251_v52, 1  ;;  %v260_v30 = vadd.f32 %v259_v29, %v258_v14  ;;  %v789_v0 = vmul.f32 %v5135_v62, %v5258_v50  ;;  %v5297_v14 = vld [vmem:[%s8625_s1 + $0x118] sm:$0xff]  ;;  %v5312_v12 = vld [vmem:[%s8625_s1 + $0x128] sm:$0xff] }
  0x96   :  { %8953 = vst [vmem:[#allocation22_spill] sm:$0xff] %v5260_v10  ;;  %v5271_v9 = vadd.f32 %v243_v60, %v242_v58  ;;  %v268_v1 = vrot.slane %v267_v7, 2  ;;  %v276_v22 = vadd.f32 %v275_v61, %v274_v31  ;;  %v790_v59 = vmul.f32 %v5135_v62, %v5260_v10 }
  0x97   :  { %8954 = vst [vmem:[#allocation23_spill] sm:$0xff] %v5267_v11  ;;  %v5280_v36 = vadd.f32 %v252_v47, %v251_v52  ;;  %v261_v8 = vrot.slane %v260_v30, 1  ;;  %v791_v40 = vmul.f32 %v5135_v62, %v5267_v11  ;;  %v112_v63 = vmul.f32 %v5265_v26, %v4975_v38  ;;  %v5317_v52 = vld [vmem:[%s8625_s1 + $0x130] sm:$0xff]  ;;  %v5325_v47 = vld [vmem:[%s8625_s1 + $0x138] sm:$0xff] }
  0x98   :  { %8955 = vst [vmem:[#allocation24_spill] sm:$0xff] %v5271_v9  ;;  %v269_v18 = vadd.f32 %v268_v1, %v267_v7  ;;  %v277_v37 = vrot.slane %v276_v22, 2  ;;  %v792_v48 = vmul.f32 %v5135_v62, %v5271_v9  ;;  %v918_v57 = vsel %vm917_vm1, %v790_v59, %v789_v0  ;;  %v5335_v0 = vld [vmem:[%s8625_s1 + $0x148] sm:$0xff] }
  0x99   :  { %8956 = vst [vmem:[#allocation25_spill] sm:$0xff] %v5280_v36  ;;  %v5304_v58 = vadd.f32 %v261_v8, %v260_v30  ;;  %v793_v6 = vmul.f32 %v5135_v62, %v5280_v36  ;;  %v920_v31 = vsel %vm919_vm2, %v791_v40, %v918_v57  ;;  %v113_v29 = vmul.f32 %v5278_v13, %v4980_v49  ;;  %v5330_v30 = vld [vmem:[%s8625_s1 + $0x140] sm:$0xff]  ;;  %v5345_v8 = vld [vmem:[%s8625_s1 + $0x150] sm:$0xff]  ;;  %v5350_v40 = vld [vmem:[%s8625_s1 + $0x158] sm:$0xff] }
  0x9a   :  { %v270_v60 = vrot.slane %v269_v18, 1  ;;  %v278_v7 = vadd.f32 %v277_v37, %v276_v22  ;;  %v922_v61 = vsel %vm921_vm3, %v792_v48, %v920_v31  ;;  %v114_v1 = vmul.f32 %v5287_v46, %v4975_v38  ;;  %v5355_v37 = vld [vmem:[%s8625_s1 + $0x160] sm:$0xff] }
  0x9b   :  { %8957 = vst [vmem:[#allocation26_spill] sm:$0xff] %v5304_v58  ;;  %v794_v22 = vmul.f32 %v5135_v62, %v5304_v58  ;;  %v924_v59 = vsel %vm923_vm4, %v793_v6, %v922_v61  ;;  %v115_v48 = vmul.f32 %v5297_v14, %v4980_v49  ;;  %v116_v57 = vmul.f32 %v5302_v55, %v4975_v38  ;;  %v5366_v61 = vld [vmem:[%s8625_s1 + $0x168] sm:$0xff] }
  0x9c   :  { %v5361_v6 = vadd.f32 %v270_v60, %v269_v18  ;;  %v279_v31 = vrot.slane %v278_v7, 1  ;;  %v117_v18 = vmul.f32 %v5312_v12, %v4980_v49  ;;  %v118_v60 = vmul.f32 %v5317_v52, %v4975_v38 }
  0x9d   :  { %v926_v51 = vsel %vm925_vm5, %v794_v22, %v924_v59  ;;  %v119_v58 = vmul.f32 %v5325_v47, %v4980_v49  ;;  %v120_v50 = vmul.f32 %v5330_v30, %v4975_v38  ;;  %v121_v36 = vmul.f32 %v5335_v0, %v4980_v49 }
  0x9e   :  { %8958 = vst [vmem:[#allocation27_spill] sm:$0xff] %v5361_v6  ;;  %v5389_v9 = vadd.f32 %v279_v31, %v278_v7  ;;  %v795_v11 = vmul.f32 %v5135_v62, %v5361_v6  ;;  %v122_v10 = vmul.f32 %v5345_v8, %v4975_v38  ;;  %v123_v22 = vmul.f32 %v5350_v40, %v4980_v49 }
  0x9f   :  { %v124_v59 = vmul.f32 %v5355_v37, %v4975_v38  ;;  %v125_v42 = vmul.f32 %v5366_v61, %v4980_v49  ;;  %v126_v24 = vmul.f32 %v5371_v54, %v4975_v38  ;;  %v127_v7 = vmul.f32 %v5376_v53, %v4980_v49 }
  0xa0   :  { %8961 = vst [vmem:[#allocation30_spill] sm:$0xff] %v5389_v9  ;;  %v796_v31 = vmul.f32 %v5135_v62, %v5389_v9  ;;  %v928_v6 = vsel %vm927_vm6, %v795_v11, %v926_v51  ;;  %v353_v16 = vsel %vm8717_vm0, %v112_v63, 0.0  ;;  %v354_v56 = vsel %vm8717_vm0, %v113_v29, 0.0 }
  0xa1   :  { %v355_v41 = vadd.f32 %v354_v56, %v353_v16  ;;  %v362_v33 = vsel %vm8717_vm0, %v114_v1, 0.0  ;;  %v363_v25 = vsel %vm8717_vm0, %v115_v48, 0.0  ;;  %v371_v20 = vsel %vm8717_vm0, %v116_v57, 0.0 }
  0xa2   :  { %v930_v38 = vsel %vm8718_vm7, %v796_v31, %v928_v6  ;;  %v364_v54 = vadd.f32 %v363_v25, %v362_v33  ;;  %v372_v49 = vsel %vm8717_vm0, %v117_v18, 0.0  ;;  %v380_v9 = vsel %vm8717_vm0, %v118_v60, 0.0 }
  0xa3   :  { %v988_v51 = vsel %vm8717_vm0, %v930_v38, 0.0  ;;  %v356_v11 = vrot.slane %v355_v41, 4  ;;  %v373_v63 = vadd.f32 %v372_v49, %v371_v20  ;;  %v381_v29 = vsel %vm8717_vm0, %v119_v58, 0.0 }
  0xa4   :  { %989 = vadd.xlane.f32.xlu0 %v988_v51  ;;  %v365_v56 = vrot.slane %v364_v54, 4  ;;  %v382_v16 = vadd.f32 %v381_v29, %v380_v9  ;;  %v389_v1 = vsel %vm8717_vm0, %v120_v50, 0.0  ;;  %v390_v48 = vsel %vm8717_vm0, %v121_v36, 0.0 }
  0xa5   :  { %v357_v57 = vadd.f32 %v356_v11, %v355_v41  ;;  %v374_v6 = vrot.slane %v373_v63, 4  ;;  %v391_v25 = vadd.f32 %v390_v48, %v389_v1  ;;  %v398_v33 = vsel %vm8717_vm0, %v122_v10, 0.0 }
  0xa6   :  { %v366_v18 = vadd.f32 %v365_v56, %v364_v54  ;;  %v383_v60 = vrot.slane %v382_v16, 4  ;;  %v399_v31 = vsel %vm8717_vm0, %v123_v22, 0.0  ;;  %v407_v20 = vsel %vm8717_vm0, %v124_v59, 0.0 }
  0xa7   :  { %v358_v38 = vrot.slane %v357_v57, 2  ;;  %v375_v58 = vadd.f32 %v374_v6, %v373_v63  ;;  %v392_v49 = vrot.slane %v391_v25, 4  ;;  %v400_v51 = vadd.f32 %v399_v31, %v398_v33 }
  0xa8   :  { %v367_v9 = vrot.slane %v366_v18, 2  ;;  %v384_v29 = vadd.f32 %v383_v60, %v382_v16  ;;  %v408_v50 = vsel %vm8717_vm0, %v125_v42, 0.0  ;;  %v416_v41 = vsel %vm8717_vm0, %v126_v24, 0.0 }
  0xa9   :  { %v359_v36 = vadd.f32 %v358_v38, %v357_v57  ;;  %v376_v11 = vrot.slane %v375_v58, 2  ;;  %v393_v1 = vadd.f32 %v392_v49, %v391_v25  ;;  %v401_v10 = vrot.slane %v400_v51, 4 }
  0xaa   :  { %v368_v54 = vadd.f32 %v367_v9, %v366_v18  ;;  %v385_v56 = vrot.slane %v384_v29, 2  ;;  %v409_v48 = vadd.f32 %v408_v50, %v407_v20  ;;  %v417_v22 = vsel %vm8717_vm0, %v127_v7, 0.0 }
  0xab   :  { %v360_v59 = vrot.slane %v359_v36, 1  ;;  %v377_v53 = vadd.f32 %v376_v11, %v375_v58  ;;  %v394_v63 = vrot.slane %v393_v1, 2  ;;  %v402_v6 = vadd.f32 %v401_v10, %v400_v51 }
  0xac   :  { %v369_v33 = vrot.slane %v368_v54, 1  ;;  %v386_v31 = vadd.f32 %v385_v56, %v384_v29  ;;  %v410_v16 = vrot.slane %v409_v48, 4  ;;  %v418_v60 = vadd.f32 %v417_v22, %v416_v41 }
  0xad   :  { %v5426_v42 = vadd.f32 %v360_v59, %v359_v36  ;;  %v378_v24 = vrot.slane %v377_v53, 1  ;;  %v395_v57 = vadd.f32 %v394_v63, %v393_v1  ;;  %v403_v38 = vrot.slane %v402_v6, 2 }
  0xae   :  { %v5428_v25 = vadd.f32 %v369_v33, %v368_v54  ;;  %v387_v18 = vrot.slane %v386_v31, 1  ;;  %v411_v49 = vadd.f32 %v410_v16, %v409_v48  ;;  %v419_v20 = vrot.slane %v418_v60, 4 }
  0xaf   :  { %8962 = vst [vmem:[#allocation31_spill] sm:$0xff] %v5426_v42  ;;  %v5430_v9 = vadd.f32 %v378_v24, %v377_v53  ;;  %v396_v7 = vrot.slane %v395_v57, 1  ;;  %v404_v58 = vadd.f32 %v403_v38, %v402_v6  ;;  %v805_v51 = vmul.f32 %v5135_v62, %v5426_v42 }
  0xb0   :  { %8963 = vst [vmem:[#allocation32_spill] sm:$0xff] %v5428_v25  ;;  %v5434_v29 = vadd.f32 %v387_v18, %v386_v31  ;;  %v412_v50 = vrot.slane %v411_v49, 2  ;;  %v420_v41 = vadd.f32 %v419_v20, %v418_v60  ;;  %v806_v36 = vmul.f32 %v5135_v62, %v5428_v25 }
  0xb1   :  { %8964 = vst [vmem:[#allocation33_spill] sm:$0xff] %v5430_v9  ;;  %v5438_v11 = vadd.f32 %v396_v7, %v395_v57  ;;  %v405_v1 = vrot.slane %v404_v58, 1  ;;  %v807_v10 = vmul.f32 %v5135_v62, %v5430_v9  ;;  %v144_v53 = vmul.f32 %v5049_v17, %v4837_v2 }
  0xb2   :  { %8965 = vst [vmem:[#allocation34_spill] sm:$0xff] %v5434_v29  ;;  %v413_v54 = vadd.f32 %v412_v50, %v411_v49  ;;  %v421_v56 = vrot.slane %v420_v41, 2  ;;  %v808_v48 = vmul.f32 %v5135_v62, %v5434_v29  ;;  %v938_v22 = vsel %vm917_vm1, %v806_v36, %v805_v51 }
  0xb3   :  { %8966 = vst [vmem:[#allocation35_spill] sm:$0xff] %v5438_v11  ;;  %v5447_v59 = vadd.f32 %v405_v1, %v404_v58  ;;  %v809_v63 = vmul.f32 %v5135_v62, %v5438_v11  ;;  %v939_v6 = vsel %vm919_vm2, %v807_v10, %v938_v22  ;;  %v145_v33 = vmul.f32 %v5054_v19, %v4842_v3 }
  0xb4   :  { %v414_v31 = vrot.slane %v413_v54, 1  ;;  %v422_v16 = vadd.f32 %v421_v56, %v420_v41  ;;  %v940_v17 = vsel %vm921_vm3, %v808_v48, %v939_v6  ;;  %v146_v60 = vmul.f32 %v5063_v21, %v4837_v2 }
  0xb5   :  { %8967 = vst [vmem:[#allocation36_spill] sm:$0xff] %v5447_v59  ;;  %v810_v24 = vmul.f32 %v5135_v62, %v5447_v59  ;;  %v941_v57 = vsel %vm923_vm4, %v809_v63, %v940_v17  ;;  %v147_v38 = vmul.f32 %v5070_v27, %v4842_v3  ;;  %v148_v18 = vmul.f32 %v5075_v28, %v4837_v2 }
  0xb6   :  { %v5464_v49 = vadd.f32 %v414_v31, %v413_v54  ;;  %v423_v19 = vrot.slane %v422_v16, 1  ;;  %v149_v20 = vmul.f32 %v5080_v32, %v4842_v3  ;;  %v150_v21 = vmul.f32 %v5087_v35, %v4837_v2 }
  0xb7   :  { %v942_v7 = vsel %vm925_vm5, %v810_v24, %v941_v57  ;;  %v151_v58 = vmul.f32 %v5092_v39, %v4842_v3  ;;  %v152_v27 = vmul.f32 %v5107_v43, %v4837_v2  ;;  %v153_v28 = vmul.f32 %v5112_v44, %v4842_v3 }
  0xb8   :  { %8968 = vst [vmem:[#allocation37_spill] sm:$0xff] %v5464_v49  ;;  %v5477_v51 = vadd.f32 %v423_v19, %v422_v16  ;;  %v811_v50 = vmul.f32 %v5135_v62, %v5464_v49  ;;  %v154_v32 = vmul.f32 %v5117_v45, %v4837_v2  ;;  %v155_v35 = vmul.f32 %v5173_v23, %v4842_v3 }
  0xb9   :  { %v156_v39 = vmul.f32 %v5185_v34, %v4837_v2  ;;  %v157_v43 = vmul.f32 %v5197_v4, %v4842_v3  ;;  %v158_v44 = vmul.f32 %v5202_v5, %v4837_v2  ;;  %v159_v41 = vmul.f32 %v5211_v15, %v4842_v3 }
  0xba   :  { %8969 = vst [vmem:[#allocation38_spill] sm:$0xff] %v5477_v51  ;;  %v812_v36 = vmul.f32 %v5135_v62, %v5477_v51  ;;  %v943_v45 = vsel %vm927_vm6, %v811_v50, %v942_v7  ;;  %v497_v1 = vsel %vm8717_vm0, %v144_v53, 0.0  ;;  %v498_v23 = vsel %vm8717_vm0, %v145_v33, 0.0 }
  0xbb   :  { %v499_v10 = vadd.f32 %v498_v23, %v497_v1  ;;  %v506_v34 = vsel %vm8717_vm0, %v146_v60, 0.0  ;;  %v507_v4 = vsel %vm8717_vm0, %v147_v38, 0.0  ;;  %v515_v54 = vsel %vm8717_vm0, %v148_v18, 0.0 }
  0xbc   :  { %v944_v2 = vsel %vm8718_vm7, %v812_v36, %v943_v45  ;;  %v508_v5 = vadd.f32 %v507_v4, %v506_v34  ;;  %v516_v3 = vsel %vm8717_vm0, %v149_v20, 0.0  ;;  %v524_v15 = vsel %vm8717_vm0, %v150_v21, 0.0 }
  0xbd   :  { %v994_v56 = vsel %vm8717_vm0, %v944_v2, 0.0  ;;  %v500_v48 = vrot.slane %v499_v10, 4  ;;  %v517_v53 = vadd.f32 %v516_v3, %v515_v54  ;;  %v525_v22 = vsel %vm8717_vm0, %v151_v58, 0.0 }
  0xbe   :  { %995 = vadd.xlane.f32.xlu2 %v994_v56  ;;  %v509_v63 = vrot.slane %v508_v5, 4  ;;  %v526_v6 = vadd.f32 %v525_v22, %v524_v15  ;;  %v533_v33 = vsel %vm8717_vm0, %v152_v27, 0.0  ;;  %v534_v31 = vsel %vm8717_vm0, %v153_v28, 0.0 }
  0xbf   :  { %v501_v16 = vadd.f32 %v500_v48, %v499_v10  ;;  %v518_v17 = vrot.slane %v517_v53, 4  ;;  %v535_v60 = vadd.f32 %v534_v31, %v533_v33  ;;  %v542_v24 = vsel %vm8717_vm0, %v154_v32, 0.0 }
  0xc0   :  { %v510_v57 = vadd.f32 %v509_v63, %v508_v5  ;;  %v527_v38 = vrot.slane %v526_v6, 4  ;;  %v543_v18 = vsel %vm8717_vm0, %v155_v35, 0.0  ;;  %v551_v19 = vsel %vm8717_vm0, %v156_v39, 0.0 }
  0xc1   :  { %v502_v20 = vrot.slane %v501_v16, 2  ;;  %v519_v21 = vadd.f32 %v518_v17, %v517_v53  ;;  %v536_v7 = vrot.slane %v535_v60, 4  ;;  %v544_v58 = vadd.f32 %v543_v18, %v542_v24 }
  0xc2   :  { %v511_v50 = vrot.slane %v510_v57, 2  ;;  %v528_v36 = vadd.f32 %v527_v38, %v526_v6  ;;  %v552_v27 = vsel %vm8717_vm0, %v157_v43, 0.0  ;;  %v560_v28 = vsel %vm8717_vm0, %v158_v44, 0.0 }
  0xc3   :  { %v503_v45 = vadd.f32 %v502_v20, %v501_v16  ;;  %v520_v1 = vrot.slane %v519_v21, 2  ;;  %v537_v23 = vadd.f32 %v536_v7, %v535_v60  ;;  %v545_v32 = vrot.slane %v544_v58, 4  ;;  %v5533_v7 = vld [vmem:[%s8624_s0 + $0x10] sm:$0xff] }
  0xc4   :  { %v512_v10 = vadd.f32 %v511_v50, %v510_v57  ;;  %v529_v34 = vrot.slane %v528_v36, 2  ;;  %v553_v4 = vadd.f32 %v552_v27, %v551_v19  ;;  %v561_v35 = vsel %vm8717_vm0, %v159_v41, 0.0 }
  0xc5   :  { %v504_v39 = vrot.slane %v503_v45, 1  ;;  %v521_v54 = vadd.f32 %v520_v1, %v519_v21  ;;  %v538_v2 = vrot.slane %v537_v23, 2  ;;  %v546_v5 = vadd.f32 %v545_v32, %v544_v58  ;;  %v5548_v32 = vld [vmem:[%s8624_s0 + $0x18] sm:$0xff] }
  0xc6   :  { %v513_v3 = vrot.slane %v512_v10, 1  ;;  %v530_v15 = vadd.f32 %v529_v34, %v528_v36  ;;  %v554_v56 = vrot.slane %v553_v4, 4  ;;  %v562_v48 = vadd.f32 %v561_v35, %v560_v28 }
  0xc7   :  { %v5514_v43 = vadd.f32 %v504_v39, %v503_v45  ;;  %v522_v44 = vrot.slane %v521_v54, 1  ;;  %v539_v53 = vadd.f32 %v538_v2, %v537_v23  ;;  %v547_v22 = vrot.slane %v546_v5, 2 }
  0xc8   :  { %v5516_v63 = vadd.f32 %v513_v3, %v512_v10  ;;  %v531_v6 = vrot.slane %v530_v15, 1  ;;  %v555_v33 = vadd.f32 %v554_v56, %v553_v4  ;;  %v563_v31 = vrot.slane %v562_v48, 4 }
  0xc9   :  { %8970 = vst [vmem:[#allocation39_spill] sm:$0xff] %v5514_v43  ;;  %v5518_v16 = vadd.f32 %v522_v44, %v521_v54  ;;  %v540_v41 = vrot.slane %v539_v53, 1  ;;  %v548_v17 = vadd.f32 %v547_v22, %v546_v5  ;;  %v821_v60 = vmul.f32 %v5135_v62, %v5514_v43  ;;  %v8978_v22 = vld [vmem:[#allocation28_spill] sm:$0xff] }
  0xca   :  { %8971 = vst [vmem:[#allocation40_spill] sm:$0xff] %v5516_v63  ;;  %v5522_v24 = vadd.f32 %v531_v6, %v530_v15  ;;  %v556_v57 = vrot.slane %v555_v33, 2  ;;  %v564_v38 = vadd.f32 %v563_v31, %v562_v48  ;;  %v822_v18 = vmul.f32 %v5135_v62, %v5516_v63  ;;  %v8979_v6 = vld [vmem:[#allocation29_spill] sm:$0xff] }
  0xcb   :  { %8972 = vst [vmem:[#allocation41_spill] sm:$0xff] %v5518_v16  ;;  %v5526_v19 = vadd.f32 %v540_v41, %v539_v53  ;;  %v549_v20 = vrot.slane %v548_v17, 1  ;;  %v823_v21 = vmul.f32 %v5135_v62, %v5518_v16  ;;  %v176_v58 = vmul.f32 %v5533_v7, %v5265_v26 }
  0xcc   :  { %8973 = vst [vmem:[#allocation42_spill] sm:$0xff] %v5522_v24  ;;  %v557_v50 = vadd.f32 %v556_v57, %v555_v33  ;;  %v565_v36 = vrot.slane %v564_v38, 2  ;;  %v824_v27 = vmul.f32 %v5135_v62, %v5522_v24  ;;  %v952_v28 = vsel %vm917_vm1, %v822_v18, %v821_v60 }
  0xcd   :  { %8974 = vst [vmem:[#allocation43_spill] sm:$0xff] %v5526_v19  ;;  %v5540_v45 = vadd.f32 %v549_v20, %v548_v17  ;;  %v825_v1 = vmul.f32 %v5135_v62, %v5526_v19  ;;  %v953_v23 = vsel %vm919_vm2, %v823_v21, %v952_v28  ;;  %v177_v26 = vmul.f32 %v5548_v32, %v5278_v13 }
  0xce   :  { %v558_v10 = vrot.slane %v557_v50, 1  ;;  %v566_v34 = vadd.f32 %v565_v36, %v564_v38  ;;  %v954_v4 = vsel %vm921_vm3, %v824_v27, %v953_v23  ;;  %v178_v35 = vmul.f32 %v5533_v7, %v5287_v46 }
  0xcf   :  { %8975 = vst [vmem:[#allocation44_spill] sm:$0xff] %v5540_v45  ;;  %v826_v39 = vmul.f32 %v5135_v62, %v5540_v45  ;;  %v955_v54 = vsel %vm923_vm4, %v825_v1, %v954_v4  ;;  %v179_v2 = vmul.f32 %v5548_v32, %v5297_v14  ;;  %v180_v5 = vmul.f32 %v5533_v7, %v5302_v55 }
  0xd0   :  { %v5562_v3 = vadd.f32 %v558_v10, %v557_v50  ;;  %v567_v13 = vrot.slane %v566_v34, 1  ;;  %v181_v15 = vmul.f32 %v5548_v32, %v5312_v12  ;;  %v182_v46 = vmul.f32 %v5533_v7, %v5317_v52 }
  0xd1   :  { %v956_v56 = vsel %vm925_vm5, %v826_v39, %v955_v54  ;;  %v183_v48 = vmul.f32 %v5548_v32, %v5325_v47  ;;  %v184_v14 = vmul.f32 %v5533_v7, %v5330_v30  ;;  %v185_v55 = vmul.f32 %v5548_v32, %v5335_v0 }
  0xd2   :  { %8976 = vst [vmem:[#allocation45_spill] sm:$0xff] %v5562_v3  ;;  %v5575_v44 = vadd.f32 %v567_v13, %v566_v34  ;;  %v827_v53 = vmul.f32 %v5135_v62, %v5562_v3  ;;  %v186_v12 = vmul.f32 %v5533_v7, %v5345_v8  ;;  %v187_v52 = vmul.f32 %v5548_v32, %v5350_v40 }
  0xd3   :  { %v188_v47 = vmul.f32 %v5533_v7, %v5355_v37  ;;  %v189_v30 = vmul.f32 %v5548_v32, %v5366_v61  ;;  %v190_v0 = vmul.f32 %v5533_v7, %v8978_v22  ;;  %v191_v33 = vmul.f32 %v5548_v32, %v8979_v6 }
  0xd4   :  { %8977 = vst [vmem:[#allocation46_spill] sm:$0xff] %v5575_v44  ;;  %v828_v31 = vmul.f32 %v5135_v62, %v5575_v44  ;;  %v957_v8 = vsel %vm927_vm6, %v827_v53, %v956_v56  ;;  %v641_v41 = vsel %vm8717_vm0, %v176_v58, 0.0  ;;  %v642_v40 = vsel %vm8717_vm0, %v177_v26, 0.0 }
  0xd5   :  { %v643_v17 = vadd.f32 %v642_v40, %v641_v41  ;;  %v650_v37 = vsel %vm8717_vm0, %v178_v35, 0.0  ;;  %v651_v61 = vsel %vm8717_vm0, %v179_v2, 0.0  ;;  %v659_v60 = vsel %vm8717_vm0, %v180_v5, 0.0 }
  0xd6   :  { %v958_v57 = vsel %vm8718_vm7, %v828_v31, %v957_v8  ;;  %v652_v38 = vadd.f32 %v651_v61, %v650_v37  ;;  %v660_v18 = vsel %vm8717_vm0, %v181_v15, 0.0  ;;  %v668_v20 = vsel %vm8717_vm0, %v182_v46, 0.0 }
  0xd7   :  { %v1000_v21 = vsel %vm8717_vm0, %v958_v57, 0.0  ;;  %v644_v50 = vrot.slane %v643_v17, 4  ;;  %v661_v58 = vadd.f32 %v660_v18, %v659_v60  ;;  %v669_v36 = vsel %vm8717_vm0, %v183_v48, 0.0 }
  0xd8   :  { %1001 = vadd.xlane.f32.xlu1 %v1000_v21  ;;  %v653_v27 = vrot.slane %v652_v38, 4  ;;  %v670_v28 = vadd.f32 %v669_v36, %v668_v20  ;;  %v677_v1 = vsel %vm8717_vm0, %v184_v14, 0.0  ;;  %v678_v23 = vsel %vm8717_vm0, %v185_v55, 0.0 }
  0xd9   :  { %v645_v26 = vadd.f32 %v644_v50, %v643_v17  ;;  %v662_v10 = vrot.slane %v661_v58, 4  ;;  %v679_v34 = vadd.f32 %v678_v23, %v677_v1  ;;  %v686_v4 = vsel %vm8717_vm0, %v186_v12, 0.0 }
  0xda   :  { %v654_v35 = vadd.f32 %v653_v27, %v652_v38  ;;  %v671_v39 = vrot.slane %v670_v28, 4  ;;  %v687_v54 = vsel %vm8717_vm0, %v187_v52, 0.0  ;;  %v695_v2 = vsel %vm8717_vm0, %v188_v47, 0.0 }
  0xdb   :  { %v646_v5 = vrot.slane %v645_v26, 2  ;;  %v663_v13 = vadd.f32 %v662_v10, %v661_v58  ;;  %v680_v15 = vrot.slane %v679_v34, 4  ;;  %v688_v46 = vadd.f32 %v687_v54, %v686_v4 }
  0xdc   :  { %v655_v56 = vrot.slane %v654_v35, 2  ;;  %v672_v48 = vadd.f32 %v671_v39, %v670_v28  ;;  %v696_v14 = vsel %vm8717_vm0, %v189_v30, 0.0  ;;  %v704_v55 = vsel %vm8717_vm0, %v190_v0, 0.0 }
  0xdd   :  { %v647_v53 = vadd.f32 %v646_v5, %v645_v26  ;;  %v664_v22 = vrot.slane %v663_v13, 2  ;;  %v681_v6 = vadd.f32 %v680_v15, %v679_v34  ;;  %v689_v12 = vrot.slane %v688_v46, 4  ;;  %v5641_v5 = vld [vmem:[%s8625_s1 + $0x190] sm:$0xff] }
  0xde   :  { %v656_v31 = vadd.f32 %v655_v56, %v654_v35  ;;  %v673_v8 = vrot.slane %v672_v48, 2  ;;  %v697_v41 = vadd.f32 %v696_v14, %v695_v2  ;;  %v705_v52 = vsel %vm8717_vm0, %v191_v33, 0.0  ;;  %v5619_v33 = vld [vmem:[%s8625_s1 + $0x180] sm:$0xff]  ;;  %v5632_v35 = vld [vmem:[%s8625_s1 + $0x188] sm:$0xff]  ;;  %v5651_v14 = vld [vmem:[%s8625_s1 + $0x198] sm:$0xff] }
  0xdf   :  { %v648_v47 = vrot.slane %v647_v53, 1  ;;  %v665_v40 = vadd.f32 %v664_v22, %v663_v13  ;;  %v682_v17 = vrot.slane %v681_v6, 2  ;;  %v690_v37 = vadd.f32 %v689_v12, %v688_v46  ;;  %v5666_v12 = vld [vmem:[%s8625_s1 + $0x1a8] sm:$0xff] }
  0xe0   :  { %v657_v61 = vrot.slane %v656_v31, 1  ;;  %v674_v60 = vadd.f32 %v673_v8, %v672_v48  ;;  %v698_v57 = vrot.slane %v697_v41, 4  ;;  %v706_v38 = vadd.f32 %v705_v52, %v704_v55  ;;  %v5656_v55 = vld [vmem:[%s8625_s1 + $0x1a0] sm:$0xff] }
  0xe1   :  { %v5612_v30 = vadd.f32 %v648_v47, %v647_v53  ;;  %v666_v0 = vrot.slane %v665_v40, 1  ;;  %v683_v18 = vadd.f32 %v682_v17, %v681_v6  ;;  %v691_v20 = vrot.slane %v690_v37, 2  ;;  %v5684_v17 = vld [vmem:[%s8625_s1 + $0x1c0] sm:$0xff] }
  0xe2   :  { %v5614_v21 = vadd.f32 %v657_v61, %v656_v31  ;;  %v675_v50 = vrot.slane %v674_v60, 1  ;;  %v699_v58 = vadd.f32 %v698_v57, %v697_v41  ;;  %v707_v36 = vrot.slane %v706_v38, 4  ;;  %v5671_v31 = vld [vmem:[%s8625_s1 + $0x1b0] sm:$0xff] }
  0xe3   :  { %8980 = vst [vmem:[#allocation28_spill] sm:$0xff] %v5612_v30  ;;  %v5621_v27 = vadd.f32 %v666_v0, %v665_v40  ;;  %v684_v28 = vrot.slane %v683_v18, 1  ;;  %v692_v1 = vadd.f32 %v691_v20, %v690_v37  ;;  %v837_v23 = vmul.f32 %v5135_v62, %v5612_v30  ;;  %v5679_v40 = vld [vmem:[%s8625_s1 + $0x1b8] sm:$0xff]  ;;  %v5689_v37 = vld [vmem:[%s8625_s1 + $0x1c8] sm:$0xff] }
  0xe4   :  { %8981 = vst [vmem:[#allocation29_spill] sm:$0xff] %v5614_v21  ;;  %v5625_v26 = vadd.f32 %v675_v50, %v674_v60  ;;  %v700_v10 = vrot.slane %v699_v58, 2  ;;  %v708_v34 = vadd.f32 %v707_v36, %v706_v38  ;;  %v838_v4 = vmul.f32 %v5135_v62, %v5614_v21  ;;  %v5699_v38 = vld [vmem:[%s8625_s1 + $0x1d0] sm:$0xff]  ;;  %v5704_v0 = vld [vmem:[%s8625_s1 + $0x1d8] sm:$0xff] }
  0xe5   :  { %8982 = vst [vmem:[#allocation47_spill] sm:$0xff] %v5621_v27  ;;  %v5634_v39 = vadd.f32 %v684_v28, %v683_v18  ;;  %v693_v54 = vrot.slane %v692_v1, 1  ;;  %v839_v2 = vmul.f32 %v5135_v62, %v5621_v27  ;;  %v192_v13 = vmul.f32 %v5533_v7, %v5619_v33  ;;  %v5709_v18 = vld [vmem:[%s8625_s1 + $0x1e0] sm:$0xff]  ;;  %v5720_v28 = vld [vmem:[%s8625_s1 + $0x1e8] sm:$0xff] }
  0xe6   :  { %8983 = vst [vmem:[#allocation48_spill] sm:$0xff] %v5625_v26  ;;  %v701_v15 = vadd.f32 %v700_v10, %v699_v58  ;;  %v709_v46 = vrot.slane %v708_v34, 2  ;;  %v840_v56 = vmul.f32 %v5135_v62, %v5625_v26  ;;  %v966_v48 = vsel %vm917_vm1, %v838_v4, %v837_v23  ;;  %v5730_v23 = vld [vmem:[%s8625_s1 + $0x1f8] sm:$0xff] }
  0xe7   :  { %8984 = vst [vmem:[#allocation49_spill] sm:$0xff] %v5634_v39  ;;  %v5658_v53 = vadd.f32 %v693_v54, %v692_v1  ;;  %v841_v22 = vmul.f32 %v5135_v62, %v5634_v39  ;;  %v967_v6 = vsel %vm919_vm2, %v839_v2, %v966_v48  ;;  %v193_v8 = vmul.f32 %v5548_v32, %v5632_v35  ;;  %v5725_v1 = vld [vmem:[%s8625_s1 + $0x1f0] sm:$0xff] }
  0xe8   :  { %v702_v41 = vrot.slane %v701_v15, 1  ;;  %v710_v52 = vadd.f32 %v709_v46, %v708_v34  ;;  %v968_v47 = vsel %vm921_vm3, %v840_v56, %v967_v6  ;;  %v194_v61 = vmul.f32 %v5533_v7, %v5641_v5 }
  0xe9   :  { %8985 = vst [vmem:[#allocation50_spill] sm:$0xff] %v5658_v53  ;;  %v842_v60 = vmul.f32 %v5135_v62, %v5658_v53  ;;  %v969_v57 = vsel %vm923_vm4, %v841_v22, %v968_v47  ;;  %v195_v20 = vmul.f32 %v5548_v32, %v5651_v14  ;;  %v196_v50 = vmul.f32 %v5533_v7, %v5656_v55 }
  0xea   :  { %v5715_v58 = vadd.f32 %v702_v41, %v701_v15  ;;  %v711_v36 = vrot.slane %v710_v52, 1  ;;  %v197_v10 = vmul.f32 %v5548_v32, %v5666_v12  ;;  %v198_v34 = vmul.f32 %v5533_v7, %v5671_v31 }
  0xeb   :  { %v970_v4 = vsel %vm925_vm5, %v842_v60, %v969_v57  ;;  %v199_v54 = vmul.f32 %v5548_v32, %v5679_v40  ;;  %v200_v2 = vmul.f32 %v5533_v7, %v5684_v17  ;;  %v201_v15 = vmul.f32 %v5548_v32, %v5689_v37 }
  0xec   :  { %8986 = vst [vmem:[#allocation51_spill] sm:$0xff] %v5715_v58  ;;  %v5743_v46 = vadd.f32 %v711_v36, %v710_v52  ;;  %v843_v56 = vmul.f32 %v5135_v62, %v5715_v58  ;;  %v202_v48 = vmul.f32 %v5533_v7, %v5699_v38  ;;  %v203_v22 = vmul.f32 %v5548_v32, %v5704_v0 }
  0xed   :  { %v204_v6 = vmul.f32 %v5533_v7, %v5709_v18  ;;  %v205_v41 = vmul.f32 %v5548_v32, %v5720_v28  ;;  %v206_v47 = vmul.f32 %v5533_v7, %v5725_v1  ;;  %v207_v52 = vmul.f32 %v5548_v32, %v5730_v23 }
  0xee   :  { %8987 = vst [vmem:[#allocation52_spill] sm:$0xff] %v5743_v46  ;;  %v844_v60 = vmul.f32 %v5135_v62, %v5743_v46  ;;  %v971_v57 = vsel %vm927_vm6, %v843_v56, %v970_v4  ;;  %v713_v36 = vsel %vm8717_vm0, %v192_v13, 0.0  ;;  %v714_v58 = vsel %vm8717_vm0, %v193_v8, 0.0 }
  0xef   :  { %v715_v53 = vadd.f32 %v714_v58, %v713_v36  ;;  %v722_v30 = vsel %vm8717_vm0, %v194_v61, 0.0  ;;  %v723_v39 = vsel %vm8717_vm0, %v195_v20, 0.0  ;;  %v731_v26 = vsel %vm8717_vm0, %v196_v50, 0.0 }
  0xf0   :  { %v972_v7 = vsel %vm8718_vm7, %v844_v60, %v971_v57  ;;  %v724_v27 = vadd.f32 %v723_v39, %v722_v30  ;;  %v732_v32 = vsel %vm8717_vm0, %v197_v10, 0.0  ;;  %v740_v46 = vsel %vm8717_vm0, %v198_v34, 0.0 }
  0xf1   :  { %v1006_v4 = vsel %vm8717_vm0, %v972_v7, 0.0  ;;  %v716_v56 = vrot.slane %v715_v53, 4  ;;  %v733_v13 = vadd.f32 %v732_v32, %v731_v26  ;;  %v741_v8 = vsel %vm8717_vm0, %v199_v54, 0.0 }
  0xf2   :  { %1007 = vadd.xlane.f32.xlu0 %v1006_v4  ;;  %v725_v58 = vrot.slane %v724_v27, 4  ;;  %v742_v61 = vadd.f32 %v741_v8, %v740_v46  ;;  %v749_v20 = vsel %vm8717_vm0, %v200_v2, 0.0  ;;  %v750_v50 = vsel %vm8717_vm0, %v201_v15, 0.0 }
  0xf3   :  { %v717_v36 = vadd.f32 %v716_v56, %v715_v53  ;;  %v734_v60 = vrot.slane %v733_v13, 4  ;;  %v751_v30 = vadd.f32 %v750_v50, %v749_v20  ;;  %v758_v39 = vsel %vm8717_vm0, %v202_v48, 0.0 }
  0xf4   :  { %v726_v10 = vadd.f32 %v725_v58, %v724_v27  ;;  %v743_v34 = vrot.slane %v742_v61, 4  ;;  %v759_v57 = vsel %vm8717_vm0, %v203_v22, 0.0  ;;  %v767_v26 = vsel %vm8717_vm0, %v204_v6, 0.0 }
  0xf5   :  { %v718_v7 = vrot.slane %v717_v36, 2  ;;  %v735_v54 = vadd.f32 %v734_v60, %v733_v13  ;;  %v752_v32 = vrot.slane %v751_v30, 4  ;;  %v760_v4 = vadd.f32 %v759_v57, %v758_v39 }
  0xf6   :  { %v727_v46 = vrot.slane %v726_v10, 2  ;;  %v744_v8 = vadd.f32 %v743_v34, %v742_v61  ;;  %v768_v2 = vsel %vm8717_vm0, %v205_v41, 0.0  ;;  %v776_v53 = vsel %vm8717_vm0, %v206_v47, 0.0 }
  0xf7   :  { %v719_v15 = vadd.f32 %v718_v7, %v717_v36  ;;  %v736_v56 = vrot.slane %v735_v54, 2  ;;  %v753_v20 = vadd.f32 %v752_v32, %v751_v30  ;;  %v761_v48 = vrot.slane %v760_v4, 4 }
  0xf8   :  { %v728_v27 = vadd.f32 %v727_v46, %v726_v10  ;;  %v745_v58 = vrot.slane %v744_v8, 2  ;;  %v769_v50 = vadd.f32 %v768_v2, %v767_v26  ;;  %v777_v22 = vsel %vm8717_vm0, %v207_v52, 0.0 }
  0xf9   :  { %v720_v6 = vrot.slane %v719_v15, 1  ;;  %v737_v21 = vadd.f32 %v736_v56, %v735_v54  ;;  %v754_v13 = vrot.slane %v753_v20, 2  ;;  %v762_v60 = vadd.f32 %v761_v48, %v760_v4 }
  0xfa   :  { %v729_v39 = vrot.slane %v728_v27, 1  ;;  %v746_v57 = vadd.f32 %v745_v58, %v744_v8  ;;  %v770_v61 = vrot.slane %v769_v50, 4  ;;  %v778_v34 = vadd.f32 %v777_v22, %v776_v53 }
  0xfb   :  { %v5780_v41 = vadd.f32 %v720_v6, %v719_v15  ;;  %v738_v47 = vrot.slane %v737_v21, 1  ;;  %v755_v36 = vadd.f32 %v754_v13, %v753_v20  ;;  %v763_v7 = vrot.slane %v762_v60, 2 }
  0xfc   :  { %v5782_v30 = vadd.f32 %v729_v39, %v728_v27  ;;  %v747_v10 = vrot.slane %v746_v57, 1  ;;  %v771_v32 = vadd.f32 %v770_v61, %v769_v50  ;;  %v779_v26 = vrot.slane %v778_v34, 4 }
  0xfd   :  { %8988 = vst [vmem:[#allocation53_spill] sm:$0xff] %v5780_v41  ;;  %v5784_v46 = vadd.f32 %v738_v47, %v737_v21  ;;  %v756_v52 = vrot.slane %v755_v36, 1  ;;  %v764_v54 = vadd.f32 %v763_v7, %v762_v60  ;;  %v845_v4 = vmul.f32 %v5135_v62, %v5780_v41  ;;  %v4788_v21 = vld [vmem:[%s8624_s0] sm:$0xff] }
  0xfe   :  { %8989 = vst [vmem:[#allocation54_spill] sm:$0xff] %v5782_v30  ;;  %v5788_v8 = vadd.f32 %v747_v10, %v746_v57  ;;  %v772_v2 = vrot.slane %v771_v32, 2  ;;  %v780_v53 = vadd.f32 %v779_v26, %v778_v34  ;;  %v846_v15 = vmul.f32 %v5135_v62, %v5782_v30  ;;  %v4789_v57 = vld [vmem:[%s8624_s0 + $0x8] sm:$0xff]  ;;  %s4817_s0 = smov [#allocation2]  }
  0xff   :  { %8990 = vst [vmem:[#allocation55_spill] sm:$0xff] %v5784_v46  ;;  %v5792_v56 = vadd.f32 %v756_v52, %v755_v36  ;;  %v765_v20 = vrot.slane %v764_v54, 1  ;;  %v847_v48 = vmul.f32 %v5135_v62, %v5784_v46  ;;  %v128_v27 = vmul.f32 %v4788_v21, %v5619_v33  ;;  %s4387_s12 = sshll.u32 %s4817_s0, 4  ;;  %s4388_s12 = int_to_ptr.vmem [resolvable:$true] %s4387_s12 }
 0x100   :  { %8991 = vst [vmem:[#allocation56_spill] sm:$0xff] %v5788_v8  ;;  %v773_v58 = vadd.f32 %v772_v2, %v771_v32  ;;  %v781_v50 = vrot.slane %v780_v53, 2  ;;  %v848_v22 = vmul.f32 %v5135_v62, %v5788_v8  ;;  %v973_v6 = vsel %vm917_vm1, %v846_v15, %v845_v4 }
 0x101   :  { %8992 = vst [vmem:[#allocation57_spill] sm:$0xff] %v5792_v56  ;;  %v5803_v13 = vadd.f32 %v765_v20, %v764_v54  ;;  %v849_v60 = vmul.f32 %v5135_v62, %v5792_v56  ;;  %v974_v39 = vsel %vm919_vm2, %v847_v48, %v973_v6  ;;  %v129_v33 = vmul.f32 %v4789_v57, %v5632_v35 }
 0x102   :  { %v774_v61 = vrot.slane %v773_v58, 1  ;;  %v782_v34 = vadd.f32 %v781_v50, %v780_v53  ;;  %v975_v47 = vsel %vm921_vm3, %v848_v22, %v974_v39  ;;  %v130_v36 = vmul.f32 %v4788_v21, %v5641_v5 }
 0x103   :  { %8993 = vst [vmem:[#allocation58_spill] sm:$0xff] %v5803_v13  ;;  %v850_v7 = vmul.f32 %v5135_v62, %v5803_v13  ;;  %v976_v10 = vsel %vm923_vm4, %v849_v60, %v975_v47  ;;  %v131_v32 = vmul.f32 %v4789_v57, %v5651_v14  ;;  %v132_v26 = vmul.f32 %v4788_v21, %v5656_v55 }
 0x104   :  { %v5819_v52 = vadd.f32 %v774_v61, %v773_v58  ;;  %v783_v54 = vrot.slane %v782_v34, 1  ;;  %v133_v35 = vmul.f32 %v4789_v57, %v5666_v12  ;;  %v134_v4 = vmul.f32 %v4788_v21, %v5671_v31 }
 0x105   :  { %v977_v2 = vsel %vm925_vm5, %v850_v7, %v976_v10  ;;  %v135_v5 = vmul.f32 %v4789_v57, %v5679_v40  ;;  %v136_v53 = vmul.f32 %v4788_v21, %v5684_v17  ;;  %v137_v15 = vmul.f32 %v4789_v57, %v5689_v37 }
 0x106   :  { %8994 = vst [vmem:[#allocation59_spill] sm:$0xff] %v5819_v52  ;;  %v5827_v20 = vadd.f32 %v783_v54, %v782_v34  ;;  %v851_v14 = vmul.f32 %v5135_v62, %v5819_v52  ;;  %v138_v55 = vmul.f32 %v4788_v21, %v5699_v38  ;;  %v139_v48 = vmul.f32 %v4789_v57, %v5704_v0 }
 0x107   :  { %v140_v12 = vmul.f32 %v4788_v21, %v5709_v18  ;;  %v141_v31 = vmul.f32 %v4789_v57, %v5720_v28  ;;  %v142_v58 = vmul.f32 %v4788_v21, %v5725_v1  ;;  %v143_v40 = vmul.f32 %v4789_v57, %v5730_v23 }
 0x108   :  { %8995 = vst [vmem:[#allocation60_spill] sm:$0xff] %v5827_v20  ;;  %v852_v17 = vmul.f32 %v5135_v62, %v5827_v20  ;;  %v978_v37 = vsel %vm927_vm6, %v851_v14, %v977_v2  ;;  %v425_v50 = vsel %vm8717_vm0, %v128_v27, 0.0  ;;  %v426_v22 = vsel %vm8717_vm0, %v129_v33, 0.0 }
 0x109   :  { %v427_v38 = vadd.f32 %v426_v22, %v425_v50  ;;  %v434_v0 = vsel %vm8717_vm0, %v130_v36, 0.0  ;;  %v435_v18 = vsel %vm8717_vm0, %v131_v32, 0.0  ;;  %v443_v28 = vsel %vm8717_vm0, %v132_v26, 0.0 }
 0x10a   :  { %v979_v1 = vsel %vm8718_vm7, %v852_v17, %v978_v37  ;;  %v436_v21 = vadd.f32 %v435_v18, %v434_v0  ;;  %v444_v23 = vsel %vm8717_vm0, %v133_v35, 0.0  ;;  %v452_v6 = vsel %vm8717_vm0, %v134_v4, 0.0 }
 0x10b   :  { %v1009_v60 = vsel %vm8717_vm0, %v979_v1, 0.0  ;;  %v428_v39 = vrot.slane %v427_v38, 4  ;;  %v445_v27 = vadd.f32 %v444_v23, %v443_v28  ;;  %v453_v57 = vsel %vm8717_vm0, %v135_v5, 0.0 }
 0x10c   :  { %1010 = vadd.xlane.f32.xlu2 %v1009_v60  ;;  %v437_v33 = vrot.slane %v436_v21, 4  ;;  %v454_v61 = vadd.f32 %v453_v57, %v452_v6  ;;  %v461_v34 = vsel %vm8717_vm0, %v136_v53, 0.0  ;;  %v462_v47 = vsel %vm8717_vm0, %v137_v15, 0.0 }
 0x10d   :  { %v429_v36 = vadd.f32 %v428_v39, %v427_v38  ;;  %v446_v7 = vrot.slane %v445_v27, 4  ;;  %v463_v10 = vadd.f32 %v462_v47, %v461_v34  ;;  %v470_v32 = vsel %vm8717_vm0, %v138_v55, 0.0 }
 0x10e   :  { %v438_v26 = vadd.f32 %v437_v33, %v436_v21  ;;  %v455_v54 = vrot.slane %v454_v61, 4  ;;  %v471_v35 = vsel %vm8717_vm0, %v139_v48, 0.0  ;;  %v479_v4 = vsel %vm8717_vm0, %v140_v12, 0.0 }
 0x10f   :  { %v430_v2 = vrot.slane %v429_v36, 2  ;;  %v447_v5 = vadd.f32 %v446_v7, %v445_v27  ;;  %v464_v14 = vrot.slane %v463_v10, 4  ;;  %v472_v17 = vadd.f32 %v471_v35, %v470_v32 }
 0x110   :  { %v439_v37 = vrot.slane %v438_v26, 2  ;;  %v456_v50 = vadd.f32 %v455_v54, %v454_v61  ;;  %v480_v53 = vsel %vm8717_vm0, %v141_v31, 0.0  ;;  %v488_v15 = vsel %vm8717_vm0, %v142_v58, 0.0 }
 0x111   :  { %v431_v22 = vadd.f32 %v430_v2, %v429_v36  ;;  %v448_v38 = vrot.slane %v447_v5, 2  ;;  %v465_v0 = vadd.f32 %v464_v14, %v463_v10  ;;  %v473_v55 = vrot.slane %v472_v17, 4 }
 0x112   :  { %v440_v18 = vadd.f32 %v439_v37, %v438_v26  ;;  %v457_v28 = vrot.slane %v456_v50, 2  ;;  %v481_v1 = vadd.f32 %v480_v53, %v479_v4  ;;  %v489_v48 = vsel %vm8717_vm0, %v143_v40, 0.0 }
 0x113   :  { %v432_v12 = vrot.slane %v431_v22, 1  ;;  %v449_v21 = vadd.f32 %v448_v38, %v447_v5  ;;  %v466_v23 = vrot.slane %v465_v0, 2  ;;  %v474_v6 = vadd.f32 %v473_v55, %v472_v17 }
 0x114   :  { %v441_v60 = vrot.slane %v440_v18, 1  ;;  %v458_v39 = vadd.f32 %v457_v28, %v456_v50  ;;  %v482_v27 = vrot.slane %v481_v1, 4  ;;  %v490_v57 = vadd.f32 %v489_v48, %v488_v15 }
 0x115   :  { %v5858_v31 = vadd.f32 %v432_v12, %v431_v22  ;;  %v450_v58 = vrot.slane %v449_v21, 1  ;;  %v467_v33 = vadd.f32 %v466_v23, %v465_v0  ;;  %v475_v61 = vrot.slane %v474_v6, 2 }
 0x116   :  { %v5860_v34 = vadd.f32 %v441_v60, %v440_v18  ;;  %v459_v47 = vrot.slane %v458_v39, 1  ;;  %v483_v36 = vadd.f32 %v482_v27, %v481_v1  ;;  %v491_v7 = vrot.slane %v490_v57, 4 }
 0x117   :  { %8996 = vst [vmem:[#allocation61_spill] sm:$0xff] %v5858_v31  ;;  %v5862_v10 = vadd.f32 %v450_v58, %v449_v21  ;;  %v468_v40 = vrot.slane %v467_v33, 1  ;;  %v476_v32 = vadd.f32 %v475_v61, %v474_v6  ;;  %v813_v26 = vmul.f32 %v5135_v62, %v5858_v31  ;;  %v5898_v61 = vpop.xlane.xlu1 %992 }
 0x118   :  { %8997 = vst [vmem:[#allocation62_spill] sm:$0xff] %v5860_v34  ;;  %v5866_v54 = vadd.f32 %v459_v47, %v458_v39  ;;  %v484_v35 = vrot.slane %v483_v36, 2  ;;  %v492_v4 = vadd.f32 %v491_v7, %v490_v57  ;;  %v814_v2 = vmul.f32 %v5135_v62, %v5860_v34  ;;  %v5900_v47 = vpop.xlane.xlu0 %989 }
 0x119   :  { %8998 = vst [vmem:[#allocation63_spill] sm:$0xff] %v5862_v10  ;;  %v5870_v5 = vadd.f32 %v468_v40, %v467_v33  ;;  %v477_v14 = vrot.slane %v476_v32, 1  ;;  %v815_v17 = vmul.f32 %v5135_v62, %v5862_v10  ;;  %v1005_v33 = vpop.xlane.xlu2 %1004  ;;  %v1013_v40 = vmul.f32 %v5898_v61, %v5898_v61 }
 0x11a   :  { %8999 = vst [vmem:[#allocation64_spill] sm:$0xff] %v5866_v54  ;;  %v485_v37 = vadd.f32 %v484_v35, %v483_v36  ;;  %v493_v50 = vrot.slane %v492_v4, 2  ;;  %v816_v53 = vmul.f32 %v5135_v62, %v5866_v54  ;;  %v945_v15 = vsel %vm917_vm1, %v814_v2, %v813_v26 }
 0x11b   :  { %9000 = vst [vmem:[#allocation65_spill] sm:$0xff] %v5870_v5  ;;  %v5877_v22 = vadd.f32 %v477_v14, %v476_v32  ;;  %v817_v38 = vmul.f32 %v5135_v62, %v5870_v5  ;;  %v946_v0 = vsel %vm919_vm2, %v815_v17, %v945_v15  ;;  %v1017_v36 = vmul.f32 %v1005_v33, %v1005_v33 }
 0x11c   :  { %v486_v55 = vrot.slane %v485_v37, 1  ;;  %v494_v18 = vadd.f32 %v493_v50, %v492_v4  ;;  %v947_v28 = vsel %vm921_vm3, %v816_v53, %v946_v0  ;;  %v5924_v14 = vadd.f32 1e-09, %v1013_v40 }
 0x11d   :  { %9001 = vst [vmem:[#allocation66_spill] sm:$0xff] %v5877_v22  ;;  %v818_v1 = vmul.f32 %v5135_v62, %v5877_v22  ;;  %v948_v48 = vsel %vm923_vm4, %v817_v38, %v947_v28  ;;  %v5918_v4 = vadd.f32 1e-09, %v1017_v36 }
 0x11e   :  { %v5886_v12 = vadd.f32 %v486_v55, %v485_v37  ;;  %v495_v21 = vrot.slane %v494_v18, 1  ;;  %vm1076_vm10 = vweird.f32 %v5924_v14 }
 0x11f   :  { %v949_v23 = vsel %vm925_vm5, %v818_v1, %v948_v48  ;;  %4402 = vrsqrt.f32 %v5918_v4  ;;  %vm1116_vm8 = vweird.f32 %v5918_v4 }
 0x120   :  { %9002 = vst [vmem:[#allocation67_spill] sm:$0xff] %v5886_v12  ;;  %v5889_v6 = vadd.f32 %v495_v21, %v494_v18  ;;  %v819_v60 = vmul.f32 %v5135_v62, %v5886_v12  ;;  %4404 = vrsqrt.f32 %v5924_v14  ;;  %v1029_v12 = vadd.f32 1.0, %v1013_v40 }
 0x122   :  { %9003 = vst [vmem:[#allocation68_spill] sm:$0xff] %v5889_v6  ;;  %v820_v39 = vmul.f32 %v5135_v62, %v5889_v6  ;;  %v950_v27 = vsel %vm927_vm6, %v819_v60, %v949_v23  ;;  %v5910_v62 = vmul.f32 %v5900_v47, %v5900_v47 }
 0x124   :  { %v951_v57 = vsel %vm8718_vm7, %v820_v39, %v950_v27  ;;  %v5931_v37 = vadd.f32 1e-09, %v5910_v62  ;;  %v1028_v31 = vadd.f32 1.0, %v5910_v62 }
 0x125   :  { %v997_v58 = vsel %vm8717_vm0, %v951_v57, 0.0  ;;  %v5948_v38 = vpop.eup %4402  ;;  %v1033_v57 = vadd.f32 1.0, %v1017_v36 }
 0x126   :  { %998 = vadd.xlane.f32.xlu1 %v997_v58  ;;  %4406 = vrsqrt.f32 %v5931_v37  ;;  %v5950_v0 = vpop.eup %4404  ;;  %v1111_v48 = vmul.f32 %v5948_v38, %v5918_v4  ;;  %vm1117_vm9 = vweird.f32 %v5948_v38  ;;  %vm1066_vm12 = vweird.f32 %v5931_v37 }
 0x127   :  { %v1071_v21 = vmul.f32 %v5950_v0, %v5924_v14  ;;  %vm1077_vm11 = vweird.f32 %v5950_v0  ;;  %vm6007_vm14 = vmor %vm1116_vm8, %vm1117_vm9 }
 0x128   :  { %v1112_v58 = vmul.f32 %v5948_v38, %v1111_v48  ;;  %vm6018_vm0 = vmor %vm1076_vm10, %vm1077_vm11 }
 0x129   :  { %v1072_v6 = vmul.f32 %v5950_v0, %v1071_v21 }
 0x12a   :  { %v1113_v34 = vmul.f32 0.5, %v1112_v58 }
 0x12b   :  { %v1073_v20 = vmul.f32 0.5, %v1072_v6 }
 0x12c   :  { %v5952_v55 = vpop.eup %4406 }
 0x12d   :  { %v1061_v23 = vmul.f32 %v5952_v55, %v5931_v37  ;;  %vm1067_vm13 = vweird.f32 %v5952_v55 }
 0x12e   :  { %vm6027_vm9 = vmor %vm1066_vm12, %vm1067_vm13 }
 0x12f   :  { %v1062_v22 = vmul.f32 %v5952_v55, %v1061_v23 }
 0x131   :  { %v5902_v7 = vpop.xlane.xlu2 %995  ;;  %v1063_v48 = vmul.f32 0.5, %v1062_v22  ;;  %v1021_v22 = vmul.f32 %v1013_v40, %v5898_v61 }
 0x132   :  { %v5916_v35 = vmul.f32 %v5902_v7, %v5902_v7 }
 0x134   :  { %v5934_v50 = vadd.f32 1e-09, %v5916_v35  ;;  %v1030_v52 = vadd.f32 1.0, %v5916_v35  ;;  %v1022_v37 = vmul.f32 %v5916_v35, %v5902_v7 }
 0x136   :  { %4408 = vrsqrt.f32 %v5934_v50  ;;  %vm1086_vm7 = vweird.f32 %v5934_v50 }
 0x13c   :  { %v5954_v18 = vpop.eup %4408 }
 0x13d   :  { %v1081_v60 = vmul.f32 %v5954_v18, %v5934_v50  ;;  %vm1087_vm15 = vweird.f32 %v5954_v18 }
 0x13e   :  { %vm6044_vm11 = vmor %vm1086_vm7, %vm1087_vm15 }
 0x13f   :  { %v1082_v5 = vmul.f32 %v5954_v18, %v1081_v60 }
 0x141   :  { %v1083_v41 = vmul.f32 0.5, %v1082_v5 }
 0x14b   :  { %v5906_v32 = vpop.xlane.xlu1 %1001 }
 0x14c   :  { %v5922_v2 = vmul.f32 %v5906_v32, %v5906_v32 }
 0x14e   :  { %v5938_v53 = vadd.f32 1e-09, %v5922_v2  ;;  %v1032_v21 = vadd.f32 1.0, %v5922_v2  ;;  %v1024_v7 = vmul.f32 %v5922_v2, %v5906_v32 }
 0x150   :  { %4410 = vrsqrt.f32 %v5938_v53  ;;  %vm1106_vm12 = vweird.f32 %v5938_v53 }
 0x156   :  { %v5956_v28 = vpop.eup %4410 }
 0x157   :  { %v1101_v39 = vmul.f32 %v5956_v28, %v5938_v53  ;;  %vm1107_vm8 = vweird.f32 %v5956_v28 }
 0x159   :  { %v1102_v54 = vmul.f32 %v5956_v28, %v1101_v39 }
 0x15b   :  { %v1103_v23 = vmul.f32 0.5, %v1102_v54  ;;  %v1084_v54 = vsub.f32 1.5, %v1083_v41 }
 0x165   :  { %v5912_v26 = vpop.xlane.xlu0 %1007 }
 0x166   :  { %v5928_v17 = vmul.f32 %v5912_v26, %v5912_v26 }
 0x168   :  { %v5942_v15 = vadd.f32 1e-09, %v5928_v17  ;;  %v1034_v60 = vadd.f32 1.0, %v5928_v17 }
 0x16a   :  { %4412 = vrsqrt.f32 %v5942_v15  ;;  %vm1126_vm7 = vweird.f32 %v5942_v15 }
 0x16b   :  { %4414 = vrcp.f32 %v1033_v57  ;;  %v1114_v57 = vsub.f32 1.5, %v1113_v34 }
 0x16c   :  { %4416 = vrcp.f32 %v1029_v12  ;;  %v1074_v12 = vsub.f32 1.5, %v1073_v20 }
 0x16d   :  { %4418 = vrcp.f32 %v1028_v31  ;;  %v1064_v31 = vsub.f32 1.5, %v1063_v48  ;;  %v1115_v41 = vmul.f32 %v5948_v38, %v1114_v57 }
 0x16e   :  { %4420 = vrcp.f32 %v1030_v52  ;;  %v1075_v34 = vmul.f32 %v5950_v0, %v1074_v12 }
 0x16f   :  { %4422 = vrcp.f32 %v1032_v21  ;;  %v1065_v40 = vmul.f32 %v5952_v55, %v1064_v31 }
 0x170   :  { %v5958_v1 = vpop.eup %4412  ;;  %4424 = vrcp.f32 %v1034_v60  ;;  %v1079_v31 = vsel %vm6018_vm0, %v5950_v0, %v1075_v34  ;;  %vm6059_vm0 = vmor %vm1106_vm12, %vm1107_vm8 }
 0x171   :  { %v1121_v27 = vmul.f32 %v5958_v1, %v5942_v15  ;;  %v4415_v58 = vpop.eup %4414  ;;  %vm1127_vm10 = vweird.f32 %v5958_v1 }
 0x172   :  { %vm1128_vm13 = vmor %vm1126_vm7, %vm1127_vm10  ;;  %vm9047_vm10 = vcmask 64512  }
 0x173   :  { %v1122_v10 = vmul.f32 %v5958_v1, %v1121_v27  ;;  %v1025_v27 = vmul.f32 %v1017_v36, %v1005_v33  ;;  %v1020_v33 = vmul.f32 %v5910_v62, %v5900_v47  ;;  %v1104_v36 = vsub.f32 1.5, %v1103_v23  ;;  %vm9058_vm7 = vmmov %vm9047_vm10 }
 0x174   :  { %v1085_v62 = vmul.f32 %v5954_v18, %v1084_v54 }
 0x175   :  { %v1123_v6 = vmul.f32 0.5, %v1122_v10  ;;  %v4417_v10 = vpop.eup %4416  ;;  %v1049_v61 = vmul.f32 %v4415_v58, %v1025_v27  ;;  %v1105_v4 = vmul.f32 %v5956_v28, %v1104_v36 }
 0x176   :  { %v4419_v20 = vpop.eup %4418  ;;  %v1045_v21 = vmul.f32 %v4417_v10, %v1021_v22  ;;  %v1119_v22 = vsel %vm6007_vm14, %v5948_v38, %v1115_v41  ;;  %v1069_v38 = vsel %vm6027_vm9, %v5952_v55, %v1065_v40  ;;  %v1089_v0 = vsel %vm6044_vm11, %v5954_v18, %v1085_v62 }
 0x177   :  { %v1124_v52 = vsub.f32 1.5, %v1123_v6  ;;  %v4421_v48 = vpop.eup %4420  ;;  %v1044_v6 = vmul.f32 %v4419_v20, %v1020_v33  ;;  %v1109_v53 = vsel %vm6059_vm0, %v5956_v28, %v1105_v4  ;;  %v1026_v55 = vmul.f32 %v5928_v17, %v5912_v26  ;;  %v9014_v4 = vld [vmem:[#allocation14_spill] sm:$0xff] }
 0x178   :  { %v4423_v27 = vpop.eup %4422  ;;  %v1141_v2 = vmul.f32 %v1079_v31, %v1045_v21  ;;  %v1046_v18 = vmul.f32 %v4421_v48, %v1022_v37  ;;  %v6073_v10 = vmul.f32 %v1119_v22, %v1049_v61  ;;  %v9022_v22 = vld [vmem:[#allocation18_spill] sm:$0xff]  ;;  %v9024_v37 = vld [vmem:[#allocation19_spill] sm:$0xff]  ;;  %vm9040_vm9 = vcmask 1047559  }
 0x179   :  { %v1125_v14 = vmul.f32 %v5958_v1, %v1124_v52  ;;  %v4425_v12 = vpop.eup %4424  ;;  %v1048_v58 = vmul.f32 %v4423_v27, %v1024_v7  ;;  %v6075_v52 = vmul.f32 %v1069_v38, %v1044_v6  ;;  %v9016_v27 = vld [vmem:[#allocation15_spill] sm:$0xff]  ;;  %v9032_v38 = vld [vmem:[#allocation22_spill] sm:$0xff]  ;;  %vm9057_vm0 = vmmov %vm9040_vm9 }
 0x17a   :  { %v1050_v36 = vmul.f32 %v4425_v12, %v1026_v55  ;;  %v6077_v28 = vmul.f32 %v1089_v0, %v1046_v18  ;;  %v1163_v34 = vrot.slane %v1141_v2, 1  ;;  %v1164_v47 = vrot.slane %v1141_v2, 2  ;;  %v9028_v0 = vld [vmem:[#allocation13_spill] sm:$0xff] }
 0x17b   :  { %v1129_v33 = vsel %vm1128_vm13, %v5958_v1, %v1125_v14  ;;  %v6079_v26 = vmul.f32 %v1109_v53, %v1048_v58  ;;  %v1165_v1 = vrot.slane %v1141_v2, 3  ;;  %v1166_v40 = vrot.slane %v1141_v2, 4  ;;  %v9020_v14 = vld [vmem:[#allocation17_spill] sm:$0xff] }
 0x17c   :  { %v6081_v17 = vmul.f32 %v1129_v33, %v1050_v36  ;;  %v1167_v48 = vrot.slane %v1141_v2, 5  ;;  %v1168_v21 = vrot.slane %v1141_v2, 6  ;;  %v1169_v23 = vrot.slane %v1141_v2, 7 }
 0x17d   :  { %v6090_v6 = vmul.f32 %v1164_v47, %v9016_v27  ;;  %v6096_v12 = vmul.f32 %v1166_v40, %v9020_v14  ;;  %v6110_v7 = vmul.f32 %v1141_v2, %v9028_v0  ;;  %v1159_v47 = vrot.slane %v6075_v52, 4  ;;  %v9041_v14 = vld [vmem:[#allocation21_spill] sm:$0xff] }
 0x17e   :  { %v6099_v31 = vmul.f32 %v1167_v48, %v9022_v22  ;;  %v6102_v50 = vmul.f32 %v1168_v21, %v9024_v37  ;;  %v1161_v48 = vrot.slane %v6075_v52, 6  ;;  %v1173_v0 = vrot.slane %v6077_v28, 4 }
 0x17f   :  { %v5981_v13 = vpop.xlane.xlu2 %1010  ;;  %9017 = vst [vmem:[#allocation70_spill] sm:$0xff] %v6090_v6  ;;  %v1484_v53 = vrot.slane %v6090_v6, 6  ;;  %v1488_v33 = vrot.slane %v6096_v12, 4 }
 0x180   :  { %v5986_v39 = vmul.f32 %v5981_v13, %v5981_v13  ;;  %9021 = vst [vmem:[#allocation72_spill] sm:$0xff] %v6096_v12  ;;  %v1490_v2 = vrot.slane %v6099_v31, 3 }
 0x181   :  { %9023 = vst [vmem:[#allocation73_spill] sm:$0xff] %v6099_v31 }
 0x182   :  { %v5990_v5 = vadd.f32 1e-09, %v5986_v39  ;;  %v1035_v60 = vadd.f32 1.0, %v5986_v39  ;;  %v1027_v20 = vmul.f32 %v5986_v39, %v5981_v13  ;;  %v9018_v13 = vld [vmem:[#allocation16_spill] sm:$0xff]  ;;  %9025 = vst [vmem:[#allocation74_spill] sm:$0xff] %v6102_v50 }
 0x183   :  { %v6093_v39 = vmul.f32 %v1165_v1, %v9018_v13  ;;  %9029 = vst [vmem:[#allocation75_spill] sm:$0xff] %v6110_v7  ;;  %v9045_v13 = vld [vmem:[#allocation27_spill] sm:$0xff] }
 0x184   :  { %4426 = vrsqrt.f32 %v5990_v5  ;;  %vm1136_vm15 = vweird.f32 %v5990_v5 }
 0x185   :  { %4428 = vrcp.f32 %v1035_v60  ;;  %v6087_v60 = vmul.f32 %v1163_v34, %v9014_v4  ;;  %9019 = vst [vmem:[#allocation71_spill] sm:$0xff] %v6093_v39  ;;  %v1486_v58 = vrot.slane %v6093_v39, 5  ;;  %v1158_v34 = vrot.slane %v6075_v52, 3 }
 0x187   :  { %9015 = vst [vmem:[#allocation69_spill] sm:$0xff] %v6087_v60  ;;  %v1482_v35 = vrot.slane %v6087_v60, 7 }
 0x189   :  { %v1483_v36 = vsel %vm917_vm1, %v1482_v35, %v6110_v7 }
 0x18a   :  { %v4427_v54 = vpop.eup %4426 }
 0x18b   :  { %v1131_v32 = vmul.f32 %v4427_v54, %v5990_v5  ;;  %vm1137_vm14 = vweird.f32 %v4427_v54  ;;  %v4429_v62 = vpop.eup %4428 }
 0x18c   :  { %v1051_v5 = vmul.f32 %v4429_v62, %v1027_v20  ;;  %vm6105_vm8 = vmor %vm1136_vm15, %vm1137_vm14  ;;  %v1156_v20 = vrot.slane %v6075_v52, 1 }
 0x18d   :  { %v1132_v15 = vmul.f32 %v4427_v54, %v1131_v32  ;;  %v9030_v32 = vld [vmem:[#allocation20_spill] sm:$0xff]  ;;  %vm9066_vm14 = vmmov %vm9057_vm0 }
 0x18e   :  { %v6117_v18 = vmul.f32 %v1169_v23, %v9030_v32  ;;  %v6138_v35 = vmul.f32 %v1156_v20, %v9032_v38  ;;  %v6205_v38 = vmul.f32 %v6077_v28, %v5426_v42  ;;  %v1190_v42 = vrot.slane %v6079_v26, 7  ;;  %vm9068_vm15 = vmmov %vm9058_vm7 }
 0x18f   :  { %v1133_v41 = vmul.f32 0.5, %v1132_v15  ;;  %v1492_v15 = vrot.slane %v6102_v50, 2 }
 0x190   :  { %9031 = vst [vmem:[#allocation76_spill] sm:$0xff] %v6117_v18 }
 0x191   :  { %v1134_v61 = vsub.f32 1.5, %v1133_v41  ;;  %v1485_v41 = vsel %vm919_vm2, %v1484_v53, %v1483_v36  ;;  %9033 = vst [vmem:[#allocation77_spill] sm:$0xff] %v6138_v35 }
 0x192   :  { %v1487_v62 = vsel %vm921_vm3, %v1486_v58, %v1485_v41  ;;  %v9036_v58 = vld [vmem:[#allocation24_spill] sm:$0xff]  ;;  %9054 = vst [vmem:[#allocation89_spill] sm:$0xff] %v6205_v38 }
 0x193   :  { %v1135_v57 = vmul.f32 %v4427_v54, %v1134_v61  ;;  %v1160_v61 = vrot.slane %v6075_v52, 5  ;;  %v1489_v23 = vsel %vm923_vm4, %v1488_v33, %v1487_v62  ;;  %v6146_v41 = vmul.f32 %v1158_v34, %v9036_v58  ;;  %v9038_v62 = vld [vmem:[#allocation25_spill] sm:$0xff] }
 0x194   :  { %v1491_v53 = vsel %vm925_vm5, %v1490_v2, %v1489_v23  ;;  %v6152_v22 = vmul.f32 %v1159_v47, %v9038_v62  ;;  %v6157_v2 = vmul.f32 %v6075_v52, %v9041_v14  ;;  %v9043_v23 = vld [vmem:[#allocation26_spill] sm:$0xff]  ;;  %v6163_v34 = vmul.f32 %v1161_v48, %v9045_v13 }
 0x195   :  { %v1139_v55 = vsel %vm6105_vm8, %v4427_v54, %v1135_v57  ;;  %v1157_v54 = vrot.slane %v6075_v52, 2  ;;  %v1494_v57 = vrot.slane %v6117_v18, 1  ;;  %9037 = vst [vmem:[#allocation79_spill] sm:$0xff] %v6146_v41  ;;  %v1493_v33 = vsel %vm927_vm6, %v1492_v15, %v1491_v53  ;;  %v9048_v47 = vld [vmem:[#allocation30_spill] sm:$0xff]  ;;  %vm9082_vm8 = vmmov %vm9057_vm0 }
 0x196   :  { %v6130_v1 = vmul.f32 %v1139_v55, %v1051_v5  ;;  %v1162_v5 = vrot.slane %v6075_v52, 7  ;;  %v9034_v55 = vld [vmem:[#allocation23_spill] sm:$0xff]  ;;  %9039 = vst [vmem:[#allocation80_spill] sm:$0xff] %v6152_v22  ;;  %v1468_v15 = vrot.slane %v6138_v35, 7 }
 0x197   :  { %v6143_v36 = vmul.f32 %v1157_v54, %v9034_v55  ;;  %v1495_v20 = vsel %vm9040_vm9, %v1494_v57, %v1493_v33  ;;  %9042 = vst [vmem:[#allocation81_spill] sm:$0xff] %v6157_v2  ;;  %v6160_v54 = vmul.f32 %v1160_v61, %v9043_v23  ;;  %v1472_v61 = vrot.slane %v6146_v41, 5  ;;  %vm9085_vm9 = vmmov %vm9058_vm7 }
 0x198   :  { %9046 = vst [vmem:[#allocation83_spill] sm:$0xff] %v6163_v34  ;;  %v1591_v4 = vsel %vm9047_vm10, %v1495_v20, -inf  ;;  %v6169_v57 = vmul.f32 %v1162_v5, %v9048_v47  ;;  %v1469_v48 = vsel %vm917_vm1, %v1468_v15, %v6157_v2  ;;  %v1171_v5 = vrot.slane %v6077_v28, 2  ;;  %vm9098_vm10 = vmmov %vm9057_vm0 }
 0x199   :  { %v999_v40 = vpop.xlane.xlu1 %998  ;;  %9035 = vst [vmem:[#allocation78_spill] sm:$0xff] %v6143_v36  ;;  %1592 = vmax.xlane.f32.xlu1 %v1591_v4  ;;  %v1470_v52 = vrot.slane %v6143_v36, 6  ;;  %v1170_v4 = vrot.slane %v6077_v28, 1  ;;  %v1172_v33 = vrot.slane %v6077_v28, 3  ;;  %v1174_v15 = vrot.slane %v6077_v28, 5 }
 0x19a   :  { %v1015_v21 = vmul.f32 %v999_v40, %v999_v40  ;;  %9044 = vst [vmem:[#allocation82_spill] sm:$0xff] %v6160_v54  ;;  %v1175_v47 = vrot.slane %v6077_v28, 6  ;;  %v1480_v23 = vrot.slane %v6169_v57, 1  ;;  %v6200_v55 = vmul.f32 %v1173_v0, %v5438_v11 }
 0x19b   :  { %9049 = vst [vmem:[#allocation84_spill] sm:$0xff] %v6169_v57  ;;  %v1471_v53 = vsel %vm919_vm2, %v1470_v52, %v1469_v48  ;;  %v1176_v52 = vrot.slane %v6077_v28, 7  ;;  %v6190_v48 = vmul.f32 %v1170_v4, %v5428_v25  ;;  %v6208_v4 = vmul.f32 %v1174_v15, %v5447_v59 }
 0x19c   :  { %v1031_v32 = vadd.f32 1.0, %v1015_v21  ;;  %v6148_v37 = vadd.f32 1e-09, %v1015_v21  ;;  %v1023_v27 = vmul.f32 %v1015_v21, %v999_v40  ;;  %v1474_v40 = vrot.slane %v6152_v22, 4  ;;  %9053 = vst [vmem:[#allocation88_spill] sm:$0xff] %v6200_v55 }
 0x19d   :  { %v1478_v21 = vrot.slane %v6163_v34, 2  ;;  %v1473_v20 = vsel %vm921_vm3, %v1472_v61, %v1471_v53  ;;  %9050 = vst [vmem:[#allocation85_spill] sm:$0xff] %v6190_v48  ;;  %v6194_v61 = vmul.f32 %v1171_v5, %v5430_v9  ;;  %v6197_v53 = vmul.f32 %v1172_v33, %v5434_v29 }
 0x19e   :  { %4430 = vrcp.f32 %v1031_v32  ;;  %v1476_v32 = vrot.slane %v6160_v54, 3  ;;  %v1475_v13 = vsel %vm923_vm4, %v1474_v40, %v1473_v20  ;;  %9055 = vst [vmem:[#allocation90_spill] sm:$0xff] %v6208_v4  ;;  %vm1096_vm11 = vweird.f32 %v6148_v37 }
 0x19f   :  { %4432 = vrsqrt.f32 %v6148_v37  ;;  %9051 = vst [vmem:[#allocation86_spill] sm:$0xff] %v6194_v61  ;;  %v1496_v28 = vrot.slane %v6190_v48, 7  ;;  %v1498_v33 = vrot.slane %v6194_v61, 6  ;;  %v1188_v29 = vrot.slane %v6079_v26, 5 }
 0x1a0   :  { %v1477_v58 = vsel %vm925_vm5, %v1476_v32, %v1475_v13  ;;  %9052 = vst [vmem:[#allocation87_spill] sm:$0xff] %v6197_v53  ;;  %v6211_v13 = vmul.f32 %v1175_v47, %v5464_v49  ;;  %v1504_v47 = vrot.slane %v6208_v4, 3  ;;  %v9126_v4 = vld [vmem:[#allocation49_spill] sm:$0xff] }
 0x1a1   :  { %v1479_v20 = vsel %vm927_vm6, %v1478_v21, %v1477_v58  ;;  %v6218_v21 = vmul.f32 %v1176_v52, %v5477_v51  ;;  %v1184_v52 = vrot.slane %v6079_v26, 1 }
 0x1a2   :  { %9056 = vst [vmem:[#allocation91_spill] sm:$0xff] %v6211_v13  ;;  %v1481_v0 = vsel %vm9057_vm0, %v1480_v23, %v1479_v20  ;;  %v1497_v23 = vsel %vm917_vm1, %v1496_v28, %v6205_v38  ;;  %v1506_v20 = vrot.slane %v6211_v13, 2  ;;  %v1189_v28 = vrot.slane %v6079_v26, 6  ;;  %v9112_v13 = vld [vmem:[#allocation66_spill] sm:$0xff] }
 0x1a3   :  { %v1588_v58 = vsel %vm9058_vm7, %v1481_v0, -inf  ;;  %9059 = vst [vmem:[#allocation92_spill] sm:$0xff] %v6218_v21  ;;  %v1185_v0 = vrot.slane %v6079_v26, 2  ;;  %v1499_v49 = vsel %vm919_vm2, %v1498_v33, %v1497_v23  ;;  %v1508_v11 = vrot.slane %v6218_v21, 1 }
 0x1a4   :  { %v4431_v62 = vpop.eup %4430  ;;  %1589 = vmax.xlane.f32.xlu0 %v1588_v58  ;;  %v1187_v58 = vrot.slane %v6079_v26, 4 }
 0x1a5   :  { %v4433_v40 = vpop.eup %4432  ;;  %v1047_v32 = vmul.f32 %v4431_v62, %v1023_v27  ;;  %v1500_v27 = vrot.slane %v6197_v53, 5  ;;  %v1502_v62 = vrot.slane %v6200_v55, 4  ;;  %v6244_v23 = vmul.f32 %v1185_v0, %v5518_v16  ;;  %v9078_v16 = vld [vmem:[#allocation10_spill] sm:$0xff] }
 0x1a6   :  { %v1091_v5 = vmul.f32 %v4433_v40, %v6148_v37  ;;  %vm1097_vm12 = vweird.f32 %v4433_v40  ;;  %v6271_v0 = vmul.f32 %v1190_v42, %v5575_v44  ;;  %v1192_v42 = vrot.slane %v6073_v10, 2  ;;  %v9070_v44 = vld [vmem:[#allocation6_spill] sm:$0xff] }
 0x1a7   :  { %v1501_v59 = vsel %vm921_vm3, %v1500_v27, %v1499_v49  ;;  %9061 = vst [vmem:[#allocation94_spill] sm:$0xff] %v6244_v23  ;;  %v6250_v27 = vmul.f32 %v1187_v58, %v5526_v19  ;;  %vm1098_vm13 = vmor %vm1096_vm11, %vm1097_vm12 }
 0x1a8   :  { %v1092_v15 = vmul.f32 %v4433_v40, %v1091_v5  ;;  %v1186_v5 = vrot.slane %v6079_v26, 3  ;;  %v1503_v25 = vsel %vm923_vm4, %v1502_v62, %v1501_v59  ;;  %v6254_v59 = vmul.f32 %v1188_v29, %v5540_v45  ;;  %9069 = vst [vmem:[#allocation100_spill] sm:$0xff] %v6271_v0  ;;  %v9074_v45 = vld [vmem:[#allocation8_spill] sm:$0xff]  ;;  %vm9101_vm11 = vmmov %vm9058_vm7 }
 0x1a9   :  { %v1505_v33 = vsel %vm925_vm5, %v1504_v47, %v1503_v25  ;;  %9063 = vst [vmem:[#allocation96_spill] sm:$0xff] %v6250_v27  ;;  %v6257_v62 = vmul.f32 %v1189_v28, %v5562_v3  ;;  %v6265_v47 = vmul.f32 %v6079_v26, %v5514_v43  ;;  %v1530_v26 = vrot.slane %v6250_v27, 4  ;;  %v9080_v43 = vld [vmem:[#allocation11_spill] sm:$0xff]  ;;  %vm9114_vm12 = vmmov %vm9057_vm0 }
 0x1aa   :  { %v1093_v51 = vmul.f32 0.5, %v1092_v15  ;;  %v6240_v15 = vmul.f32 %v1184_v52, %v5516_v63  ;;  %v6247_v49 = vmul.f32 %v1186_v5, %v5522_v24  ;;  %9064 = vst [vmem:[#allocation97_spill] sm:$0xff] %v6254_v59  ;;  %v1532_v58 = vrot.slane %v6254_v59, 3  ;;  %vm9117_vm0 = vmmov %vm9058_vm7 }
 0x1ab   :  { %9065 = vst [vmem:[#allocation98_spill] sm:$0xff] %v6257_v62  ;;  %vm9132_vm7 = vmmov %vm9082_vm8 }
 0x1ac   :  { %v1094_v9 = vsub.f32 1.5, %v1093_v51  ;;  %9060 = vst [vmem:[#allocation93_spill] sm:$0xff] %v6240_v15  ;;  %v1507_v51 = vsel %vm927_vm6, %v1506_v20, %v1505_v33  ;;  %v1526_v20 = vrot.slane %v6244_v23, 6  ;;  %v1528_v5 = vrot.slane %v6247_v49, 5 }
 0x1ad   :  { %9062 = vst [vmem:[#allocation95_spill] sm:$0xff] %v6247_v49  ;;  %v1509_v25 = vsel %vm9066_vm14, %v1508_v11, %v1507_v51  ;;  %v1194_v51 = vrot.slane %v6073_v10, 4  ;;  %vm9138_vm14 = vmmov %vm9132_vm7 }
 0x1ae   :  { %v1095_v14 = vmul.f32 %v4433_v40, %v1094_v9  ;;  %9067 = vst [vmem:[#allocation99_spill] sm:$0xff] %v6265_v47  ;;  %v1524_v9 = vrot.slane %v6240_v15, 7  ;;  %v1594_v29 = vsel %vm9068_vm15, %v1509_v25, -inf  ;;  %v1195_v25 = vrot.slane %v6073_v10, 5  ;;  %vm9139_vm15 = vmmov %vm9117_vm0 }
 0x1af   :  { %1595 = vmax.xlane.f32.xlu1 %v1594_v29  ;;  %v1197_v29 = vrot.slane %v6073_v10, 7 }
 0x1b0   :  { %v1099_v52 = vsel %vm1098_vm13, %v4433_v40, %v1095_v14  ;;  %v1525_v11 = vsel %vm917_vm1, %v1524_v9, %v6265_v47  ;;  %v1534_v14 = vrot.slane %v6257_v62, 2  ;;  %v1191_v40 = vrot.slane %v6073_v10, 1  ;;  %vm9135_vm13 = vmmov %vm9117_vm0 }
 0x1b1   :  { %v6274_v37 = vmul.f32 %v1099_v52, %v1047_v32  ;;  %v1527_v28 = vsel %vm919_vm2, %v1526_v20, %v1525_v11  ;;  %v1193_v32 = vrot.slane %v6073_v10, 3  ;;  %v1536_v52 = vrot.slane %v6271_v0, 1 }
 0x1b2   :  { %v1529_v33 = vsel %vm921_vm3, %v1528_v5, %v1527_v28  ;;  %v1196_v20 = vrot.slane %v6073_v10, 6  ;;  %v6294_v3 = vmul.f32 %v1191_v40, %v9070_v44  ;;  %v9072_v5 = vld [vmem:[#allocation7_spill] sm:$0xff]  ;;  %v6307_v63 = vmul.f32 %v1195_v25, %v9078_v16  ;;  %v9083_v40 = vld [vmem:[#allocation5_spill] sm:$0xff] }
 0x1b3   :  { %v1531_v9 = vsel %vm923_vm4, %v1530_v26, %v1529_v33  ;;  %v6297_v28 = vmul.f32 %v1192_v42, %v9072_v5  ;;  %v6300_v19 = vmul.f32 %v1193_v32, %v9074_v45  ;;  %v9076_v26 = vld [vmem:[#allocation9_spill] sm:$0xff]  ;;  %v6315_v42 = vmul.f32 %v6073_v10, %v9083_v40 }
 0x1b4   :  { %v1533_v11 = vsel %vm925_vm5, %v1532_v58, %v1531_v9  ;;  %9071 = vst [vmem:[#allocation101_spill] sm:$0xff] %v6294_v3  ;;  %v6304_v33 = vmul.f32 %v1194_v51, %v9076_v26  ;;  %v6310_v21 = vmul.f32 %v1196_v20, %v9080_v43  ;;  %v1538_v32 = vrot.slane %v6294_v3, 7  ;;  %v9086_v51 = vld [vmem:[#allocation12_spill] sm:$0xff] }
 0x1b5   :  { %9073 = vst [vmem:[#allocation102_spill] sm:$0xff] %v6297_v28  ;;  %v1535_v24 = vsel %vm927_vm6, %v1534_v14, %v1533_v11  ;;  %v1540_v9 = vrot.slane %v6297_v28, 6  ;;  %v6321_v11 = vmul.f32 %v1197_v29, %v9086_v51  ;;  %v1542_v25 = vrot.slane %v6300_v19, 5 }
 0x1b6   :  { %9075 = vst [vmem:[#allocation103_spill] sm:$0xff] %v6300_v19  ;;  %v1537_v58 = vsel %vm9082_vm8, %v1536_v52, %v1535_v24  ;;  %v1544_v20 = vrot.slane %v6304_v33, 4  ;;  %v1539_v24 = vsel %vm917_vm1, %v1538_v32, %v6315_v42  ;;  %v1546_v10 = vrot.slane %v6307_v63, 3  ;;  %vm9149_vm8 = vmmov %vm9132_vm7 }
 0x1b7   :  { %9077 = vst [vmem:[#allocation104_spill] sm:$0xff] %v6304_v33  ;;  %v1600_v14 = vsel %vm9085_vm9, %v1537_v58, -inf  ;;  %v1548_v52 = vrot.slane %v6310_v21, 2  ;;  %v1205_v43 = vrot.slane %v6130_v1, 1  ;;  %v1541_v16 = vsel %vm919_vm2, %v1540_v9, %v1539_v24  ;;  %vm9150_vm9 = vmmov %vm9117_vm0 }
 0x1b8   :  { %9079 = vst [vmem:[#allocation105_spill] sm:$0xff] %v6307_v63  ;;  %1601 = vmax.xlane.f32.xlu2 %v1600_v14  ;;  %v1206_v58 = vrot.slane %v6130_v1, 2  ;;  %v1207_v29 = vrot.slane %v6130_v1, 3  ;;  %v1208_v51 = vrot.slane %v6130_v1, 4  ;;  %v1543_v26 = vsel %vm921_vm3, %v1542_v25, %v1541_v16 }
 0x1b9   :  { %9081 = vst [vmem:[#allocation106_spill] sm:$0xff] %v6310_v21  ;;  %v1209_v14 = vrot.slane %v6130_v1, 5  ;;  %v1210_v32 = vrot.slane %v6130_v1, 6  ;;  %v1211_v45 = vrot.slane %v6130_v1, 7  ;;  %v1545_v5 = vsel %vm923_vm4, %v1544_v20, %v1543_v26  ;;  %v9092_v21 = vld [vmem:[#allocation58_spill] sm:$0xff]  ;;  %v9094_v20 = vld [vmem:[#allocation53_spill] sm:$0xff] }
 0x1ba   :  { %9084 = vst [vmem:[#allocation107_spill] sm:$0xff] %v6315_v42  ;;  %v1550_v44 = vrot.slane %v6321_v11, 1  ;;  %v6341_v9 = vmul.f32 %v1205_v43, %v5782_v30  ;;  %v6344_v24 = vmul.f32 %v1206_v58, %v5784_v46  ;;  %v1547_v40 = vsel %vm925_vm5, %v1546_v10, %v1545_v5  ;;  %v9096_v30 = vld [vmem:[#allocation59_spill] sm:$0xff]  ;;  %v9102_v46 = vld [vmem:[#allocation62_spill] sm:$0xff] }
 0x1bb   :  { %9087 = vst [vmem:[#allocation108_spill] sm:$0xff] %v6321_v11  ;;  %v6348_v16 = vmul.f32 %v1207_v29, %v5788_v8  ;;  %v6351_v25 = vmul.f32 %v1208_v51, %v5792_v56  ;;  %v6354_v63 = vmul.f32 %v1209_v14, %v9092_v21  ;;  %v1549_v26 = vsel %vm927_vm6, %v1548_v52, %v1547_v40  ;;  %v9099_v29 = vld [vmem:[#allocation60_spill] sm:$0xff] }
 0x1bc   :  { %9088 = vst [vmem:[#allocation109_spill] sm:$0xff] %v6341_v9  ;;  %v6359_v43 = vmul.f32 %v6130_v1, %v9094_v20  ;;  %v6362_v58 = vmul.f32 %v1210_v32, %v9096_v30  ;;  %v1566_v5 = vrot.slane %v6341_v9, 7  ;;  %v1551_v10 = vsel %vm9098_vm10, %v1550_v44, %v1549_v26  ;;  %vm9163_vm10 = vmmov %vm9132_vm7 }
 0x1bd   :  { %9089 = vst [vmem:[#allocation110_spill] sm:$0xff] %v6344_v24  ;;  %v6367_v8 = vmul.f32 %v1211_v45, %v9099_v29  ;;  %v1568_v51 = vrot.slane %v6344_v24, 6  ;;  %v1570_v14 = vrot.slane %v6348_v16, 5  ;;  %v1603_v40 = vsel %vm9101_vm11, %v1551_v10, -inf  ;;  %vm9164_vm11 = vmmov %vm9117_vm0 }
 0x1be   :  { %9090 = vst [vmem:[#allocation111_spill] sm:$0xff] %v6348_v16  ;;  %v1567_v1 = vsel %vm917_vm1, %v1566_v5, %v6359_v43  ;;  %v1572_v52 = vrot.slane %v6351_v25, 4  ;;  %v1574_v32 = vrot.slane %v6354_v63, 3  ;;  %1604 = vmax.xlane.f32.xlu0 %v1603_v40  ;;  %v1576_v44 = vrot.slane %v6362_v58, 2 }
 0x1bf   :  { %9091 = vst [vmem:[#allocation112_spill] sm:$0xff] %v6351_v25  ;;  %v1569_v30 = vsel %vm919_vm2, %v1568_v51, %v1567_v1  ;;  %v1177_v45 = vrot.slane %v6274_v37, 1  ;;  %v1178_v26 = vrot.slane %v6274_v37, 2  ;;  %v1179_v10 = vrot.slane %v6274_v37, 3 }
 0x1c0   :  { %9093 = vst [vmem:[#allocation113_spill] sm:$0xff] %v6354_v63  ;;  %v1571_v29 = vsel %vm921_vm3, %v1570_v14, %v1569_v30  ;;  %v1180_v21 = vrot.slane %v6274_v37, 4  ;;  %v1181_v5 = vrot.slane %v6274_v37, 5  ;;  %v1578_v40 = vrot.slane %v6367_v8, 1  ;;  %v9104_v30 = vld [vmem:[#allocation63_spill] sm:$0xff]  ;;  %v9106_v63 = vld [vmem:[#allocation64_spill] sm:$0xff] }
 0x1c1   :  { %9095 = vst [vmem:[#allocation114_spill] sm:$0xff] %v6359_v43  ;;  %v1573_v20 = vsel %vm923_vm4, %v1572_v52, %v1571_v29  ;;  %v1182_v51 = vrot.slane %v6274_v37, 6  ;;  %v1183_v1 = vrot.slane %v6274_v37, 7  ;;  %v6393_v14 = vmul.f32 %v1178_v26, %v9104_v30  ;;  %v9108_v29 = vld [vmem:[#allocation61_spill] sm:$0xff] }
 0x1c2   :  { %9097 = vst [vmem:[#allocation115_spill] sm:$0xff] %v6362_v58  ;;  %v1575_v56 = vsel %vm925_vm5, %v1574_v32, %v1573_v20  ;;  %v6390_v58 = vmul.f32 %v1177_v45, %v9102_v46  ;;  %v6396_v25 = vmul.f32 %v1179_v10, %v9106_v63  ;;  %v6401_v52 = vmul.f32 %v6274_v37, %v9108_v29  ;;  %v9115_v45 = vld [vmem:[#allocation67_spill] sm:$0xff]  ;;  %v9120_v46 = vld [vmem:[#allocation29_spill] sm:$0xff] }
 0x1c3   :  { %9100 = vst [vmem:[#allocation116_spill] sm:$0xff] %v6367_v8  ;;  %v1577_v11 = vsel %vm927_vm6, %v1576_v44, %v1575_v56  ;;  %v9110_v8 = vld [vmem:[#allocation65_spill] sm:$0xff]  ;;  %v6407_v20 = vmul.f32 %v1181_v5, %v9112_v13  ;;  %v6411_v26 = vmul.f32 %v1182_v51, %v9115_v45  ;;  %v1512_v63 = vrot.slane %v6393_v14, 6  ;;  %v9118_v44 = vld [vmem:[#allocation68_spill] sm:$0xff] }
 0x1c4   :  { %9103 = vst [vmem:[#allocation117_spill] sm:$0xff] %v6390_v58  ;;  %v6404_v33 = vmul.f32 %v1180_v21, %v9110_v8  ;;  %v1579_v32 = vsel %vm9114_vm12, %v1578_v40, %v1577_v11  ;;  %v1510_v10 = vrot.slane %v6390_v58, 7  ;;  %v6417_v37 = vmul.f32 %v1183_v1, %v9118_v44  ;;  %vm9177_vm12 = vmmov %vm9132_vm7 }
 0x1c5   :  { %9105 = vst [vmem:[#allocation118_spill] sm:$0xff] %v6393_v14  ;;  %v1609_v56 = vsel %vm9117_vm0, %v1579_v32, -inf  ;;  %v1514_v21 = vrot.slane %v6396_v25, 5  ;;  %v1518_v40 = vrot.slane %v6407_v20, 3  ;;  %v1198_v51 = vrot.slane %v6081_v17, 1 }
 0x1c6   :  { %9107 = vst [vmem:[#allocation119_spill] sm:$0xff] %v6396_v25  ;;  %1610 = vmax.xlane.f32.xlu1 %v1609_v56  ;;  %v1511_v5 = vsel %vm917_vm1, %v1510_v10, %v6401_v52  ;;  %v1516_v11 = vrot.slane %v6404_v33, 4  ;;  %v1199_v45 = vrot.slane %v6081_v17, 2  ;;  %v1200_v32 = vrot.slane %v6081_v17, 3 }
 0x1c7   :  { %9109 = vst [vmem:[#allocation120_spill] sm:$0xff] %v6401_v52  ;;  %v1513_v29 = vsel %vm919_vm2, %v1512_v63, %v1511_v5  ;;  %v1201_v1 = vrot.slane %v6081_v17, 4  ;;  %v1520_v56 = vrot.slane %v6411_v26, 2  ;;  %v1202_v10 = vrot.slane %v6081_v17, 5  ;;  %v9122_v5 = vld [vmem:[#allocation47_spill] sm:$0xff] }
 0x1c8   :  { %9111 = vst [vmem:[#allocation121_spill] sm:$0xff] %v6404_v33  ;;  %v1515_v44 = vsel %vm921_vm3, %v1514_v21, %v1513_v29  ;;  %v1203_v13 = vrot.slane %v6081_v17, 6  ;;  %v1204_v30 = vrot.slane %v6081_v17, 7  ;;  %v6436_v63 = vmul.f32 %v1198_v51, %v9120_v46  ;;  %v9124_v21 = vld [vmem:[#allocation48_spill] sm:$0xff]  ;;  %v9130_v51 = vld [vmem:[#allocation50_spill] sm:$0xff] }
 0x1c9   :  { %9113 = vst [vmem:[#allocation122_spill] sm:$0xff] %v6407_v20  ;;  %v1517_v8 = vsel %vm923_vm4, %v1516_v11, %v1515_v44  ;;  %v6439_v20 = vmul.f32 %v1199_v45, %v9122_v5  ;;  %v1522_v29 = vrot.slane %v6417_v37, 1  ;;  %v6447_v55 = vmul.f32 %v1201_v1, %v9126_v4  ;;  %v9128_v11 = vld [vmem:[#allocation28_spill] sm:$0xff] }
 0x1ca   :  { %9116 = vst [vmem:[#allocation123_spill] sm:$0xff] %v6411_v26  ;;  %v1519_v33 = vsel %vm925_vm5, %v1518_v40, %v1517_v8  ;;  %v6444_v26 = vmul.f32 %v1200_v32, %v9124_v21  ;;  %v6452_v25 = vmul.f32 %v6081_v17, %v9128_v11  ;;  %v6455_v46 = vmul.f32 %v1202_v10, %v9130_v51  ;;  %v9133_v40 = vld [vmem:[#allocation51_spill] sm:$0xff]  ;;  %v9136_v4 = vld [vmem:[#allocation52_spill] sm:$0xff] }
 0x1cb   :  { %9119 = vst [vmem:[#allocation124_spill] sm:$0xff] %v6417_v37  ;;  %v1521_v44 = vsel %vm927_vm6, %v1520_v56, %v1519_v33  ;;  %v1552_v45 = vrot.slane %v6436_v63, 7  ;;  %v6460_v5 = vmul.f32 %v1203_v13, %v9133_v40  ;;  %v1554_v32 = vrot.slane %v6439_v20, 6 }
 0x1cc   :  { %9121 = vst [vmem:[#allocation125_spill] sm:$0xff] %v6436_v63  ;;  %v1523_v8 = vsel %vm9132_vm7, %v1522_v29, %v1521_v44  ;;  %v6465_v33 = vmul.f32 %v1204_v30, %v9136_v4  ;;  %v1556_v56 = vrot.slane %v6444_v26, 5  ;;  %v1558_v29 = vrot.slane %v6447_v55, 4 }
 0x1cd   :  { %9123 = vst [vmem:[#allocation126_spill] sm:$0xff] %v6439_v20  ;;  %v1597_v1 = vsel %vm9135_vm13, %v1523_v8, -inf  ;;  %v1553_v17 = vsel %vm917_vm1, %v1552_v45, %v6452_v25  ;;  %v1560_v44 = vrot.slane %v6455_v46, 3  ;;  %v1562_v8 = vrot.slane %v6460_v5, 2  ;;  %vm9178_vm13 = vmmov %vm9117_vm0 }
 0x1ce   :  { %9125 = vst [vmem:[#allocation127_spill] sm:$0xff] %v6444_v26  ;;  %1598 = vmax.xlane.f32.xlu0 %v1597_v1  ;;  %v1555_v10 = vsel %vm919_vm2, %v1554_v32, %v1553_v17  ;;  %v1564_v4 = vrot.slane %v6465_v33, 1 }
 0x1cf   :  { %9127 = vst [vmem:[#allocation128_spill] sm:$0xff] %v6447_v55  ;;  %v1557_v13 = vsel %vm921_vm3, %v1556_v56, %v1555_v10 }
 0x1d0   :  { %9129 = vst [vmem:[#allocation129_spill] sm:$0xff] %v6452_v25  ;;  %v1559_v40 = vsel %vm923_vm4, %v1558_v29, %v1557_v13 }
 0x1d1   :  { %9131 = vst [vmem:[#allocation130_spill] sm:$0xff] %v6455_v46  ;;  %v1561_v30 = vsel %vm925_vm5, %v1560_v44, %v1559_v40 }
 0x1d2   :  { %9134 = vst [vmem:[#allocation131_spill] sm:$0xff] %v6460_v5  ;;  %v1563_v45 = vsel %vm927_vm6, %v1562_v8, %v1561_v30 }
 0x1d3   :  { %9137 = vst [vmem:[#allocation132_spill] sm:$0xff] %v6465_v33  ;;  %v1565_v1 = vsel %vm9138_vm14, %v1564_v4, %v1563_v45  ;;  %vm9185_vm14 = vmmov %vm9132_vm7 }
 0x1d4   :  { %v1606_v32 = vsel %vm9139_vm15, %v1565_v1, -inf  ;;  %vm9187_vm15 = vmmov %vm9117_vm0 }
 0x1d5   :  { %1607 = vmax.xlane.f32.xlu2 %v1606_v32 }
 0x20c   :  { %v1593_v17 = vpop.xlane.xlu1 %1592 }
 0x20d   :  { %v1627_v51 = vrot.slane %v1593_v17, 1  ;;  %v1628_v56 = vrot.slane %v1593_v17, 2  ;;  %v1748_v10 = vsub.f32 %v6110_v7, %v1593_v17  ;;  %v1629_v21 = vrot.slane %v1593_v17, 3 }
 0x20e   :  { %v1630_v37 = vrot.slane %v1593_v17, 4 }
 0x20f   :  { %v1749_v29 = vsub.f32 %v6087_v60, %v1627_v51  ;;  %v1750_v13 = vsub.f32 %v6090_v6, %v1628_v56  ;;  %v1820_v44 = vmul.f32 1.442695, %v1748_v10  ;;  %v1751_v56 = vsub.f32 %v6093_v39, %v1629_v21 }
 0x211   :  { %v1822_v45 = vmul.f32 1.442695, %v1749_v29  ;;  %v1824_v32 = vmul.f32 1.442695, %v1750_v13  ;;  %4434 = vpow2.f32 %v1820_v44  ;;  %v1631_v29 = vrot.slane %v1593_v17, 5 }
 0x212   :  { %v1826_v33 = vmul.f32 1.442695, %v1751_v56 }
 0x213   :  { %4436 = vpow2.f32 %v1822_v45 }
 0x214   :  { %4438 = vpow2.f32 %v1824_v32  ;;  %v1632_v32 = vrot.slane %v1593_v17, 6 }
 0x217   :  { %v6484_v40 = vpop.xlane.xlu0 %1589  ;;  %v6504_v45 = vpop.eup %4434 }
 0x218   :  { %v1620_v8 = vrot.slane %v6484_v40, 1  ;;  %v1621_v4 = vrot.slane %v6484_v40, 2  ;;  %v1622_v30 = vrot.slane %v6484_v40, 3  ;;  %v1740_v1 = vsub.f32 %v6157_v2, %v6484_v40 }
 0x219   :  { %v1623_v13 = vrot.slane %v6484_v40, 4  ;;  %v1625_v39 = vrot.slane %v6484_v40, 6 }
 0x21a   :  { %v1741_v7 = vsub.f32 %v6138_v35, %v1620_v8  ;;  %v1742_v51 = vsub.f32 %v6143_v36, %v1621_v4  ;;  %v1804_v6 = vmul.f32 1.442695, %v1740_v1  ;;  %v1743_v10 = vsub.f32 %v6146_v41, %v1622_v30 }
 0x21b   :  { %v1624_v8 = vrot.slane %v6484_v40, 5  ;;  %v1753_v35 = vsub.f32 %v6099_v31, %v1631_v29 }
 0x21c   :  { %v1806_v60 = vmul.f32 1.442695, %v1741_v7  ;;  %v1808_v11 = vmul.f32 1.442695, %v1742_v51  ;;  %4440 = vpow2.f32 %v1804_v6  ;;  %v6497_v4 = vmul.f32 1.442695, %v1743_v10  ;;  %v6509_v51 = vpop.eup %4436 }
 0x21d   :  { %v6515_v41 = vpop.eup %4438  ;;  %v1752_v6 = vsub.f32 %v6096_v12, %v1630_v37 }
 0x21e   :  { %4442 = vpow2.f32 %v1806_v60  ;;  %v1633_v60 = vrot.slane %v1593_v17, 7  ;;  %9140 = vst [vmem:[#allocation133_spill] sm:$0xff] %v6515_v41 }
 0x21f   :  { %4444 = vpow2.f32 %v1808_v11 }
 0x222   :  { %v6499_v21 = vpop.xlane.xlu1 %1595  ;;  %v6520_v17 = vpop.eup %4440 }
 0x223   :  { %v1634_v44 = vrot.slane %v6499_v21, 1  ;;  %v1635_v7 = vrot.slane %v6499_v21, 2  ;;  %v1636_v30 = vrot.slane %v6499_v21, 3  ;;  %v1756_v1 = vsub.f32 %v6205_v38, %v6499_v21 }
 0x224   :  { %v1754_v38 = vsub.f32 %v6102_v50, %v1632_v32  ;;  %v1626_v50 = vrot.slane %v6484_v40, 7 }
 0x225   :  { %v1757_v56 = vsub.f32 %v6190_v48, %v1634_v44  ;;  %v1758_v11 = vsub.f32 %v6194_v61, %v1635_v7  ;;  %v1759_v10 = vsub.f32 %v6197_v53, %v1636_v30  ;;  %v1836_v36 = vmul.f32 1.442695, %v1756_v1  ;;  %v6524_v30 = vpop.eup %4442 }
 0x226   :  { %v1755_v7 = vsub.f32 %v6117_v18, %v1633_v60  ;;  %v1828_v1 = vmul.f32 1.442695, %v1752_v6  ;;  %v1830_v61 = vmul.f32 1.442695, %v1753_v35  ;;  %v6528_v37 = vpop.eup %4444  ;;  %v1832_v29 = vmul.f32 1.442695, %v1754_v38 }
 0x227   :  { %v1838_v44 = vmul.f32 1.442695, %v1757_v56  ;;  %v1840_v48 = vmul.f32 1.442695, %v1758_v11  ;;  %4446 = vpow2.f32 %v1836_v36  ;;  %v6526_v53 = vmul.f32 1.442695, %v1759_v10 }
 0x228   :  { %v1834_v32 = vmul.f32 1.442695, %v1755_v7  ;;  %v1744_v56 = vsub.f32 %v6152_v22, %v1623_v13  ;;  %v1745_v60 = vsub.f32 %v6160_v54, %v1624_v8  ;;  %v1746_v36 = vsub.f32 %v6163_v34, %v1625_v39 }
 0x229   :  { %4448 = vpow2.f32 %v1838_v44 }
 0x22a   :  { %4450 = vpow2.f32 %v1840_v48  ;;  %v1747_v48 = vsub.f32 %v6169_v57, %v1626_v50  ;;  %v6549_v2 = vmul.f32 1.442695, %v1744_v56  ;;  %v6551_v10 = vmul.f32 1.442695, %v1745_v60 }
 0x22b   :  { %v6531_v31 = vpop.xlane.xlu2 %1601  ;;  %4452 = vpow2.f32 %v1826_v33  ;;  %v1996_v56 = vrot.slane %v6524_v30, 7  ;;  %v1998_v60 = vrot.slane %v6528_v37, 6 }
 0x22c   :  { %v1648_v11 = vrot.slane %v6531_v31, 1  ;;  %v1649_v35 = vrot.slane %v6531_v31, 2  ;;  %v1650_v6 = vrot.slane %v6531_v31, 3  ;;  %v1772_v40 = vsub.f32 %v6265_v47, %v6531_v31 }
 0x22d   :  { %4454 = vpow2.f32 %v1828_v1  ;;  %v6547_v44 = vpop.eup %4446  ;;  %v2010_v1 = vrot.slane %v6509_v51, 7 }
 0x22e   :  { %v1773_v13 = vsub.f32 %v6240_v15, %v1648_v11  ;;  %v1774_v39 = vsub.f32 %v6244_v23, %v1649_v35  ;;  %v1775_v8 = vsub.f32 %v6247_v49, %v1650_v6  ;;  %9141 = vst [vmem:[#allocation134_spill] sm:$0xff] %v6547_v44  ;;  %v1868_v7 = vmul.f32 1.442695, %v1772_v40 }
 0x22f   :  { %4456 = vpow2.f32 %v1830_v61  ;;  %v6553_v38 = vpop.eup %4448  ;;  %v2012_v35 = vrot.slane %v6515_v41, 6  ;;  %v6561_v6 = vmul.f32 1.442695, %v1746_v36  ;;  %v6563_v61 = vmul.f32 1.442695, %v1747_v48 }
 0x230   :  { %9142 = vst [vmem:[#allocation135_spill] sm:$0xff] %v6553_v38  ;;  %v1870_v33 = vmul.f32 1.442695, %v1773_v13  ;;  %v1872_v47 = vmul.f32 1.442695, %v1774_v39  ;;  %4458 = vpow2.f32 %v1832_v29  ;;  %v6557_v11 = vpop.eup %4450  ;;  %v2011_v13 = vsel %vm917_vm1, %v2010_v1, %v6504_v45 }
 0x231   :  { %v6555_v50 = vmul.f32 1.442695, %v1775_v8  ;;  %9143 = vst [vmem:[#allocation136_spill] sm:$0xff] %v6557_v11  ;;  %4460 = vpow2.f32 %v1868_v7  ;;  %v6567_v40 = vpop.eup %4452  ;;  %v6569_v29 = vpop.xlane.xlu0 %1604  ;;  %v1653_v39 = vrot.slane %v6531_v31, 6  ;;  %v1654_v36 = vrot.slane %v6531_v31, 7 }
 0x232   :  { %4462 = vpow2.f32 %v1870_v33  ;;  %v1655_v48 = vrot.slane %v6569_v29, 1  ;;  %v1656_v7 = vrot.slane %v6569_v29, 2  ;;  %v1657_v33 = vrot.slane %v6569_v29, 3 }
 0x233   :  { %4464 = vpow2.f32 %v1872_v47  ;;  %v6575_v8 = vpop.eup %4454  ;;  %v1780_v1 = vsub.f32 %v6315_v42, %v6569_v29  ;;  %v2013_v15 = vsel %vm919_vm2, %v2012_v35, %v2011_v13  ;;  %v2014_v49 = vrot.slane %v6567_v40, 5 }
 0x234   :  { %4466 = vpow2.f32 %v1834_v32  ;;  %v1781_v12 = vsub.f32 %v6294_v3, %v1655_v48  ;;  %v1782_v57 = vsub.f32 %v6297_v28, %v1656_v7  ;;  %v1783_v34 = vsub.f32 %v6300_v19, %v1657_v33 }
 0x235   :  { %v6581_v47 = vpop.eup %4456  ;;  %v1884_v22 = vmul.f32 1.442695, %v1780_v1  ;;  %v2016_v23 = vrot.slane %v6575_v8, 4  ;;  %v2015_v7 = vsel %vm921_vm3, %v2014_v49, %v2013_v15  ;;  %v1997_v1 = vsel %vm917_vm1, %v1996_v56, %v6520_v17 }
 0x236   :  { %v6587_v18 = vpop.eup %4458  ;;  %v2018_v42 = vrot.slane %v6581_v47, 3  ;;  %v1886_v13 = vmul.f32 1.442695, %v1781_v12  ;;  %v1888_v41 = vmul.f32 1.442695, %v1782_v57  ;;  %v9147_v28 = vrot.slane %v6531_v31, 4 }
 0x237   :  { %9144 = vst [vmem:[#allocation137_spill] sm:$0xff] %v6587_v18  ;;  %v6593_v54 = vpop.eup %4460  ;;  %v2020_v32 = vrot.slane %v6587_v18, 2  ;;  %v6600_v48 = vmul.f32 1.442695, %v1783_v34  ;;  %4468 = vpow2.f32 %v1884_v22  ;;  %v2017_v19 = vsel %vm923_vm4, %v2016_v23, %v2015_v7 }
 0x238   :  { %v6598_v35 = vpop.eup %4462  ;;  %v1776_v3 = vsub.f32 %v6250_v27, %v9147_v28  ;;  %4470 = vpow2.f32 %v1886_v13  ;;  %v2019_v12 = vsel %vm925_vm5, %v2018_v42, %v2017_v19  ;;  %v6615_v34 = vsel %vm919_vm2, %v1998_v60, %v1997_v1 }
 0x239   :  { %9145 = vst [vmem:[#allocation138_spill] sm:$0xff] %v6598_v35  ;;  %v6603_v33 = vpop.eup %4464  ;;  %v6611_v18 = vpop.xlane.xlu1 %1610  ;;  %v9148_v57 = vrot.slane %v6531_v31, 5  ;;  %4472 = vpow2.f32 %v1888_v41  ;;  %v2021_v31 = vsel %vm927_vm6, %v2020_v32, %v2019_v12  ;;  %v1779_v19 = vsub.f32 %v6271_v0, %v1654_v36 }
 0x23a   :  { %9146 = vst [vmem:[#allocation139_spill] sm:$0xff] %v6603_v33  ;;  %v6620_v15 = vpop.eup %4466  ;;  %v1669_v23 = vrot.slane %v6611_v18, 1  ;;  %v1670_v49 = vrot.slane %v6611_v18, 2  ;;  %v1671_v28 = vrot.slane %v6611_v18, 3  ;;  %v1796_v42 = vsub.f32 %v6359_v43, %v6611_v18 }
 0x23b   :  { %v1777_v22 = vsub.f32 %v6254_v59, %v9148_v57  ;;  %v2022_v7 = vrot.slane %v6620_v15, 1  ;;  %4474 = vpow2.f32 %v6497_v4  ;;  %v1778_v57 = vsub.f32 %v6257_v62, %v1653_v39 }
 0x23c   :  { %v1797_v60 = vsub.f32 %v6341_v9, %v1669_v23  ;;  %v1798_v13 = vsub.f32 %v6344_v24, %v1670_v49  ;;  %v1799_v41 = vsub.f32 %v6348_v16, %v1671_v28  ;;  %v1916_v1 = vmul.f32 1.442695, %v1796_v42  ;;  %v9152_v24 = vld [vmem:[#allocation119_spill] sm:$0xff] }
 0x23d   :  { %v6637_v56 = vpop.eup %4468  ;;  %v2023_v12 = vsel %vm9149_vm8, %v2022_v7, %v2021_v31  ;;  %v6645_v28 = vmul.f32 1.442695, %v1776_v3  ;;  %v6647_v4 = vmul.f32 1.442695, %v1777_v22  ;;  %v6651_v36 = vmul.f32 1.442695, %v1778_v57  ;;  %vm9189_vm8 = vmmov %vm9132_vm7 }
 0x23e   :  { %v1918_v43 = vmul.f32 1.442695, %v1797_v60  ;;  %v1920_v59 = vmul.f32 1.442695, %v1798_v13  ;;  %v6639_v32 = vmul.f32 1.442695, %v1799_v41  ;;  %v6642_v23 = vpop.eup %4470  ;;  %4476 = vpow2.f32 %v1916_v1 }
 0x23f   :  { %v2119_v49 = vsel %vm9150_vm9, %v2023_v12, 0.0  ;;  %v6649_v39 = vpop.eup %4472  ;;  %v6653_v42 = vmul.f32 1.442695, %v1779_v19  ;;  %v2052_v60 = vrot.slane %v6598_v35, 7  ;;  %v2054_v13 = vrot.slane %v6603_v33, 6  ;;  %vm9190_vm9 = vmmov %vm9117_vm0 }
 0x240   :  { %9151 = vst [vmem:[#allocation140_spill] sm:$0xff] %v6649_v39  ;;  %4478 = vpow2.f32 %v1918_v43  ;;  %2120 = vadd.xlane.f32.xlu0 %v2119_v49  ;;  %v1639_v3 = vrot.slane %v6499_v21, 6  ;;  %v1640_v22 = vrot.slane %v6499_v21, 7 }
 0x241   :  { %4480 = vpow2.f32 %v1920_v59  ;;  %v6656_v31 = vpop.xlane.xlu0 %1598  ;;  %v6665_v1 = vpop.eup %4474  ;;  %v2053_v12 = vsel %vm917_vm1, %v2052_v60, %v6593_v54 }
 0x242   :  { %v1641_v41 = vrot.slane %v6656_v31, 1  ;;  %v1642_v43 = vrot.slane %v6656_v31, 2  ;;  %v1643_v7 = vrot.slane %v6656_v31, 3  ;;  %v1764_v57 = vsub.f32 %v6401_v52, %v6656_v31 }
 0x243   :  { %4482 = vpow2.f32 %v6549_v2  ;;  %v2000_v59 = vrot.slane %v6665_v1, 5  ;;  %v6682_v2 = vsel %vm919_vm2, %v2054_v13, %v2053_v12  ;;  %v9158_v13 = vrot.slane %v6499_v21, 5  ;;  %v9159_v12 = vld [vmem:[#allocation90_spill] sm:$0xff] }
 0x244   :  { %v1765_v49 = vsub.f32 %v6390_v58, %v1641_v41  ;;  %v1766_v16 = vsub.f32 %v6393_v14, %v1642_v43  ;;  %v1767_v9 = vsub.f32 %v9152_v24, %v1643_v7  ;;  %4484 = vpow2.f32 %v6551_v10  ;;  %v6677_v19 = vpop.eup %4476  ;;  %v9157_v7 = vld [vmem:[#allocation88_spill] sm:$0xff] }
 0x245   :  { %9153 = vst [vmem:[#allocation141_spill] sm:$0xff] %v6677_v19  ;;  %v1852_v0 = vmul.f32 1.442695, %v1764_v57  ;;  %4486 = vpow2.f32 %v6561_v6  ;;  %v2001_v10 = vsel %vm921_vm3, %v2000_v59, %v6615_v34  ;;  %v9156_v6 = vrot.slane %v6499_v21, 4 }
 0x246   :  { %v6684_v52 = vpop.eup %4478  ;;  %v1854_v60 = vmul.f32 1.442695, %v1765_v49  ;;  %v1856_v41 = vmul.f32 1.442695, %v1766_v16  ;;  %v6686_v58 = vmul.f32 1.442695, %v1767_v9  ;;  %4488 = vpow2.f32 %v6563_v61 }
 0x247   :  { %9154 = vst [vmem:[#allocation142_spill] sm:$0xff] %v6684_v52  ;;  %v6689_v43 = vpop.eup %4480  ;;  %4490 = vpow2.f32 %v1852_v0  ;;  %v1760_v57 = vsub.f32 %v9157_v7, %v9156_v6  ;;  %v1761_v24 = vsub.f32 %v9159_v12, %v9158_v13  ;;  %v9160_v9 = vld [vmem:[#allocation91_spill] sm:$0xff]  ;;  %v9161_v61 = vld [vmem:[#allocation92_spill] sm:$0xff]  ;;  %v2024_v0 = vrot.slane %v6553_v38, 7 }
 0x248   :  { %9155 = vst [vmem:[#allocation143_spill] sm:$0xff] %v6689_v43  ;;  %v6699_v49 = vpop.xlane.xlu2 %1607  ;;  %4492 = vpow2.f32 %v1854_v60  ;;  %v1762_v16 = vsub.f32 %v9160_v9, %v1639_v3  ;;  %v1763_v14 = vsub.f32 %v9161_v61, %v1640_v22 }
 0x249   :  { %v6704_v62 = vpop.eup %4482  ;;  %v1662_v34 = vrot.slane %v6699_v49, 1  ;;  %v1663_v59 = vrot.slane %v6699_v49, 2  ;;  %v1664_v6 = vrot.slane %v6699_v49, 3  ;;  %v1788_v3 = vsub.f32 %v6452_v25, %v6699_v49 }
 0x24a   :  { %v6710_v13 = vpop.eup %4484  ;;  %4494 = vpow2.f32 %v1856_v41  ;;  %v2002_v22 = vrot.slane %v6704_v62, 4 }
 0x24b   :  { %v6716_v27 = vpop.eup %4486  ;;  %v1789_v61 = vsub.f32 %v6436_v63, %v1662_v34  ;;  %v1790_v9 = vsub.f32 %v6439_v20, %v1663_v59  ;;  %v1791_v12 = vsub.f32 %v6444_v26, %v1664_v6  ;;  %v2004_v21 = vrot.slane %v6710_v13, 3 }
 0x24c   :  { %v6722_v7 = vpop.eup %4488  ;;  %v1900_v38 = vmul.f32 1.442695, %v1788_v3  ;;  %v2003_v60 = vsel %vm923_vm4, %v2002_v22, %v2001_v10  ;;  %v2006_v25 = vrot.slane %v6716_v27, 2  ;;  %4496 = vpow2.f32 %v6555_v50 }
 0x24d   :  { %v6727_v41 = vpop.eup %4490  ;;  %v1902_v33 = vmul.f32 1.442695, %v1789_v61  ;;  %v1904_v35 = vmul.f32 1.442695, %v1790_v9  ;;  %v6729_v34 = vmul.f32 1.442695, %v1791_v12  ;;  %v2005_v59 = vsel %vm925_vm5, %v2004_v21, %v2003_v60 }
 0x24e   :  { %v6732_v6 = vpop.eup %4492  ;;  %4498 = vpow2.f32 %v1900_v38  ;;  %v2007_v26 = vsel %vm927_vm6, %v2006_v25, %v2005_v59  ;;  %v2008_v3 = vrot.slane %v6722_v7, 1  ;;  %v1844_v10 = vmul.f32 1.442695, %v1760_v57  ;;  %v9169_v60 = vld [vmem:[#allocation106_spill] sm:$0xff] }
 0x24f   :  { %4500 = vpow2.f32 %v1902_v33  ;;  %v1846_v22 = vmul.f32 1.442695, %v1761_v24  ;;  %v1848_v20 = vmul.f32 1.442695, %v1762_v16  ;;  %v1850_v50 = vmul.f32 1.442695, %v1763_v14 }
 0x250   :  { %v6736_v63 = vpop.eup %4494  ;;  %4502 = vpow2.f32 %v1904_v35  ;;  %v2009_v12 = vsel %vm9163_vm10, %v2008_v3, %v2007_v26  ;;  %v2025_v9 = vsel %vm917_vm1, %v2024_v0, %v6547_v44  ;;  %v2026_v61 = vrot.slane %v6557_v11, 6  ;;  %v9166_v35 = vld [vmem:[#allocation104_spill] sm:$0xff]  ;;  %v9168_v0 = vld [vmem:[#allocation105_spill] sm:$0xff]  ;;  %vm9198_vm10 = vmmov %vm9132_vm7 }
 0x251   :  { %9162 = vst [vmem:[#allocation144_spill] sm:$0xff] %v6736_v63  ;;  %v2116_v38 = vsel %vm9164_vm11, %v2009_v12, 0.0  ;;  %4504 = vpow2.f32 %v6645_v28  ;;  %v1660_v25 = vrot.slane %v6569_v29, 6  ;;  %v1661_v24 = vrot.slane %v6569_v29, 7  ;;  %v9170_v3 = vld [vmem:[#allocation108_spill] sm:$0xff]  ;;  %vm9199_vm11 = vmmov %vm9117_vm0 }
 0x252   :  { %v6746_v33 = vpop.eup %4496  ;;  %2117 = vadd.xlane.f32.xlu2 %v2116_v38  ;;  %4506 = vpow2.f32 %v6647_v4  ;;  %v2027_v14 = vsel %vm919_vm2, %v2026_v61, %v2025_v9  ;;  %v9165_v26 = vrot.slane %v6569_v29, 4  ;;  %v9167_v16 = vrot.slane %v6569_v29, 5 }
 0x253   :  { %4508 = vpow2.f32 %v6651_v36  ;;  %v2056_v28 = vrot.slane %v6746_v33, 5  ;;  %v1786_v59 = vsub.f32 %v9169_v60, %v1660_v25  ;;  %v1787_v12 = vsub.f32 %v9170_v3, %v1661_v24 }
 0x254   :  { %v1784_v57 = vsub.f32 %v9166_v35, %v9165_v26  ;;  %v1785_v21 = vsub.f32 %v9168_v0, %v9167_v16  ;;  %v6760_v38 = vpop.eup %4498  ;;  %4510 = vpow2.f32 %v6653_v42  ;;  %v2066_v61 = vrot.slane %v6642_v23, 7  ;;  %v9175_v35 = vld [vmem:[#allocation115_spill] sm:$0xff] }
 0x255   :  { %v6764_v26 = vpop.eup %4500  ;;  %v2057_v29 = vsel %vm921_vm3, %v2056_v28, %v6682_v2  ;;  %4512 = vpow2.f32 %v6526_v53  ;;  %v1896_v36 = vmul.f32 1.442695, %v1786_v59  ;;  %v1898_v16 = vmul.f32 1.442695, %v1787_v12  ;;  %v9172_v53 = vld [vmem:[#allocation112_spill] sm:$0xff]  ;;  %v9174_v12 = vld [vmem:[#allocation113_spill] sm:$0xff] }
 0x256   :  { %v1892_v4 = vmul.f32 1.442695, %v1784_v57  ;;  %v1894_v9 = vmul.f32 1.442695, %v1785_v21  ;;  %v6769_v25 = vpop.eup %4502  ;;  %4514 = vpow2.f32 %v1844_v10  ;;  %v2067_v24 = vsel %vm917_vm1, %v2066_v61, %v6637_v56 }
 0x257   :  { %v2068_v42 = vrot.slane %v6649_v39, 6  ;;  %v1674_v57 = vrot.slane %v6611_v18, 6  ;;  %v6775_v21 = vpop.eup %4504  ;;  %4516 = vpow2.f32 %v1846_v22  ;;  %v1675_v3 = vrot.slane %v6611_v18, 7  ;;  %v9176_v39 = vld [vmem:[#allocation116_spill] sm:$0xff] }
 0x258   :  { %v9171_v2 = vrot.slane %v6611_v18, 4  ;;  %v9173_v59 = vrot.slane %v6611_v18, 5  ;;  %v6784_v60 = vpop.eup %4506  ;;  %v2058_v61 = vrot.slane %v6775_v21, 4  ;;  %4518 = vpow2.f32 %v1848_v20 }
 0x259   :  { %v2069_v0 = vsel %vm919_vm2, %v2068_v42, %v2067_v24  ;;  %v1802_v11 = vsub.f32 %v9175_v35, %v1674_v57  ;;  %v6789_v22 = vpop.eup %4508  ;;  %v2060_v44 = vrot.slane %v6784_v60, 3  ;;  %4520 = vpow2.f32 %v1850_v50 }
 0x25a   :  { %v1800_v28 = vsub.f32 %v9172_v53, %v9171_v2  ;;  %v1801_v10 = vsub.f32 %v9174_v12, %v9173_v59  ;;  %v1803_v2 = vsub.f32 %v9176_v39, %v1675_v3  ;;  %v6793_v18 = vpop.eup %4510  ;;  %v2059_v59 = vsel %vm923_vm4, %v2058_v61, %v2057_v29 }
 0x25b   :  { %v2062_v12 = vrot.slane %v6789_v22, 2  ;;  %4522 = vpow2.f32 %v6600_v48  ;;  %v6798_v24 = vpop.eup %4512  ;;  %v2061_v42 = vsel %vm925_vm5, %v2060_v44, %v2059_v59  ;;  %v2064_v57 = vrot.slane %v6793_v18, 1 }
 0x25c   :  { %v1924_v53 = vmul.f32 1.442695, %v1800_v28  ;;  %v1926_v20 = vmul.f32 1.442695, %v1801_v10  ;;  %4524 = vpow2.f32 %v1892_v4  ;;  %v1928_v50 = vmul.f32 1.442695, %v1802_v11  ;;  %v6802_v35 = vpop.eup %4514 }
 0x25d   :  { %v2063_v3 = vsel %vm927_vm6, %v2062_v12, %v2061_v42  ;;  %v2028_v28 = vrot.slane %v6798_v24, 5  ;;  %4526 = vpow2.f32 %v1894_v9  ;;  %v1930_v29 = vmul.f32 1.442695, %v1803_v2  ;;  %v6806_v61 = vpop.eup %4516 }
 0x25e   :  { %v2065_v48 = vsel %vm9177_vm12, %v2064_v57, %v2063_v3  ;;  %v2030_v10 = vrot.slane %v6802_v35, 4  ;;  %4528 = vpow2.f32 %v1896_v36  ;;  %v2094_v44 = vrot.slane %v6684_v52, 7  ;;  %v6811_v59 = vpop.eup %4518  ;;  %v9183_v52 = vld [vmem:[#allocation132_spill] sm:$0xff]  ;;  %vm9204_vm12 = vmmov %vm9132_vm7 }
 0x25f   :  { %v2128_v11 = vsel %vm9117_vm0, %v2065_v48, 0.0  ;;  %v2029_v4 = vsel %vm921_vm3, %v2028_v28, %v2027_v14  ;;  %v2032_v12 = vrot.slane %v6806_v61, 3  ;;  %4530 = vpow2.f32 %v1898_v16  ;;  %v6816_v9 = vpop.eup %4520 }
 0x260   :  { %2129 = vadd.xlane.f32.xlu1 %v2128_v11  ;;  %v2031_v2 = vsel %vm923_vm4, %v2030_v10, %v2029_v4  ;;  %v2034_v42 = vrot.slane %v6811_v59, 2  ;;  %4532 = vpow2.f32 %v6639_v32  ;;  %v2095_v36 = vsel %vm917_vm1, %v2094_v44, %v6677_v19 }
 0x261   :  { %v6823_v57 = vpop.eup %4522  ;;  %v2033_v3 = vsel %vm925_vm5, %v2032_v12, %v2031_v2  ;;  %v2036_v14 = vrot.slane %v6816_v9, 1  ;;  %4534 = vpow2.f32 %v1924_v53  ;;  %v2096_v16 = vrot.slane %v6689_v43, 6 }
 0x262   :  { %v6828_v28 = vpop.eup %4524  ;;  %v2035_v48 = vsel %vm927_vm6, %v2034_v42, %v2033_v3  ;;  %v2070_v10 = vrot.slane %v6823_v57, 5  ;;  %4536 = vpow2.f32 %v1926_v20  ;;  %v1667_v32 = vrot.slane %v6699_v49, 6 }
 0x263   :  { %v6833_v11 = vpop.eup %4526  ;;  %v2037_v44 = vsel %vm9132_vm7, %v2036_v14, %v2035_v48  ;;  %v2072_v4 = vrot.slane %v6828_v28, 4  ;;  %4538 = vpow2.f32 %v1928_v50  ;;  %v2097_v53 = vsel %vm919_vm2, %v2096_v16, %v2095_v36 }
 0x264   :  { %v6838_v12 = vpop.eup %4528  ;;  %v2122_v2 = vsel %vm9178_vm13, %v2037_v44, 0.0  ;;  %v2071_v42 = vsel %vm921_vm3, %v2070_v10, %v2069_v0  ;;  %v2074_v3 = vrot.slane %v6833_v11, 3  ;;  %4540 = vpow2.f32 %v1930_v29  ;;  %vm9220_vm13 = vmmov %vm9117_vm0 }
 0x265   :  { %v6843_v20 = vpop.eup %4530  ;;  %2123 = vadd.xlane.f32.xlu0 %v2122_v2  ;;  %v2073_v39 = vsel %vm923_vm4, %v2072_v4, %v2071_v42  ;;  %v2076_v14 = vrot.slane %v6838_v12, 2  ;;  %v1668_v50 = vrot.slane %v6699_v49, 7  ;;  %v9179_v36 = vrot.slane %v6699_v49, 4 }
 0x266   :  { %v6851_v48 = vpop.eup %4532  ;;  %v2075_v0 = vsel %vm925_vm5, %v2074_v3, %v2073_v39  ;;  %v2078_v10 = vrot.slane %v6843_v20, 1  ;;  %v9181_v29 = vrot.slane %v6699_v49, 5  ;;  %v1794_v4 = vsub.f32 %v6460_v5, %v1667_v32 }
 0x267   :  { %v1792_v16 = vsub.f32 %v6447_v55, %v9179_v36  ;;  %9180 = vst [vmem:[#allocation145_spill] sm:$0xff] %v6851_v48  ;;  %v6859_v2 = vpop.eup %4534  ;;  %v2077_v42 = vsel %vm927_vm6, %v2076_v14, %v2075_v0  ;;  %v2098_v43 = vrot.slane %v6851_v48, 5  ;;  %v1795_v36 = vsub.f32 %v9183_v52, %v1668_v50 }
 0x268   :  { %v1793_v44 = vsub.f32 %v6455_v46, %v9181_v29  ;;  %9182 = vst [vmem:[#allocation146_spill] sm:$0xff] %v6859_v2  ;;  %4542 = vpow2.f32 %v6729_v34  ;;  %v6865_v55 = vpop.eup %4536  ;;  %v2079_v39 = vsel %vm9185_vm14, %v2078_v10, %v2077_v42  ;;  %v2100_v49 = vrot.slane %v6859_v2, 4  ;;  %vm9229_vm14 = vmmov %vm9132_vm7 }
 0x269   :  { %9184 = vst [vmem:[#allocation147_spill] sm:$0xff] %v6865_v55  ;;  %v1908_v3 = vmul.f32 1.442695, %v1792_v16  ;;  %v6869_v46 = vpop.eup %4538  ;;  %v2131_v32 = vsel %vm9187_vm15, %v2079_v39, 0.0  ;;  %v2099_v14 = vsel %vm921_vm3, %v2098_v43, %v2097_v53  ;;  %v2102_v0 = vrot.slane %v6865_v55, 3  ;;  %vm9233_vm15 = vmmov %vm9117_vm0 }
 0x26a   :  { %v1910_v29 = vmul.f32 1.442695, %v1793_v44  ;;  %9186 = vst [vmem:[#allocation148_spill] sm:$0xff] %v6869_v46  ;;  %v1912_v5 = vmul.f32 1.442695, %v1794_v4  ;;  %v6874_v50 = vpop.eup %4540  ;;  %2132 = vadd.xlane.f32.xlu2 %v2131_v32  ;;  %v2101_v34 = vsel %vm923_vm4, %v2100_v49, %v2099_v14  ;;  %v2104_v10 = vrot.slane %v6869_v46, 2 }
 0x26b   :  { %9188 = vst [vmem:[#allocation149_spill] sm:$0xff] %v6874_v50  ;;  %4544 = vpow2.f32 %v1908_v3  ;;  %v1914_v42 = vmul.f32 1.442695, %v1795_v36  ;;  %v2103_v16 = vsel %vm925_vm5, %v2102_v0, %v2101_v34  ;;  %v2106_v44 = vrot.slane %v6874_v50, 1  ;;  %v9192_v34 = vld [vmem:[#allocation121_spill] sm:$0xff] }
 0x26c   :  { %4546 = vpow2.f32 %v1910_v29  ;;  %v2080_v39 = vrot.slane %v6764_v26, 7  ;;  %v2105_v43 = vsel %vm927_vm6, %v2104_v10, %v2103_v16  ;;  %v2082_v53 = vrot.slane %v6769_v25, 6 }
 0x26d   :  { %4548 = vpow2.f32 %v1912_v5  ;;  %v1646_v4 = vrot.slane %v6656_v31, 6  ;;  %v2107_v49 = vsel %vm9189_vm8, %v2106_v44, %v2105_v43  ;;  %v1647_v3 = vrot.slane %v6656_v31, 7  ;;  %v9194_v44 = vld [vmem:[#allocation122_spill] sm:$0xff]  ;;  %v9195_v43 = vld [vmem:[#allocation123_spill] sm:$0xff]  ;;  %vm9237_vm8 = vmmov %vm9132_vm7 }
 0x26e   :  { %v6884_v32 = vpop.eup %4542  ;;  %4550 = vpow2.f32 %v1914_v42  ;;  %v2081_v36 = vsel %vm917_vm1, %v2080_v39, %v6760_v38  ;;  %v2137_v29 = vsel %vm9190_vm9, %v2107_v49, 0.0  ;;  %v9191_v0 = vrot.slane %v6656_v31, 4  ;;  %v9196_v39 = vld [vmem:[#allocation124_spill] sm:$0xff]  ;;  %vm9241_vm9 = vmmov %vm9117_vm0 }
 0x26f   :  { %v2083_v14 = vsel %vm919_vm2, %v2082_v53, %v2081_v36  ;;  %v2084_v5 = vrot.slane %v6884_v32, 5  ;;  %2138 = vadd.xlane.f32.xlu0 %v2137_v29  ;;  %v9193_v16 = vrot.slane %v6656_v31, 5  ;;  %v1770_v52 = vsub.f32 %v9195_v43, %v1646_v4 }
 0x270   :  { %v1768_v10 = vsub.f32 %v9192_v34, %v9191_v0  ;;  %v1771_v50 = vsub.f32 %v9196_v39, %v1647_v3  ;;  %4552 = vpow2.f32 %v6686_v58  ;;  %v2038_v46 = vrot.slane %v6732_v6, 7 }
 0x271   :  { %v1769_v42 = vsub.f32 %v9194_v44, %v9193_v16  ;;  %v6902_v49 = vpop.eup %4544  ;;  %v2085_v53 = vsel %vm921_vm3, %v2084_v5, %v2083_v14  ;;  %v1864_v0 = vmul.f32 1.442695, %v1770_v52  ;;  %v2040_v16 = vrot.slane %v6736_v63, 6  ;;  %v9212_v63 = vld [vmem:[#allocation30_spill] sm:$0xff] }
 0x272   :  { %v1860_v36 = vmul.f32 1.442695, %v1768_v10  ;;  %v6906_v55 = vpop.eup %4546  ;;  %v2086_v29 = vrot.slane %v6902_v49, 4  ;;  %v1866_v58 = vmul.f32 1.442695, %v1771_v50  ;;  %v2039_v14 = vsel %vm917_vm1, %v2038_v46, %v6727_v41 }
 0x273   :  { %v1862_v31 = vmul.f32 1.442695, %v1769_v42  ;;  %v6910_v4 = vpop.eup %4548  ;;  %v2088_v3 = vrot.slane %v6906_v55, 3  ;;  %v2041_v50 = vsel %vm919_vm2, %v2040_v16, %v2039_v14 }
 0x274   :  { %4554 = vpow2.f32 %v1860_v36  ;;  %v6915_v5 = vpop.eup %4550  ;;  %v2087_v10 = vsel %vm923_vm4, %v2086_v29, %v2085_v53  ;;  %v2090_v39 = vrot.slane %v6910_v4, 2 }
 0x275   :  { %4556 = vpow2.f32 %v1862_v31  ;;  %v2089_v52 = vsel %vm925_vm5, %v2088_v3, %v2087_v10  ;;  %v2092_v42 = vrot.slane %v6915_v5, 1 }
 0x276   :  { %4558 = vpow2.f32 %v1864_v0  ;;  %v6921_v43 = vpop.eup %4552  ;;  %v2091_v36 = vsel %vm927_vm6, %v2090_v39, %v2089_v52 }
 0x277   :  { %9197 = vst [vmem:[#allocation150_spill] sm:$0xff] %v6921_v43  ;;  %4560 = vpow2.f32 %v1866_v58  ;;  %v2093_v46 = vsel %vm9198_vm10, %v2092_v42, %v2091_v36  ;;  %v2042_v44 = vrot.slane %v6921_v43, 5  ;;  %v9207_v43 = vld [vmem:[#allocation23_spill] sm:$0xff]  ;;  %vm9251_vm10 = vmmov %vm9132_vm7 }
 0x278   :  { %v2134_v53 = vsel %vm9199_vm11, %v2093_v46, 0.0  ;;  %vm9255_vm11 = vmmov %vm9117_vm0 }
 0x279   :  { %2135 = vadd.xlane.f32.xlu1 %v2134_v53  ;;  %v2043_v31 = vsel %vm921_vm3, %v2042_v44, %v2041_v50 }
 0x27a   :  { %v6928_v29 = vpop.eup %4554 }
 0x27b   :  { %9200 = vst [vmem:[#allocation151_spill] sm:$0xff] %v6928_v29  ;;  %v6931_v3 = vpop.eup %4556  ;;  %v2044_v0 = vrot.slane %v6928_v29, 4 }
 0x27c   :  { %9201 = vst [vmem:[#allocation152_spill] sm:$0xff] %v6931_v3  ;;  %v6934_v10 = vpop.eup %4558  ;;  %v2046_v39 = vrot.slane %v6931_v3, 3  ;;  %v9205_v3 = vld [vmem:[#allocation21_spill] sm:$0xff] }
 0x27d   :  { %9202 = vst [vmem:[#allocation153_spill] sm:$0xff] %v6934_v10  ;;  %v6937_v16 = vpop.eup %4560  ;;  %v2045_v58 = vsel %vm923_vm4, %v2044_v0, %v2043_v31  ;;  %v2048_v14 = vrot.slane %v6934_v10, 2 }
 0x27e   :  { %9203 = vst [vmem:[#allocation154_spill] sm:$0xff] %v6937_v16  ;;  %v2047_v52 = vsel %vm925_vm5, %v2046_v39, %v2045_v58  ;;  %v2050_v42 = vrot.slane %v6937_v16, 1 }
 0x27f   :  { %v2049_v44 = vsel %vm927_vm6, %v2048_v14, %v2047_v52 }
 0x280   :  { %v2051_v36 = vsel %vm9204_vm12, %v2050_v42, %v2049_v44  ;;  %vm9263_vm12 = vmmov %vm9132_vm7 }
 0x281   :  { %v2125_v50 = vsel %vm9117_vm0, %v2051_v36, 0.0 }
 0x282   :  { %2126 = vadd.xlane.f32.xlu2 %v2125_v50 }
 0x2b3   :  { %v2121_v53 = vpop.xlane.xlu0 %2120 }
 0x2c5   :  { %v2118_v46 = vpop.xlane.xlu2 %2117 }
 0x2c6   :  { %4562 = vrcp.f32 %v2118_v46 }
 0x2c7   :  { %4564 = vrcp.f32 %v2121_v53 }
 0x2cc   :  { %v4563_v34 = vpop.eup %4562 }
 0x2cd   :  { %v2156_v2 = vrot.slane %v4563_v34, 1  ;;  %v2157_v31 = vrot.slane %v4563_v34, 2  ;;  %v2158_v0 = vrot.slane %v4563_v34, 3  ;;  %v2159_v48 = vrot.slane %v4563_v34, 4  ;;  %v4565_v50 = vpop.eup %4564 }
 0x2ce   :  { %v2160_v19 = vrot.slane %v4563_v34, 5  ;;  %v2161_v39 = vrot.slane %v4563_v34, 6  ;;  %v2162_v58 = vrot.slane %v4563_v34, 7  ;;  %v2276_v16 = vmul.f32 %v4563_v34, %v6520_v17  ;;  %v9206_v17 = vld [vmem:[#allocation22_spill] sm:$0xff] }
 0x2cf   :  { %v2277_v52 = vmul.f32 %v6524_v30, %v2156_v2  ;;  %v2278_v42 = vmul.f32 %v6528_v37, %v2157_v31  ;;  %v2279_v44 = vmul.f32 %v6665_v1, %v2158_v0  ;;  %v2280_v36 = vmul.f32 %v6704_v62, %v2159_v48  ;;  %v9208_v2 = vld [vmem:[#allocation24_spill] sm:$0xff]  ;;  %v9209_v31 = vld [vmem:[#allocation25_spill] sm:$0xff]  ;;  %v9210_v0 = vld [vmem:[#allocation26_spill] sm:$0xff] }
 0x2d0   :  { %v2281_v46 = vmul.f32 %v6710_v13, %v2160_v19  ;;  %v2282_v53 = vmul.f32 %v6716_v27, %v2161_v39  ;;  %v2283_v10 = vmul.f32 %v6722_v7, %v2162_v58  ;;  %v2340_v29 = vmul.f32 %v2276_v16, %v9205_v3  ;;  %v9211_v48 = vld [vmem:[#allocation27_spill] sm:$0xff] }
 0x2d1   :  { %v2341_v34 = vmul.f32 %v2277_v52, %v9206_v17  ;;  %v2342_v30 = vmul.f32 %v2278_v42, %v9207_v43  ;;  %v2343_v37 = vmul.f32 %v2279_v44, %v9208_v2  ;;  %v2344_v1 = vmul.f32 %v2280_v36, %v9209_v31 }
 0x2d2   :  { %v2345_v62 = vmul.f32 %v2281_v46, %v9210_v0  ;;  %v2347_v19 = vmul.f32 %v2283_v10, %v9212_v63  ;;  %v2163_v7 = vrot.slane %v4565_v50, 1  ;;  %v2164_v44 = vrot.slane %v4565_v50, 2  ;;  %v9214_v63 = vld [vmem:[#allocation137_spill] sm:$0xff] }
 0x2d3   :  { %v2130_v14 = vpop.xlane.xlu1 %2129  ;;  %v2468_v13 = vrot.slane %v2341_v34, 7  ;;  %v2470_v27 = vrot.slane %v2342_v30, 6  ;;  %v2472_v39 = vrot.slane %v2343_v37, 5  ;;  %v2474_v16 = vrot.slane %v2344_v1, 4 }
 0x2d4   :  { %4566 = vrcp.f32 %v2130_v14  ;;  %v2346_v14 = vmul.f32 %v2282_v53, %v9211_v48  ;;  %v2476_v3 = vrot.slane %v2345_v62, 3  ;;  %v2480_v17 = vrot.slane %v2347_v19, 1 }
 0x2d5   :  { %v2469_v42 = vsel %vm917_vm1, %v2468_v13, %v2340_v29  ;;  %v2165_v36 = vrot.slane %v4565_v50, 3  ;;  %v2166_v53 = vrot.slane %v4565_v50, 4  ;;  %v2167_v48 = vrot.slane %v4565_v50, 5 }
 0x2d6   :  { %v2478_v52 = vrot.slane %v2346_v14, 2  ;;  %v2471_v46 = vsel %vm919_vm2, %v2470_v27, %v2469_v42  ;;  %v2168_v10 = vrot.slane %v4565_v50, 6  ;;  %v2169_v30 = vrot.slane %v4565_v50, 7  ;;  %v9213_v14 = vld [vmem:[#allocation133_spill] sm:$0xff] }
 0x2d7   :  { %v2473_v34 = vsel %vm921_vm3, %v2472_v39, %v2471_v46  ;;  %v2284_v37 = vmul.f32 %v4565_v50, %v6504_v45  ;;  %v2285_v1 = vmul.f32 %v6509_v51, %v2163_v7  ;;  %v2286_v19 = vmul.f32 %v9213_v14, %v2164_v44  ;;  %v9215_v51 = vld [vmem:[#allocation13_spill] sm:$0xff]  ;;  %v9216_v7 = vld [vmem:[#allocation14_spill] sm:$0xff] }
 0x2d8   :  { %v2124_v58 = vpop.xlane.xlu0 %2123  ;;  %v2475_v62 = vsel %vm923_vm4, %v2474_v16, %v2473_v34  ;;  %v2287_v29 = vmul.f32 %v6567_v40, %v2165_v36  ;;  %v2288_v13 = vmul.f32 %v6575_v8, %v2166_v53  ;;  %v2289_v42 = vmul.f32 %v6581_v47, %v2167_v48  ;;  %v9217_v8 = vld [vmem:[#allocation15_spill] sm:$0xff]  ;;  %v9219_v47 = vld [vmem:[#allocation17_spill] sm:$0xff] }
 0x2d9   :  { %4568 = vrcp.f32 %v2124_v58  ;;  %v2477_v27 = vsel %vm925_vm5, %v2476_v3, %v2475_v62  ;;  %v2290_v39 = vmul.f32 %v9214_v63, %v2168_v10  ;;  %v2291_v46 = vmul.f32 %v6620_v15, %v2169_v30  ;;  %v9218_v3 = vld [vmem:[#allocation16_spill] sm:$0xff]  ;;  %v9221_v15 = vld [vmem:[#allocation18_spill] sm:$0xff]  ;;  %v9222_v34 = vld [vmem:[#allocation19_spill] sm:$0xff] }
 0x2da   :  { %v4567_v31 = vpop.eup %4566  ;;  %v2479_v45 = vsel %vm927_vm6, %v2478_v52, %v2477_v27  ;;  %v2348_v50 = vmul.f32 %v2284_v37, %v9215_v51  ;;  %v2349_v16 = vmul.f32 %v2285_v1, %v9216_v7  ;;  %v2350_v36 = vmul.f32 %v2286_v19, %v9217_v8  ;;  %v9223_v30 = vld [vmem:[#allocation20_spill] sm:$0xff] }
 0x2db   :  { %v2481_v40 = vsel %vm9132_vm7, %v2480_v17, %v2479_v45  ;;  %v2351_v53 = vmul.f32 %v2287_v29, %v9218_v3  ;;  %v2352_v48 = vmul.f32 %v2288_v13, %v9219_v47  ;;  %v2353_v10 = vmul.f32 %v2289_v42, %v9221_v15 }
 0x2dc   :  { %v2588_v63 = vsel %vm9220_vm13, %v2481_v40, 0.0  ;;  %v2354_v52 = vmul.f32 %v2290_v39, %v9222_v34  ;;  %v2355_v37 = vmul.f32 %v2291_v46, %v9223_v30  ;;  %v2482_v1 = vrot.slane %v2349_v16, 7  ;;  %vm9278_vm13 = vmmov %vm9117_vm0 }
 0x2dd   :  { %v2133_v58 = vpop.xlane.xlu2 %2132  ;;  %2589 = vadd.xlane.f32.xlu1 %v2588_v63  ;;  %v2484_v62 = vrot.slane %v2350_v36, 6  ;;  %v2486_v14 = vrot.slane %v2351_v53, 5  ;;  %v2490_v27 = vrot.slane %v2353_v10, 3  ;;  %v2184_v29 = vrot.slane %v4567_v31, 1 }
 0x2de   :  { %4570 = vrcp.f32 %v2133_v58  ;;  %v2488_v58 = vrot.slane %v2352_v48, 4  ;;  %v2492_v19 = vrot.slane %v2354_v52, 2  ;;  %v2494_v45 = vrot.slane %v2355_v37, 1  ;;  %v9224_v48 = vld [vmem:[#allocation138_spill] sm:$0xff]  ;;  %v9225_v37 = vld [vmem:[#allocation139_spill] sm:$0xff] }
 0x2df   :  { %v6978_v44 = vpop.eup %4568  ;;  %v2483_v13 = vsel %vm917_vm1, %v2482_v1, %v2348_v50  ;;  %v2185_v40 = vrot.slane %v4567_v31, 2  ;;  %v2186_v47 = vrot.slane %v4567_v31, 3  ;;  %v2187_v34 = vrot.slane %v4567_v31, 4 }
 0x2e0   :  { %v2485_v39 = vsel %vm919_vm2, %v2484_v62, %v2483_v13  ;;  %v2188_v46 = vrot.slane %v4567_v31, 5  ;;  %v2189_v63 = vrot.slane %v4567_v31, 6  ;;  %v2190_v36 = vrot.slane %v4567_v31, 7 }
 0x2e1   :  { %v2487_v16 = vsel %vm921_vm3, %v2486_v14, %v2485_v39  ;;  %v2308_v53 = vmul.f32 %v4567_v31, %v6593_v54  ;;  %v2309_v10 = vmul.f32 %v9224_v48, %v2184_v29  ;;  %v2311_v50 = vmul.f32 %v6746_v33, %v2186_v47  ;;  %v9226_v31 = vld [vmem:[#allocation39_spill] sm:$0xff]  ;;  %v9227_v39 = vld [vmem:[#allocation40_spill] sm:$0xff] }
 0x2e2   :  { %v2139_v17 = vpop.xlane.xlu0 %2138  ;;  %v2489_v52 = vsel %vm923_vm4, %v2488_v58, %v2487_v16  ;;  %v2312_v1 = vmul.f32 %v6775_v21, %v2187_v34  ;;  %v2313_v13 = vmul.f32 %v6784_v60, %v2188_v46  ;;  %v2314_v30 = vmul.f32 %v6789_v22, %v2189_v63  ;;  %v9228_v16 = vld [vmem:[#allocation41_spill] sm:$0xff]  ;;  %v9230_v21 = vld [vmem:[#allocation42_spill] sm:$0xff]  ;;  %v9231_v34 = vld [vmem:[#allocation43_spill] sm:$0xff] }
 0x2e3   :  { %4572 = vrcp.f32 %v2139_v17  ;;  %v2310_v17 = vmul.f32 %v9225_v37, %v2185_v40  ;;  %v2491_v62 = vsel %vm925_vm5, %v2490_v27, %v2489_v52  ;;  %v2315_v14 = vmul.f32 %v6793_v18, %v2190_v36  ;;  %v9232_v27 = vld [vmem:[#allocation44_spill] sm:$0xff]  ;;  %v9234_v46 = vld [vmem:[#allocation45_spill] sm:$0xff]  ;;  %v9235_v63 = vld [vmem:[#allocation46_spill] sm:$0xff] }
 0x2e4   :  { %v4571_v42 = vpop.eup %4570  ;;  %v2493_v54 = vsel %vm927_vm6, %v2492_v19, %v2491_v62  ;;  %v2372_v29 = vmul.f32 %v2308_v53, %v9226_v31  ;;  %v2373_v58 = vmul.f32 %v2309_v10, %v9227_v39  ;;  %v2375_v47 = vmul.f32 %v2311_v50, %v9230_v21 }
 0x2e5   :  { %v2374_v40 = vmul.f32 %v2310_v17, %v9228_v16  ;;  %v2495_v33 = vsel %vm9229_vm14, %v2494_v45, %v2493_v54  ;;  %v2376_v60 = vmul.f32 %v2312_v1, %v9231_v34  ;;  %v2377_v22 = vmul.f32 %v2313_v13, %v9232_v27  ;;  %vm9294_vm14 = vmmov %vm9132_vm7 }
 0x2e6   :  { %v2591_v18 = vsel %vm9233_vm15, %v2495_v33, 0.0  ;;  %v2378_v19 = vmul.f32 %v2314_v30, %v9234_v46  ;;  %v2379_v36 = vmul.f32 %v2315_v14, %v9235_v63  ;;  %v2524_v53 = vrot.slane %v2373_v58, 7  ;;  %vm9297_vm15 = vmmov %vm9117_vm0 }
 0x2e7   :  { %2592 = vadd.xlane.f32.xlu2 %v2591_v18  ;;  %v2526_v52 = vrot.slane %v2374_v40, 6  ;;  %v2528_v37 = vrot.slane %v2375_v47, 5  ;;  %v2530_v17 = vrot.slane %v2376_v60, 4  ;;  %v2532_v62 = vrot.slane %v2377_v22, 3  ;;  %v9236_v18 = vld [vmem:[#allocation140_spill] sm:$0xff] }
 0x2e8   :  { %v2525_v45 = vsel %vm917_vm1, %v2524_v53, %v2372_v29  ;;  %v2534_v50 = vrot.slane %v2378_v19, 2  ;;  %v2536_v1 = vrot.slane %v2379_v36, 1  ;;  %v2191_v54 = vrot.slane %v4571_v42, 1 }
 0x2e9   :  { %v7005_v48 = vpop.eup %4572  ;;  %v2527_v13 = vsel %vm919_vm2, %v2526_v52, %v2525_v45  ;;  %v2192_v33 = vrot.slane %v4571_v42, 2  ;;  %v2193_v27 = vrot.slane %v4571_v42, 3  ;;  %v2194_v14 = vrot.slane %v4571_v42, 4 }
 0x2ea   :  { %v2529_v30 = vsel %vm921_vm3, %v2528_v37, %v2527_v13  ;;  %v2195_v58 = vrot.slane %v4571_v42, 5  ;;  %v2196_v63 = vrot.slane %v4571_v42, 6  ;;  %v2197_v47 = vrot.slane %v4571_v42, 7 }
 0x2eb   :  { %v2531_v40 = vsel %vm923_vm4, %v2530_v17, %v2529_v30  ;;  %v2316_v60 = vmul.f32 %v4571_v42, %v6637_v56  ;;  %v2317_v22 = vmul.f32 %v6642_v23, %v2191_v54  ;;  %v2318_v19 = vmul.f32 %v9236_v18, %v2192_v33  ;;  %v9238_v23 = vld [vmem:[#allocation5_spill] sm:$0xff]  ;;  %v9240_v54 = vld [vmem:[#allocation7_spill] sm:$0xff] }
 0x2ec   :  { %v2136_v10 = vpop.xlane.xlu1 %2135  ;;  %v2533_v29 = vsel %vm925_vm5, %v2532_v62, %v2531_v40  ;;  %v2319_v36 = vmul.f32 %v6823_v57, %v2193_v27  ;;  %v2320_v53 = vmul.f32 %v6828_v28, %v2194_v14  ;;  %v2321_v52 = vmul.f32 %v6833_v11, %v2195_v58  ;;  %v9239_v62 = vld [vmem:[#allocation6_spill] sm:$0xff]  ;;  %v9243_v11 = vld [vmem:[#allocation9_spill] sm:$0xff] }
 0x2ed   :  { %4574 = vrcp.f32 %v2136_v10  ;;  %v2535_v10 = vsel %vm927_vm6, %v2534_v50, %v2533_v29  ;;  %v2322_v37 = vmul.f32 %v6838_v12, %v2196_v63  ;;  %v2323_v17 = vmul.f32 %v6843_v20, %v2197_v47  ;;  %v9242_v50 = vld [vmem:[#allocation8_spill] sm:$0xff]  ;;  %v9244_v12 = vld [vmem:[#allocation10_spill] sm:$0xff]  ;;  %v9245_v20 = vld [vmem:[#allocation11_spill] sm:$0xff] }
 0x2ee   :  { %v2537_v56 = vsel %vm9237_vm8, %v2536_v1, %v2535_v10  ;;  %v2380_v42 = vmul.f32 %v2316_v60, %v9238_v23  ;;  %v2381_v13 = vmul.f32 %v2317_v22, %v9239_v62  ;;  %v2382_v57 = vmul.f32 %v2318_v19, %v9240_v54  ;;  %v9246_v1 = vld [vmem:[#allocation12_spill] sm:$0xff]  ;;  %vm9302_vm8 = vmmov %vm9132_vm7 }
 0x2ef   :  { %v2600_v28 = vsel %vm9241_vm9, %v2537_v56, 0.0  ;;  %v2383_v33 = vmul.f32 %v2319_v36, %v9242_v50  ;;  %v2384_v30 = vmul.f32 %v2320_v53, %v9243_v11  ;;  %v2385_v63 = vmul.f32 %v2321_v52, %v9244_v12  ;;  %vm9303_vm9 = vmmov %vm9117_vm0 }
 0x2f0   :  { %2601 = vadd.xlane.f32.xlu0 %v2600_v28  ;;  %v2386_v14 = vmul.f32 %v2322_v37, %v9245_v20  ;;  %v2387_v58 = vmul.f32 %v2323_v17, %v9246_v1  ;;  %v2538_v40 = vrot.slane %v2381_v13, 7  ;;  %v2540_v47 = vrot.slane %v2382_v57, 6  ;;  %v9247_v28 = vld [vmem:[#allocation134_spill] sm:$0xff] }
 0x2f1   :  { %v2542_v60 = vrot.slane %v2383_v33, 5  ;;  %v2544_v22 = vrot.slane %v2384_v30, 4  ;;  %v2546_v29 = vrot.slane %v2385_v63, 3  ;;  %v2170_v36 = vrot.slane %v6978_v44, 1  ;;  %v9248_v30 = vld [vmem:[#allocation135_spill] sm:$0xff] }
 0x2f2   :  { %v2539_v18 = vsel %vm917_vm1, %v2538_v40, %v2380_v42  ;;  %v2548_v19 = vrot.slane %v2386_v14, 2  ;;  %v2550_v10 = vrot.slane %v2387_v58, 1  ;;  %v2171_v52 = vrot.slane %v6978_v44, 2  ;;  %v9249_v14 = vld [vmem:[#allocation136_spill] sm:$0xff] }
 0x2f3   :  { %v7028_v45 = vpop.eup %4574  ;;  %v2541_v53 = vsel %vm919_vm2, %v2540_v47, %v2539_v18  ;;  %v2172_v56 = vrot.slane %v6978_v44, 3  ;;  %v2173_v37 = vrot.slane %v6978_v44, 4  ;;  %v2174_v13 = vrot.slane %v6978_v44, 5 }
 0x2f4   :  { %v2543_v17 = vsel %vm921_vm3, %v2542_v60, %v2541_v53  ;;  %v2175_v57 = vrot.slane %v6978_v44, 6  ;;  %v2176_v42 = vrot.slane %v6978_v44, 7  ;;  %v2292_v33 = vmul.f32 %v6978_v44, %v9247_v28  ;;  %v9252_v28 = vld [vmem:[#allocation32_spill] sm:$0xff] }
 0x2f5   :  { %v2127_v27 = vpop.xlane.xlu2 %2126  ;;  %v2293_v63 = vmul.f32 %v9248_v30, %v2170_v36  ;;  %v2294_v58 = vmul.f32 %v9249_v14, %v2171_v52  ;;  %v2295_v60 = vmul.f32 %v6798_v24, %v2172_v56  ;;  %v2296_v18 = vmul.f32 %v6802_v35, %v2173_v37  ;;  %v9253_v14 = vld [vmem:[#allocation33_spill] sm:$0xff]  ;;  %v9256_v56 = vld [vmem:[#allocation35_spill] sm:$0xff]  ;;  %v9257_v37 = vld [vmem:[#allocation36_spill] sm:$0xff] }
 0x2f6   :  { %4576 = vrcp.f32 %v2127_v27  ;;  %v2545_v27 = vsel %vm923_vm4, %v2544_v22, %v2543_v17  ;;  %v2297_v53 = vmul.f32 %v6806_v61, %v2174_v13  ;;  %v2298_v22 = vmul.f32 %v6811_v59, %v2175_v57  ;;  %v9250_v17 = vld [vmem:[#allocation31_spill] sm:$0xff]  ;;  %v9258_v13 = vld [vmem:[#allocation37_spill] sm:$0xff] }
 0x2f7   :  { %v2547_v47 = vsel %vm925_vm5, %v2546_v29, %v2545_v27  ;;  %v2299_v44 = vmul.f32 %v6816_v9, %v2176_v42  ;;  %v2356_v36 = vmul.f32 %v2292_v33, %v9250_v17  ;;  %v2357_v30 = vmul.f32 %v2293_v63, %v9252_v28  ;;  %v9254_v27 = vld [vmem:[#allocation34_spill] sm:$0xff] }
 0x2f8   :  { %v2549_v46 = vsel %vm927_vm6, %v2548_v19, %v2547_v47  ;;  %v2358_v29 = vmul.f32 %v2294_v58, %v9253_v14  ;;  %v2359_v24 = vmul.f32 %v2295_v60, %v9254_v27  ;;  %v2360_v61 = vmul.f32 %v2296_v18, %v9256_v56  ;;  %v9259_v9 = vld [vmem:[#allocation38_spill] sm:$0xff] }
 0x2f9   :  { %v2551_v52 = vsel %vm9251_vm10, %v2550_v10, %v2549_v46  ;;  %v2361_v19 = vmul.f32 %v2297_v53, %v9257_v37  ;;  %v2362_v59 = vmul.f32 %v2298_v22, %v9258_v13  ;;  %v2363_v57 = vmul.f32 %v2299_v44, %v9259_v9 }
 0x2fa   :  { %v2603_v35 = vsel %vm9255_vm11, %v2551_v52, 0.0  ;;  %v2496_v42 = vrot.slane %v2357_v30, 7  ;;  %v2498_v33 = vrot.slane %v2358_v29, 6  ;;  %v2500_v46 = vrot.slane %v2359_v24, 5 }
 0x2fb   :  { %2604 = vadd.xlane.f32.xlu1 %v2603_v35  ;;  %v2502_v10 = vrot.slane %v2360_v61, 4  ;;  %v2504_v63 = vrot.slane %v2361_v19, 3  ;;  %v2506_v47 = vrot.slane %v2362_v59, 2  ;;  %v2198_v58 = vrot.slane %v7028_v45, 1 }
 0x2fc   :  { %v7055_v40 = vpop.eup %4576  ;;  %v2497_v60 = vsel %vm917_vm1, %v2496_v42, %v2356_v36  ;;  %v2508_v52 = vrot.slane %v2363_v57, 1  ;;  %v2199_v18 = vrot.slane %v7028_v45, 2  ;;  %v2200_v53 = vrot.slane %v7028_v45, 3 }
 0x2fd   :  { %v2499_v22 = vsel %vm919_vm2, %v2498_v33, %v2497_v60  ;;  %v2201_v35 = vrot.slane %v7028_v45, 4  ;;  %v2202_v44 = vrot.slane %v7028_v45, 5  ;;  %v2203_v30 = vrot.slane %v7028_v45, 6 }
 0x2fe   :  { %v2501_v29 = vsel %vm921_vm3, %v2500_v46, %v2499_v22  ;;  %v2204_v24 = vrot.slane %v7028_v45, 7  ;;  %v2324_v36 = vmul.f32 %v7028_v45, %v6760_v38  ;;  %v2325_v61 = vmul.f32 %v6764_v26, %v2198_v58  ;;  %v9260_v45 = vld [vmem:[#allocation28_spill] sm:$0xff]  ;;  %v9261_v58 = vld [vmem:[#allocation29_spill] sm:$0xff] }
 0x2ff   :  { %v2503_v19 = vsel %vm923_vm4, %v2502_v10, %v2501_v29  ;;  %v2326_v59 = vmul.f32 %v6769_v25, %v2199_v18  ;;  %v2327_v57 = vmul.f32 %v6884_v32, %v2200_v53  ;;  %v2328_v42 = vmul.f32 %v6902_v49, %v2201_v35  ;;  %v9262_v29 = vld [vmem:[#allocation47_spill] sm:$0xff]  ;;  %v9264_v18 = vld [vmem:[#allocation48_spill] sm:$0xff]  ;;  %v9265_v53 = vld [vmem:[#allocation49_spill] sm:$0xff] }
 0x300   :  { %v2505_v33 = vsel %vm925_vm5, %v2504_v63, %v2503_v19  ;;  %v2329_v60 = vmul.f32 %v6906_v55, %v2202_v44  ;;  %v2330_v46 = vmul.f32 %v6910_v4, %v2203_v30  ;;  %v2331_v22 = vmul.f32 %v6915_v5, %v2204_v24  ;;  %v9266_v35 = vld [vmem:[#allocation50_spill] sm:$0xff]  ;;  %v9267_v44 = vld [vmem:[#allocation51_spill] sm:$0xff]  ;;  %v9268_v30 = vld [vmem:[#allocation52_spill] sm:$0xff] }
 0x301   :  { %v2507_v38 = vsel %vm927_vm6, %v2506_v47, %v2505_v33  ;;  %v2388_v26 = vmul.f32 %v2324_v36, %v9260_v45  ;;  %v2389_v10 = vmul.f32 %v2325_v61, %v9261_v58  ;;  %v2390_v25 = vmul.f32 %v2326_v59, %v9262_v29  ;;  %v9288_v29 = vld [vmem:[#allocation146_spill] sm:$0xff] }
 0x302   :  { %v2509_v32 = vsel %vm9263_vm12, %v2508_v52, %v2507_v38  ;;  %v2391_v49 = vmul.f32 %v2327_v57, %v9264_v18  ;;  %v2392_v63 = vmul.f32 %v2328_v42, %v9265_v53  ;;  %v2393_v55 = vmul.f32 %v2329_v60, %v9266_v35  ;;  %v9273_v35 = vld [vmem:[#allocation153_spill] sm:$0xff] }
 0x303   :  { %v2594_v4 = vsel %vm9117_vm0, %v2509_v32, 0.0  ;;  %v2394_v5 = vmul.f32 %v2330_v46, %v9267_v44  ;;  %v2395_v47 = vmul.f32 %v2331_v22, %v9268_v30  ;;  %v2552_v24 = vrot.slane %v2389_v10, 7 }
 0x304   :  { %2595 = vadd.xlane.f32.xlu2 %v2594_v4  ;;  %v2554_v36 = vrot.slane %v2390_v25, 6  ;;  %v2556_v61 = vrot.slane %v2391_v49, 5  ;;  %v2558_v19 = vrot.slane %v2392_v63, 4  ;;  %v2560_v59 = vrot.slane %v2393_v55, 3  ;;  %v9269_v4 = vld [vmem:[#allocation144_spill] sm:$0xff] }
 0x305   :  { %v2553_v52 = vsel %vm917_vm1, %v2552_v24, %v2388_v26  ;;  %v2562_v33 = vrot.slane %v2394_v5, 2  ;;  %v2564_v57 = vrot.slane %v2395_v47, 1  ;;  %v2177_v42 = vrot.slane %v7055_v40, 1  ;;  %v9270_v24 = vld [vmem:[#allocation150_spill] sm:$0xff] }
 0x306   :  { %v2555_v60 = vsel %vm919_vm2, %v2554_v36, %v2553_v52  ;;  %v2178_v38 = vrot.slane %v7055_v40, 2  ;;  %v2179_v46 = vrot.slane %v7055_v40, 3  ;;  %v2180_v22 = vrot.slane %v7055_v40, 4 }
 0x307   :  { %v2557_v10 = vsel %vm921_vm3, %v2556_v61, %v2555_v60  ;;  %v2181_v25 = vrot.slane %v7055_v40, 5  ;;  %v2182_v32 = vrot.slane %v7055_v40, 6  ;;  %v2183_v26 = vrot.slane %v7055_v40, 7  ;;  %v9271_v61 = vld [vmem:[#allocation151_spill] sm:$0xff]  ;;  %v9272_v60 = vld [vmem:[#allocation152_spill] sm:$0xff] }
 0x308   :  { %v2559_v49 = vsel %vm923_vm4, %v2558_v19, %v2557_v10  ;;  %v2300_v63 = vmul.f32 %v7055_v40, %v6727_v41  ;;  %v2301_v55 = vmul.f32 %v6732_v6, %v2177_v42  ;;  %v2302_v5 = vmul.f32 %v9269_v4, %v2178_v38  ;;  %v9274_v19 = vld [vmem:[#allocation154_spill] sm:$0xff]  ;;  %v9276_v42 = vld [vmem:[#allocation63_spill] sm:$0xff]  ;;  %v9277_v4 = vld [vmem:[#allocation64_spill] sm:$0xff] }
 0x309   :  { %v2561_v47 = vsel %vm925_vm5, %v2560_v59, %v2559_v49  ;;  %v2303_v36 = vmul.f32 %v9270_v24, %v2179_v46  ;;  %v2304_v52 = vmul.f32 %v9271_v61, %v2180_v22  ;;  %v2305_v30 = vmul.f32 %v9272_v60, %v2181_v25  ;;  %v9275_v40 = vld [vmem:[#allocation62_spill] sm:$0xff]  ;;  %v9279_v49 = vld [vmem:[#allocation65_spill] sm:$0xff]  ;;  %v9281_v61 = vld [vmem:[#allocation67_spill] sm:$0xff] }
 0x30a   :  { %v2563_v44 = vsel %vm927_vm6, %v2562_v33, %v2561_v47  ;;  %v2306_v53 = vmul.f32 %v9273_v35, %v2182_v32  ;;  %v2307_v10 = vmul.f32 %v9274_v19, %v2183_v26  ;;  %v2365_v6 = vmul.f32 %v2301_v55, %v9275_v40  ;;  %v9280_v24 = vld [vmem:[#allocation66_spill] sm:$0xff]  ;;  %v9282_v35 = vld [vmem:[#allocation61_spill] sm:$0xff]  ;;  %v9283_v26 = vld [vmem:[#allocation68_spill] sm:$0xff] }
 0x30b   :  { %v2565_v41 = vsel %vm9132_vm7, %v2564_v57, %v2563_v44  ;;  %v2366_v38 = vmul.f32 %v2302_v5, %v9276_v42  ;;  %v2367_v59 = vmul.f32 %v2303_v36, %v9277_v4  ;;  %v2368_v22 = vmul.f32 %v2304_v52, %v9279_v49  ;;  %v9305_v42 = vld [vmem:[#allocation22_spill] sm:$0xff]  ;;  %v9306_v40 = vld [vmem:[#allocation25_spill] sm:$0xff] }
 0x30c   :  { %v2606_v46 = vsel %vm9278_vm13, %v2565_v41, 0.0  ;;  %v2369_v25 = vmul.f32 %v2305_v30, %v9280_v24  ;;  %v2370_v33 = vmul.f32 %v2306_v53, %v9281_v61  ;;  %v2364_v32 = vmul.f32 %v2300_v63, %v9282_v35  ;;  %v9289_v61 = vld [vmem:[#allocation147_spill] sm:$0xff] }
 0x30d   :  { %2607 = vadd.xlane.f32.xlu0 %v2606_v46  ;;  %v2371_v47 = vmul.f32 %v2307_v10, %v9283_v26  ;;  %v2510_v44 = vrot.slane %v2365_v6, 7  ;;  %v2512_v57 = vrot.slane %v2366_v38, 6  ;;  %v2514_v55 = vrot.slane %v2367_v59, 5  ;;  %v9284_v46 = vld [vmem:[#allocation141_spill] sm:$0xff] }
 0x30e   :  { %v2516_v60 = vrot.slane %v2368_v22, 4  ;;  %v2518_v5 = vrot.slane %v2369_v25, 3  ;;  %v2205_v36 = vrot.slane %v7005_v48, 1  ;;  %v2520_v41 = vrot.slane %v2370_v33, 2  ;;  %v9285_v25 = vld [vmem:[#allocation142_spill] sm:$0xff] }
 0x30f   :  { %v2511_v19 = vsel %vm917_vm1, %v2510_v44, %v2364_v32  ;;  %v2206_v52 = vrot.slane %v7005_v48, 2  ;;  %v2207_v30 = vrot.slane %v7005_v48, 3  ;;  %v2208_v63 = vrot.slane %v7005_v48, 4  ;;  %v9286_v44 = vld [vmem:[#allocation143_spill] sm:$0xff] }
 0x310   :  { %v2513_v53 = vsel %vm919_vm2, %v2512_v57, %v2511_v19  ;;  %v2209_v10 = vrot.slane %v7005_v48, 5  ;;  %v2210_v6 = vrot.slane %v7005_v48, 6  ;;  %v2211_v59 = vrot.slane %v7005_v48, 7  ;;  %v9287_v57 = vld [vmem:[#allocation145_spill] sm:$0xff] }
 0x311   :  { %v2515_v38 = vsel %vm921_vm3, %v2514_v55, %v2513_v53  ;;  %v2332_v22 = vmul.f32 %v7005_v48, %v9284_v46  ;;  %v2333_v33 = vmul.f32 %v9285_v25, %v2205_v36  ;;  %v2334_v18 = vmul.f32 %v9286_v44, %v2206_v52  ;;  %v9290_v53 = vld [vmem:[#allocation148_spill] sm:$0xff]  ;;  %v9291_v48 = vld [vmem:[#allocation149_spill] sm:$0xff]  ;;  %v9292_v36 = vld [vmem:[#allocation54_spill] sm:$0xff] }
 0x312   :  { %v2517_v32 = vsel %vm923_vm4, %v2516_v60, %v2515_v38  ;;  %v2335_v19 = vmul.f32 %v9287_v57, %v2207_v30  ;;  %v2336_v58 = vmul.f32 %v9288_v29, %v2208_v63  ;;  %v2522_v26 = vrot.slane %v2371_v47, 1  ;;  %v9293_v60 = vld [vmem:[#allocation55_spill] sm:$0xff]  ;;  %v9295_v30 = vld [vmem:[#allocation56_spill] sm:$0xff]  ;;  %v9296_v29 = vld [vmem:[#allocation57_spill] sm:$0xff] }
 0x313   :  { %v2519_v45 = vsel %vm925_vm5, %v2518_v5, %v2517_v32  ;;  %v2337_v55 = vmul.f32 %v9289_v61, %v2209_v10  ;;  %v2338_v24 = vmul.f32 %v9290_v53, %v2210_v6  ;;  %v2339_v46 = vmul.f32 %v9291_v48, %v2211_v59  ;;  %v9298_v5 = vld [vmem:[#allocation53_spill] sm:$0xff]  ;;  %v9299_v10 = vld [vmem:[#allocation58_spill] sm:$0xff] }
 0x314   :  { %v2521_v49 = vsel %vm927_vm6, %v2520_v41, %v2519_v45  ;;  %v2397_v25 = vmul.f32 %v2333_v33, %v9292_v36  ;;  %v2398_v38 = vmul.f32 %v2334_v18, %v9293_v60  ;;  %v2399_v44 = vmul.f32 %v2335_v19, %v9295_v30  ;;  %v9300_v45 = vld [vmem:[#allocation59_spill] sm:$0xff]  ;;  %v9301_v33 = vld [vmem:[#allocation60_spill] sm:$0xff] }
 0x315   :  { %v2523_v52 = vsel %vm9294_vm14, %v2522_v26, %v2521_v49  ;;  %v2400_v63 = vmul.f32 %v2336_v58, %v9296_v29  ;;  %v2396_v61 = vmul.f32 %v2332_v22, %v9298_v5  ;;  %v2401_v6 = vmul.f32 %v2337_v55, %v9299_v10 }
 0x316   :  { %v2597_v47 = vsel %vm9297_vm15, %v2523_v52, 0.0  ;;  %v2566_v32 = vrot.slane %v2397_v25, 7  ;;  %v2402_v41 = vmul.f32 %v2338_v24, %v9300_v45  ;;  %v2568_v59 = vrot.slane %v2398_v38, 6 }
 0x317   :  { %2598 = vadd.xlane.f32.xlu1 %v2597_v47  ;;  %v2403_v57 = vmul.f32 %v2339_v46, %v9301_v33  ;;  %v2570_v49 = vrot.slane %v2399_v44, 5  ;;  %v2572_v19 = vrot.slane %v2400_v63, 4  ;;  %v2574_v53 = vrot.slane %v2401_v6, 3 }
 0x318   :  { %v2567_v18 = vsel %vm917_vm1, %v2566_v32, %v2396_v61  ;;  %v2576_v48 = vrot.slane %v2402_v41, 2 }
 0x319   :  { %v2569_v26 = vsel %vm919_vm2, %v2568_v59, %v2567_v18  ;;  %v2578_v25 = vrot.slane %v2403_v57, 1 }
 0x31a   :  { %v2571_v58 = vsel %vm921_vm3, %v2570_v49, %v2569_v26 }
 0x31b   :  { %v2573_v22 = vsel %vm923_vm4, %v2572_v19, %v2571_v58 }
 0x31c   :  { %v2575_v55 = vsel %vm925_vm5, %v2574_v53, %v2573_v22 }
 0x31d   :  { %v2577_v24 = vsel %vm927_vm6, %v2576_v48, %v2575_v55 }
 0x31e   :  { %v2579_v38 = vsel %vm9302_vm8, %v2578_v25, %v2577_v24 }
 0x31f   :  { %v2609_v46 = vsel %vm9303_vm9, %v2579_v38, 0.0 }
 0x320   :  { %2610 = vadd.xlane.f32.xlu2 %v2609_v46 }
 0x350   :  { %v2590_v52 = vpop.xlane.xlu1 %2589 }
 0x351   :  { %v2612_v44 = vmul.f32 %v2590_v52, %v2590_v52 }
 0x353   :  { %v2652_v47 = vadd.f32 1e-09, %v2612_v44  ;;  %v2628_v26 = vadd.f32 1.0, %v2612_v44 }
 0x355   :  { %4578 = vrsqrt.f32 %v2652_v47  ;;  %vm2666_vm12 = vweird.f32 %v2652_v47 }
 0x35a   :  { %v2593_v63 = vpop.xlane.xlu2 %2592 }
 0x35b   :  { %v2613_v61 = vmul.f32 %v2593_v63, %v2593_v63  ;;  %v4579_v32 = vpop.eup %4578 }
 0x35c   :  { %v2661_v41 = vmul.f32 %v4579_v32, %v2652_v47  ;;  %vm2667_vm10 = vweird.f32 %v4579_v32 }
 0x35d   :  { %v2653_v6 = vadd.f32 1e-09, %v2613_v61  ;;  %v2629_v58 = vadd.f32 1.0, %v2613_v61  ;;  %vm2668_vm0 = vmor %vm2666_vm12, %vm2667_vm10 }
 0x35e   :  { %v2662_v18 = vmul.f32 %v4579_v32, %v2661_v41 }
 0x35f   :  { %4580 = vrsqrt.f32 %v2653_v6  ;;  %vm2676_vm7 = vweird.f32 %v2653_v6 }
 0x360   :  { %v2663_v19 = vmul.f32 0.5, %v2662_v18  ;;  %4582 = vrcp.f32 %v2628_v26  ;;  %v2620_v26 = vmul.f32 %v2612_v44, %v2590_v52 }
 0x361   :  { %4584 = vrcp.f32 %v2629_v58  ;;  %v2621_v58 = vmul.f32 %v2613_v61, %v2593_v63 }
 0x362   :  { %v2664_v24 = vsub.f32 1.5, %v2663_v19 }
 0x363   :  { %v2602_v48 = vpop.xlane.xlu0 %2601 }
 0x364   :  { %v2616_v25 = vmul.f32 %v2602_v48, %v2602_v48  ;;  %v2665_v10 = vmul.f32 %v4579_v32, %v2664_v24 }
 0x365   :  { %v4581_v59 = vpop.eup %4580 }
 0x366   :  { %v2671_v57 = vmul.f32 %v4581_v59, %v2653_v6  ;;  %v7180_v45 = vadd.f32 1e-09, %v2616_v25  ;;  %v2632_v41 = vadd.f32 1.0, %v2616_v25  ;;  %vm2677_vm11 = vweird.f32 %v4581_v59 }
 0x367   :  { %v2669_v19 = vsel %vm2668_vm0, %v4579_v32, %v2665_v10  ;;  %vm2678_vm13 = vmor %vm2676_vm7, %vm2677_vm11  ;;  %v2624_v61 = vmul.f32 %v2616_v25, %v2602_v48 }
 0x368   :  { %v2672_v49 = vmul.f32 %v4581_v59, %v2671_v57  ;;  %v4583_v57 = vpop.eup %4582  ;;  %vm2706_vm8 = vweird.f32 %v7180_v45 }
 0x369   :  { %v2644_v24 = vmul.f32 %v4583_v57, %v2620_v26 }
 0x36a   :  { %v2673_v53 = vmul.f32 0.5, %v2672_v49  ;;  %v4585_v49 = vpop.eup %4584 }
 0x36b   :  { %v2740_v36 = vmul.f32 %v2669_v19, %v2644_v24 }
 0x36c   :  { %v2674_v38 = vsub.f32 1.5, %v2673_v53 }
 0x36d   :  { %v2756_v48 = vrot.slane %v2740_v36, 1  ;;  %v2758_v57 = vrot.slane %v2740_v36, 3 }
 0x36e   :  { %v2605_v22 = vpop.xlane.xlu1 %2604  ;;  %v2675_v18 = vmul.f32 %v4581_v59, %v2674_v38  ;;  %v2645_v38 = vmul.f32 %v4585_v49, %v2621_v58  ;;  %v2759_v49 = vrot.slane %v2740_v36, 4  ;;  %v2760_v58 = vrot.slane %v2740_v36, 5 }
 0x36f   :  { %v2617_v55 = vmul.f32 %v2605_v22, %v2605_v22 }
 0x370   :  { %v2679_v29 = vsel %vm2678_vm13, %v4581_v59, %v2675_v18  ;;  %v2880_v35 = vmul.f32 %v2759_v49, %v9306_v40 }
 0x371   :  { %v2633_v46 = vadd.f32 1.0, %v2617_v55  ;;  %v7178_v33 = vadd.f32 1e-09, %v2617_v55  ;;  %v7190_v44 = vmul.f32 %v2679_v29, %v2645_v38  ;;  %v2625_v10 = vmul.f32 %v2617_v55, %v2605_v22 }
 0x372   :  { %v2757_v55 = vrot.slane %v2740_v36, 2  ;;  %v2761_v38 = vrot.slane %v2740_v36, 6 }
 0x373   :  { %4586 = vrsqrt.f32 %v7178_v33  ;;  %vm2716_vm14 = vweird.f32 %v7178_v33 }
 0x374   :  { %4588 = vrcp.f32 %v2633_v46 }
 0x375   :  { %4590 = vrsqrt.f32 %v7180_v45 }
 0x376   :  { %4592 = vrcp.f32 %v2632_v41 }
 0x377   :  { %v2596_v53 = vpop.xlane.xlu2 %2595 }
 0x378   :  { %v2614_v30 = vmul.f32 %v2596_v53, %v2596_v53 }
 0x379   :  { %v7184_v60 = vpop.eup %4586 }
 0x37a   :  { %v4589_v46 = vpop.eup %4588  ;;  %v2711_v47 = vmul.f32 %v7184_v60, %v7178_v33  ;;  %v2630_v5 = vadd.f32 1.0, %v2614_v30  ;;  %v7192_v63 = vadd.f32 1e-09, %v2614_v30  ;;  %vm2717_vm15 = vweird.f32 %v7184_v60 }
 0x37b   :  { %v7188_v52 = vpop.eup %4590  ;;  %v2649_v41 = vmul.f32 %v4589_v46, %v2625_v10  ;;  %v2622_v25 = vmul.f32 %v2614_v30, %v2596_v53  ;;  %v2762_v46 = vrot.slane %v2740_v36, 7  ;;  %v2877_v30 = vmul.f32 %v2756_v48, %v9305_v42  ;;  %vm7217_vm10 = vmor %vm2716_vm14, %vm2717_vm15 }
 0x37c   :  { %v4593_v6 = vpop.eup %4592  ;;  %v2712_v32 = vmul.f32 %v7184_v60, %v2711_v47  ;;  %4594 = vrcp.f32 %v2630_v5  ;;  %v2701_v59 = vmul.f32 %v7188_v52, %v7180_v45  ;;  %vm2707_vm9 = vweird.f32 %v7188_v52  ;;  %v9304_v47 = vld [vmem:[#allocation21_spill] sm:$0xff] }
 0x37d   :  { %4596 = vrsqrt.f32 %v7192_v63  ;;  %v2648_v18 = vmul.f32 %v4593_v6, %v2624_v61  ;;  %v2876_v10 = vmul.f32 %v2740_v36, %v9304_v47  ;;  %v2878_v53 = vmul.f32 %v2757_v55, %v9207_v43  ;;  %vm7238_vm0 = vmor %vm2706_vm8, %vm2707_vm9 }
 0x37e   :  { %v2713_v29 = vmul.f32 0.5, %v2712_v32  ;;  %v2702_v22 = vmul.f32 %v7188_v52, %v2701_v59  ;;  %vm2686_vm11 = vweird.f32 %v7192_v63  ;;  %v2764_v42 = vrot.slane %v7190_v44, 2 }
 0x37f   :  { %v2766_v47 = vrot.slane %v7190_v44, 4  ;;  %vm9327_vm15 = vcmask 1047559   ;;  %vm9328_vm8 = vcmask 64512  }
 0x380   :  { %v2714_v5 = vsub.f32 1.5, %v2713_v29  ;;  %v2703_v26 = vmul.f32 0.5, %v2702_v22  ;;  %v2608_v19 = vpop.xlane.xlu0 %2607  ;;  %v2879_v22 = vmul.f32 %v2758_v57, %v9208_v2  ;;  %v2881_v57 = vmul.f32 %v2760_v58, %v9210_v0  ;;  %v9312_v58 = vld [vmem:[#allocation30_spill] sm:$0xff]  ;;  %v9317_v0 = vld [vmem:[#allocation80_spill] sm:$0xff] }
 0x381   :  { %v2618_v24 = vmul.f32 %v2608_v19, %v2608_v19  ;;  %v7260_v2 = vadd.f32 %v2880_v35, %v9317_v0 }
 0x382   :  { %v4595_v32 = vpop.eup %4594  ;;  %v2715_v59 = vmul.f32 %v7184_v60, %v2714_v5  ;;  %v2704_v4 = vsub.f32 1.5, %v2703_v26  ;;  %v9309_v26 = vld [vmem:[#allocation27_spill] sm:$0xff] }
 0x383   :  { %v7207_v61 = vpop.eup %4596  ;;  %v2634_v6 = vadd.f32 1.0, %v2618_v24  ;;  %v7209_v29 = vadd.f32 1e-09, %v2618_v24  ;;  %v7221_v48 = vmul.f32 %v4595_v32, %v2622_v25  ;;  %v2626_v33 = vmul.f32 %v2618_v24, %v2608_v19  ;;  %v9313_v24 = vld [vmem:[#allocation81_spill] sm:$0xff]  ;;  %9318 = vst [vmem:[#allocation133_spill] sm:$0xff] %v7260_v2 }
 0x384   :  { %v2681_v55 = vmul.f32 %v7207_v61, %v7192_v63  ;;  %v2705_v5 = vmul.f32 %v7188_v52, %v2704_v4  ;;  %v2719_v49 = vsel %vm7217_vm10, %v7184_v60, %v2715_v59  ;;  %v2882_v40 = vmul.f32 %v2761_v38, %v9309_v26  ;;  %v9314_v32 = vld [vmem:[#allocation77_spill] sm:$0xff] }
 0x385   :  { %4598 = vrcp.f32 %v2634_v6  ;;  %vm2687_vm12 = vweird.f32 %v7207_v61  ;;  %v2883_v60 = vmul.f32 %v2762_v46, %v9312_v58  ;;  %v7248_v38 = vadd.f32 %v2876_v10, %v9313_v24  ;;  %v9315_v6 = vld [vmem:[#allocation78_spill] sm:$0xff]  ;;  %v9323_v10 = vld [vmem:[#allocation84_spill] sm:$0xff] }
 0x386   :  { %v2682_v25 = vmul.f32 %v7207_v61, %v2681_v55  ;;  %4600 = vrsqrt.f32 %v7209_v29  ;;  %v2709_v19 = vsel %vm7238_vm0, %v7188_v52, %v2705_v5  ;;  %v7251_v59 = vadd.f32 %v2877_v30, %v9314_v32  ;;  %v9316_v55 = vld [vmem:[#allocation79_spill] sm:$0xff]  ;;  %v9319_v46 = vld [vmem:[#allocation82_spill] sm:$0xff]  ;;  %vm7290_vm7 = vmor %vm2686_vm11, %vm2687_vm12 }
 0x387   :  { %v7254_v45 = vadd.f32 %v2878_v53, %v9315_v6  ;;  %v7257_v26 = vadd.f32 %v2879_v22, %v9316_v55  ;;  %v7263_v58 = vadd.f32 %v2881_v57, %v9319_v46  ;;  %v9321_v52 = vld [vmem:[#allocation83_spill] sm:$0xff]  ;;  %v7269_v4 = vadd.f32 %v2883_v60, %v9323_v10 }
 0x388   :  { %v2683_v36 = vmul.f32 0.5, %v2682_v25  ;;  %v7266_v5 = vadd.f32 %v2882_v40, %v9321_v52  ;;  %v3068_v30 = vrot.slane %v7251_v59, 7  ;;  %v7273_v25 = vmul.f32 %v2719_v49, %v2649_v41 }
 0x389   :  { %9320 = vst [vmem:[#allocation137_spill] sm:$0xff] %v7263_v58  ;;  %v3070_v53 = vrot.slane %v7254_v45, 6  ;;  %v7275_v24 = vmul.f32 %v2709_v19, %v2648_v18  ;;  %v3072_v35 = vrot.slane %v7257_v26, 5  ;;  %v3074_v60 = vrot.slane %v7260_v2, 4 }
 0x38a   :  { %9322 = vst [vmem:[#allocation138_spill] sm:$0xff] %v7266_v5  ;;  %v2684_v22 = vsub.f32 1.5, %v2683_v36  ;;  %v2599_v0 = vpop.xlane.xlu1 %2598  ;;  %v3069_v40 = vsel %vm917_vm1, %v3068_v30, %v7248_v38  ;;  %v3076_v6 = vrot.slane %v7263_v58, 3  ;;  %v3078_v18 = vrot.slane %v7266_v5, 2  ;;  %v9331_v58 = vld [vmem:[#allocation20_spill] sm:$0xff] }
 0x38b   :  { %9324 = vst [vmem:[#allocation139_spill] sm:$0xff] %v7269_v4  ;;  %v4599_v57 = vpop.eup %4598  ;;  %v2615_v32 = vmul.f32 %v2599_v0, %v2599_v0  ;;  %v3071_v41 = vsel %vm919_vm2, %v3070_v53, %v3069_v40  ;;  %v3080_v49 = vrot.slane %v7269_v4, 1  ;;  %vm2726_vm13 = vweird.f32 %v7209_v29 }
 0x38c   :  { %v4601_v55 = vpop.eup %4600  ;;  %v2685_v46 = vmul.f32 %v7207_v61, %v2684_v22  ;;  %v2650_v10 = vmul.f32 %v4599_v57, %v2626_v33  ;;  %v3073_v40 = vsel %vm921_vm3, %v3072_v35, %v3071_v41  ;;  %v2763_v63 = vrot.slane %v7190_v44, 1 }
 0x38d   :  { %v2631_v36 = vadd.f32 1.0, %v2615_v32  ;;  %v7294_v52 = vadd.f32 1e-09, %v2615_v32  ;;  %v2721_v30 = vmul.f32 %v4601_v55, %v7209_v29  ;;  %v2623_v22 = vmul.f32 %v2615_v32, %v2599_v0 }
 0x38e   :  { %v2689_v53 = vsel %vm7290_vm7, %v7207_v61, %v2685_v46  ;;  %vm2727_vm14 = vweird.f32 %v4601_v55  ;;  %v3075_v33 = vsel %vm923_vm4, %v3074_v60, %v3073_v40  ;;  %v2765_v57 = vrot.slane %v7190_v44, 3 }
 0x38f   :  { %4602 = vrcp.f32 %v2631_v36  ;;  %v2722_v43 = vmul.f32 %v4601_v55, %v2721_v30  ;;  %v3077_v61 = vsel %vm925_vm5, %v3076_v6, %v3075_v33  ;;  %v2767_v0 = vrot.slane %v7190_v44, 5  ;;  %vm2728_vm9 = vmor %vm2726_vm13, %vm2727_vm14 }
 0x390   :  { %4604 = vrsqrt.f32 %v7294_v52  ;;  %v2768_v35 = vrot.slane %v7190_v44, 6  ;;  %v7312_v32 = vmul.f32 %v2689_v53, %v7221_v48  ;;  %v3079_v46 = vsel %vm927_vm6, %v3078_v18, %v3077_v61  ;;  %v9329_v53 = vld [vmem:[#allocation17_spill] sm:$0xff]  ;;  %vm9341_vm13 = vmmov %vm9327_vm15 }
 0x391   :  { %v2723_v19 = vmul.f32 0.5, %v2722_v43  ;;  %v2769_v41 = vrot.slane %v7190_v44, 7  ;;  %v2884_v60 = vmul.f32 %v7190_v44, %v9215_v51  ;;  %v3081_v43 = vsel %vm9327_vm15, %v3080_v49, %v3079_v46  ;;  %v9330_v51 = vld [vmem:[#allocation19_spill] sm:$0xff]  ;;  %vm9342_vm14 = vmmov %vm9328_vm8 }
 0x392   :  { %v2885_v6 = vmul.f32 %v2763_v63, %v9216_v7  ;;  %v2886_v40 = vmul.f32 %v2764_v42, %v9217_v8  ;;  %v3188_v4 = vsel %vm9328_vm8, %v3081_v43, -inf  ;;  %v2887_v48 = vmul.f32 %v2765_v57, %v9218_v3  ;;  %v9332_v57 = vld [vmem:[#allocation75_spill] sm:$0xff]  ;;  %v9334_v43 = vld [vmem:[#allocation70_spill] sm:$0xff]  ;;  %vm9356_vm8 = vmmov %vm9341_vm13 }
 0x393   :  { %v2611_v36 = vpop.xlane.xlu2 %2610  ;;  %v2724_v30 = vsub.f32 1.5, %v2723_v19  ;;  %v2888_v18 = vmul.f32 %v2766_v47, %v9329_v53  ;;  %3189 = vmax.xlane.f32.xlu0 %v3188_v4  ;;  %v2889_v44 = vmul.f32 %v2767_v0, %v9221_v15  ;;  %v2890_v19 = vmul.f32 %v2768_v35, %v9330_v51 }
 0x394   :  { %v2619_v33 = vmul.f32 %v2611_v36, %v2611_v36  ;;  %v2891_v49 = vmul.f32 %v2769_v41, %v9331_v58  ;;  %v7333_v47 = vadd.f32 %v2884_v60, %v9332_v57  ;;  %vm2696_vm10 = vweird.f32 %v7294_v52  ;;  %v9335_v60 = vld [vmem:[#allocation71_spill] sm:$0xff]  ;;  %v9336_v58 = vld [vmem:[#allocation72_spill] sm:$0xff] }
 0x395   :  { %v4603_v61 = vpop.eup %4602  ;;  %v2725_v5 = vmul.f32 %v4601_v55, %v2724_v30  ;;  %v9333_v30 = vld [vmem:[#allocation69_spill] sm:$0xff]  ;;  %v7347_v57 = vadd.f32 %v2887_v48, %v9335_v60  ;;  %v7350_v51 = vadd.f32 %v2888_v18, %v9336_v58 }
 0x396   :  { %v4605_v46 = vpop.eup %4604  ;;  %v2647_v63 = vmul.f32 %v4603_v61, %v2623_v22  ;;  %v2635_v7 = vadd.f32 1.0, %v2619_v33  ;;  %v7327_v42 = vadd.f32 1e-09, %v2619_v33  ;;  %v2627_v0 = vmul.f32 %v2619_v33, %v2611_v36  ;;  %v9338_v36 = vld [vmem:[#allocation74_spill] sm:$0xff] }
 0x397   :  { %v2691_v4 = vmul.f32 %v4605_v46, %v7294_v52  ;;  %v2729_v35 = vsel %vm2728_vm9, %v4601_v55, %v2725_v5  ;;  %v7338_v41 = vadd.f32 %v2885_v6, %v9333_v30  ;;  %vm2697_vm11 = vweird.f32 %v4605_v46  ;;  %v9337_v5 = vld [vmem:[#allocation73_spill] sm:$0xff]  ;;  %vm9360_vm9 = vmmov %vm9342_vm14 }
 0x398   :  { %4606 = vrcp.f32 %v2635_v7  ;;  %v7340_v22 = vmul.f32 %v2729_v35, %v2650_v10  ;;  %v7343_v61 = vadd.f32 %v2886_v40, %v9334_v43  ;;  %v7353_v55 = vadd.f32 %v2889_v44, %v9337_v5  ;;  %v9339_v7 = vld [vmem:[#allocation76_spill] sm:$0xff]  ;;  %vm2698_vm12 = vmor %vm2696_vm10, %vm2697_vm11 }
 0x399   :  { %v2692_v29 = vmul.f32 %v4605_v46, %v2691_v4  ;;  %4608 = vrsqrt.f32 %v7327_v42  ;;  %v7356_v6 = vadd.f32 %v2890_v19, %v9338_v36  ;;  %v7359_v10 = vadd.f32 %v2891_v49, %v9339_v7  ;;  %vm9371_vm10 = vmmov %vm9356_vm8 }
 0x39a   :  { %v3082_v40 = vrot.slane %v7338_v41, 7  ;;  %v3084_v4 = vrot.slane %v7343_v61, 6  ;;  %v3086_v48 = vrot.slane %v7347_v57, 5  ;;  %v3088_v35 = vrot.slane %v7350_v51, 4  ;;  %vm9376_vm11 = vmmov %vm9360_vm9 }
 0x39b   :  { %9340 = vst [vmem:[#allocation140_spill] sm:$0xff] %v7359_v10  ;;  %v2693_v33 = vmul.f32 0.5, %v2692_v29  ;;  %v3090_v18 = vrot.slane %v7353_v55, 3  ;;  %v3092_v44 = vrot.slane %v7356_v6, 2  ;;  %v3094_v19 = vrot.slane %v7359_v10, 1 }
 0x39c   :  { %v3083_v58 = vsel %vm917_vm1, %v3082_v40, %v7333_v47  ;;  %v2791_v43 = vrot.slane %v7273_v25, 1  ;;  %v2792_v29 = vrot.slane %v7273_v25, 2  ;;  %v2793_v36 = vrot.slane %v7273_v25, 3 }
 0x39d   :  { %v2694_v49 = vsub.f32 1.5, %v2693_v33  ;;  %v3085_v30 = vsel %vm919_vm2, %v3084_v4, %v3083_v58  ;;  %v2794_v7 = vrot.slane %v7273_v25, 4  ;;  %v2795_v40 = vrot.slane %v7273_v25, 5 }
 0x39e   :  { %v4607_v60 = vpop.eup %4606  ;;  %v3087_v5 = vsel %vm921_vm3, %v3086_v48, %v3085_v30  ;;  %v2796_v4 = vrot.slane %v7273_v25, 6  ;;  %vm2736_vm0 = vweird.f32 %v7327_v42  ;;  %v2797_v30 = vrot.slane %v7273_v25, 7 }
 0x39f   :  { %v4609_v15 = vpop.eup %4608  ;;  %v2695_v53 = vmul.f32 %v4605_v46, %v2694_v49  ;;  %v2651_v3 = vmul.f32 %v4607_v60, %v2627_v0  ;;  %v3089_v33 = vsel %vm923_vm4, %v3088_v35, %v3087_v5  ;;  %v2916_v35 = vmul.f32 %v7273_v25, %v9238_v23  ;;  %v9381_v23 = vld [vmem:[#allocation61_spill] sm:$0xff] }
 0x3a0   :  { %v2731_v58 = vmul.f32 %v4609_v15, %v7327_v42  ;;  %vm2737_vm7 = vweird.f32 %v4609_v15  ;;  %v3091_v48 = vsel %vm925_vm5, %v3090_v18, %v3089_v33  ;;  %v2917_v49 = vmul.f32 %v2791_v43, %v9239_v62 }
 0x3a1   :  { %v2699_v8 = vsel %vm2698_vm12, %v4605_v46, %v2695_v53  ;;  %v3093_v0 = vsel %vm927_vm6, %v3092_v44, %v3091_v48  ;;  %v2918_v2 = vmul.f32 %v2792_v29, %v9240_v54  ;;  %v2919_v18 = vmul.f32 %v2793_v36, %v9242_v50  ;;  %v9345_v29 = vld [vmem:[#allocation102_spill] sm:$0xff]  ;;  %v9346_v36 = vld [vmem:[#allocation103_spill] sm:$0xff]  ;;  %vm2738_vm15 = vmor %vm2736_vm0, %vm2737_vm7 }
 0x3a2   :  { %v7390_v60 = vmul.f32 %v2699_v8, %v2647_v63  ;;  %v2732_v52 = vmul.f32 %v4609_v15, %v2731_v58  ;;  %v3095_v5 = vsel %vm9341_vm13, %v3094_v19, %v3093_v0  ;;  %v2920_v53 = vmul.f32 %v2794_v7, %v9243_v11  ;;  %v9343_v63 = vld [vmem:[#allocation107_spill] sm:$0xff]  ;;  %v9344_v19 = vld [vmem:[#allocation101_spill] sm:$0xff]  ;;  %v9347_v7 = vld [vmem:[#allocation104_spill] sm:$0xff] }
 0x3a3   :  { %v3191_v10 = vsel %vm9342_vm14, %v3095_v5, -inf  ;;  %v2921_v46 = vmul.f32 %v2795_v40, %v9244_v12  ;;  %v2922_v25 = vmul.f32 %v2796_v4, %v9245_v20  ;;  %v2923_v8 = vmul.f32 %v2797_v30, %v9246_v1  ;;  %v9349_v0 = vld [vmem:[#allocation105_spill] sm:$0xff]  ;;  %v9351_v30 = vld [vmem:[#allocation106_spill] sm:$0xff]  ;;  %v9368_v54 = vld [vmem:[#allocation99_spill] sm:$0xff] }
 0x3a4   :  { %v2733_v44 = vmul.f32 0.5, %v2732_v52  ;;  %3192 = vmax.xlane.f32.xlu1 %v3191_v10  ;;  %v7401_v43 = vadd.f32 %v2916_v35, %v9343_v63  ;;  %v7404_v33 = vadd.f32 %v2917_v49, %v9344_v19  ;;  %v7407_v58 = vadd.f32 %v2918_v2, %v9345_v29  ;;  %v9353_v35 = vld [vmem:[#allocation108_spill] sm:$0xff]  ;;  %v9367_v11 = vld [vmem:[#allocation46_spill] sm:$0xff]  ;;  %vm9390_vm12 = vmmov %vm9356_vm8 }
 0x3a5   :  { %v7410_v48 = vadd.f32 %v2919_v18, %v9346_v36  ;;  %v7413_v40 = vadd.f32 %v2920_v53, %v9347_v7  ;;  %v7416_v4 = vadd.f32 %v2921_v46, %v9349_v0  ;;  %v7419_v52 = vadd.f32 %v2922_v25, %v9351_v30  ;;  %vm9394_vm0 = vmmov %vm9360_vm9 }
 0x3a6   :  { %v2734_v10 = vsub.f32 1.5, %v2733_v44  ;;  %v7422_v5 = vadd.f32 %v2923_v8, %v9353_v35  ;;  %v3138_v49 = vrot.slane %v7404_v33, 7  ;;  %v3140_v2 = vrot.slane %v7407_v58, 6  ;;  %vm9415_vm7 = vmmov %vm9356_vm8 }
 0x3a7   :  { %9348 = vst [vmem:[#allocation134_spill] sm:$0xff] %v7413_v40  ;;  %v3142_v18 = vrot.slane %v7410_v48, 5  ;;  %v3144_v63 = vrot.slane %v7413_v40, 4  ;;  %v3146_v44 = vrot.slane %v7416_v4, 3  ;;  %v3148_v46 = vrot.slane %v7419_v52, 2  ;;  %v9389_v40 = vld [vmem:[#allocation120_spill] sm:$0xff]  ;;  %vm9422_vm13 = vmmov %vm9394_vm0 }
 0x3a8   :  { %9350 = vst [vmem:[#allocation135_spill] sm:$0xff] %v7416_v4  ;;  %v2735_v53 = vmul.f32 %v4609_v15, %v2734_v10  ;;  %v3150_v19 = vrot.slane %v7422_v5, 1  ;;  %v3139_v25 = vsel %vm917_vm1, %v3138_v49, %v7401_v43  ;;  %v2770_v8 = vrot.slane %v7312_v32, 1  ;;  %vm9435_vm14 = vmmov %vm9415_vm7 }
 0x3a9   :  { %9352 = vst [vmem:[#allocation136_spill] sm:$0xff] %v7419_v52  ;;  %v2771_v29 = vrot.slane %v7312_v32, 2  ;;  %v2772_v36 = vrot.slane %v7312_v32, 3  ;;  %v3141_v10 = vsel %vm919_vm2, %v3140_v2, %v3139_v25  ;;  %v2773_v0 = vrot.slane %v7312_v32, 4  ;;  %v9387_v52 = vld [vmem:[#allocation67_spill] sm:$0xff] }
 0x3aa   :  { %9354 = vst [vmem:[#allocation144_spill] sm:$0xff] %v7422_v5  ;;  %v2739_v7 = vsel %vm2738_vm15, %v4609_v15, %v2735_v53  ;;  %v2774_v30 = vrot.slane %v7312_v32, 5  ;;  %v3143_v42 = vsel %vm921_vm3, %v3142_v18, %v3141_v10  ;;  %v2775_v1 = vrot.slane %v7312_v32, 6  ;;  %vm9439_vm15 = vmmov %vm9394_vm0 }
 0x3ab   :  { %v7442_v35 = vmul.f32 %v2739_v7, %v2651_v3  ;;  %v2776_v49 = vrot.slane %v7312_v32, 7  ;;  %v3145_v20 = vsel %vm923_vm4, %v3144_v63, %v3143_v42  ;;  %v2892_v12 = vmul.f32 %v7312_v32, %v9250_v17  ;;  %v9355_v42 = vld [vmem:[#allocation89_spill] sm:$0xff] }
 0x3ac   :  { %v2893_v15 = vmul.f32 %v2770_v8, %v9252_v28  ;;  %v2894_v2 = vmul.f32 %v2771_v29, %v9253_v14  ;;  %v3147_v53 = vsel %vm925_vm5, %v3146_v44, %v3145_v20  ;;  %v2895_v3 = vmul.f32 %v2772_v36, %v9254_v27  ;;  %v9357_v29 = vld [vmem:[#allocation85_spill] sm:$0xff]  ;;  %v9358_v20 = vld [vmem:[#allocation86_spill] sm:$0xff]  ;;  %v9359_v36 = vld [vmem:[#allocation87_spill] sm:$0xff] }
 0x3ad   :  { %v2896_v25 = vmul.f32 %v2773_v0, %v9256_v56  ;;  %v2897_v18 = vmul.f32 %v2774_v30, %v9257_v37  ;;  %v3149_v7 = vsel %vm927_vm6, %v3148_v46, %v3147_v53  ;;  %v2898_v10 = vmul.f32 %v2775_v1, %v9258_v13  ;;  %v9361_v30 = vld [vmem:[#allocation88_spill] sm:$0xff] }
 0x3ae   :  { %v2899_v63 = vmul.f32 %v2776_v49, %v9259_v9  ;;  %v7460_v32 = vadd.f32 %v2892_v12, %v9355_v42  ;;  %v3151_v8 = vsel %vm9356_vm8, %v3150_v19, %v3149_v7  ;;  %v7464_v14 = vadd.f32 %v2893_v15, %v9357_v29  ;;  %v9362_v49 = vld [vmem:[#allocation90_spill] sm:$0xff]  ;;  %v9363_v12 = vld [vmem:[#allocation91_spill] sm:$0xff]  ;;  %v9364_v19 = vld [vmem:[#allocation92_spill] sm:$0xff] }
 0x3af   :  { %v7467_v44 = vadd.f32 %v2894_v2, %v9358_v20  ;;  %v7470_v0 = vadd.f32 %v2895_v3, %v9359_v36  ;;  %v3203_v46 = vsel %vm9360_vm9, %v3151_v8, -inf  ;;  %v7474_v1 = vadd.f32 %v2896_v25, %v9361_v30  ;;  %v9365_v28 = vld [vmem:[#allocation44_spill] sm:$0xff]  ;;  %vm9445_vm8 = vmmov %vm9415_vm7 }
 0x3b0   :  { %v7477_v53 = vadd.f32 %v2897_v18, %v9362_v49  ;;  %v7480_v42 = vadd.f32 %v2898_v10, %v9363_v12  ;;  %3204 = vmax.xlane.f32.xlu0 %v3203_v46  ;;  %v7483_v15 = vadd.f32 %v2899_v63, %v9364_v19  ;;  %v3096_v2 = vrot.slane %v7464_v14, 7  ;;  %vm9446_vm9 = vmmov %vm9394_vm0 }
 0x3b1   :  { %v3098_v3 = vrot.slane %v7467_v44, 6  ;;  %v3100_v7 = vrot.slane %v7470_v0, 5  ;;  %v3102_v8 = vrot.slane %v7474_v1, 4  ;;  %v2784_v29 = vrot.slane %v7275_v24, 1 }
 0x3b2   :  { %v3104_v25 = vrot.slane %v7477_v53, 3  ;;  %v3106_v18 = vrot.slane %v7480_v42, 2  ;;  %v3097_v10 = vsel %vm917_vm1, %v3096_v2, %v7460_v32  ;;  %v3108_v63 = vrot.slane %v7483_v15, 1 }
 0x3b3   :  { %v2785_v20 = vrot.slane %v7275_v24, 2  ;;  %v2786_v36 = vrot.slane %v7275_v24, 3  ;;  %v3099_v46 = vsel %vm919_vm2, %v3098_v3, %v3097_v10  ;;  %v2787_v30 = vrot.slane %v7275_v24, 4 }
 0x3b4   :  { %v2788_v49 = vrot.slane %v7275_v24, 5  ;;  %v2789_v12 = vrot.slane %v7275_v24, 6  ;;  %v3101_v19 = vsel %vm921_vm3, %v3100_v7, %v3099_v46  ;;  %v2790_v9 = vrot.slane %v7275_v24, 7  ;;  %v9366_v7 = vld [vmem:[#allocation45_spill] sm:$0xff] }
 0x3b5   :  { %v2908_v2 = vmul.f32 %v7275_v24, %v9226_v31  ;;  %v2909_v13 = vmul.f32 %v2784_v29, %v9227_v39  ;;  %v3103_v37 = vsel %vm923_vm4, %v3102_v8, %v3101_v19  ;;  %v2910_v56 = vmul.f32 %v2785_v20, %v9228_v16  ;;  %v9369_v8 = vld [vmem:[#allocation93_spill] sm:$0xff]  ;;  %v9370_v20 = vld [vmem:[#allocation94_spill] sm:$0xff] }
 0x3b6   :  { %v2911_v3 = vmul.f32 %v2786_v36, %v9230_v21  ;;  %v2912_v10 = vmul.f32 %v2787_v30, %v9231_v34  ;;  %v3105_v27 = vsel %vm925_vm5, %v3104_v25, %v3103_v37  ;;  %v2913_v17 = vmul.f32 %v2788_v49, %v9365_v28  ;;  %v9372_v37 = vld [vmem:[#allocation95_spill] sm:$0xff]  ;;  %v9373_v49 = vld [vmem:[#allocation96_spill] sm:$0xff]  ;;  %v9386_v39 = vld [vmem:[#allocation66_spill] sm:$0xff] }
 0x3b7   :  { %v2914_v46 = vmul.f32 %v2789_v12, %v9366_v7  ;;  %v2915_v50 = vmul.f32 %v2790_v9, %v9367_v11  ;;  %v3107_v24 = vsel %vm927_vm6, %v3106_v18, %v3105_v27  ;;  %v7516_v29 = vadd.f32 %v2908_v2, %v9368_v54  ;;  %v9374_v9 = vld [vmem:[#allocation97_spill] sm:$0xff]  ;;  %v9377_v27 = vld [vmem:[#allocation98_spill] sm:$0xff]  ;;  %v9383_v7 = vld [vmem:[#allocation63_spill] sm:$0xff] }
 0x3b8   :  { %v7519_v19 = vadd.f32 %v2909_v13, %v9369_v8  ;;  %v7522_v36 = vadd.f32 %v2910_v56, %v9370_v20  ;;  %v3109_v30 = vsel %vm9371_vm10, %v3108_v63, %v3107_v24  ;;  %v7526_v25 = vadd.f32 %v2911_v3, %v9372_v37  ;;  %v9379_v13 = vld [vmem:[#allocation100_spill] sm:$0xff]  ;;  %vm9457_vm10 = vmmov %vm9415_vm7 }
 0x3b9   :  { %v7529_v12 = vadd.f32 %v2912_v10, %v9373_v49  ;;  %v7532_v62 = vadd.f32 %v2913_v17, %v9374_v9  ;;  %v3194_v54 = vsel %vm9376_vm11, %v3109_v30, -inf  ;;  %v7536_v18 = vadd.f32 %v2914_v46, %v9377_v27  ;;  %v9384_v21 = vld [vmem:[#allocation64_spill] sm:$0xff]  ;;  %vm9458_vm11 = vmmov %vm9394_vm0 }
 0x3ba   :  { %v7539_v2 = vadd.f32 %v2915_v50, %v9379_v13  ;;  %v3124_v56 = vrot.slane %v7519_v19, 7  ;;  %3195 = vmax.xlane.f32.xlu1 %v3194_v54  ;;  %v3126_v63 = vrot.slane %v7522_v36, 6  ;;  %v3128_v3 = vrot.slane %v7526_v25, 5 }
 0x3bb   :  { %9375 = vst [vmem:[#allocation150_spill] sm:$0xff] %v7532_v62  ;;  %v3130_v10 = vrot.slane %v7529_v12, 4  ;;  %v3132_v17 = vrot.slane %v7532_v62, 3  ;;  %v3134_v46 = vrot.slane %v7536_v18, 2  ;;  %v2777_v50 = vrot.slane %v7390_v60, 1 }
 0x3bc   :  { %9378 = vst [vmem:[#allocation151_spill] sm:$0xff] %v7536_v18  ;;  %v3125_v24 = vsel %vm917_vm1, %v3124_v56, %v7516_v29  ;;  %v3136_v8 = vrot.slane %v7539_v2, 1  ;;  %v2778_v30 = vrot.slane %v7390_v60, 2  ;;  %v2779_v37 = vrot.slane %v7390_v60, 3  ;;  %v9410_v18 = vld [vmem:[#allocation60_spill] sm:$0xff] }
 0x3bd   :  { %9380 = vst [vmem:[#allocation152_spill] sm:$0xff] %v7539_v2  ;;  %v3127_v20 = vsel %vm919_vm2, %v3126_v63, %v3125_v24  ;;  %v2780_v49 = vrot.slane %v7390_v60, 4  ;;  %v2781_v54 = vrot.slane %v7390_v60, 5  ;;  %v2782_v27 = vrot.slane %v7390_v60, 6  ;;  %v9382_v63 = vld [vmem:[#allocation62_spill] sm:$0xff] }
 0x3be   :  { %v3129_v9 = vsel %vm921_vm3, %v3128_v3, %v3127_v20  ;;  %v2783_v13 = vrot.slane %v7390_v60, 7  ;;  %v2900_v11 = vmul.f32 %v7390_v60, %v9381_v23  ;;  %v2901_v24 = vmul.f32 %v2777_v50, %v9382_v63  ;;  %v9385_v3 = vld [vmem:[#allocation65_spill] sm:$0xff] }
 0x3bf   :  { %v3131_v56 = vsel %vm923_vm4, %v3130_v10, %v3129_v9  ;;  %v2902_v28 = vmul.f32 %v2778_v30, %v9383_v7  ;;  %v2903_v16 = vmul.f32 %v2779_v37, %v9384_v21  ;;  %v2904_v20 = vmul.f32 %v2780_v49, %v9385_v3  ;;  %v9388_v10 = vld [vmem:[#allocation68_spill] sm:$0xff]  ;;  %v9391_v30 = vld [vmem:[#allocation117_spill] sm:$0xff]  ;;  %v9393_v49 = vld [vmem:[#allocation119_spill] sm:$0xff] }
 0x3c0   :  { %v3133_v34 = vsel %vm925_vm5, %v3132_v17, %v3131_v56  ;;  %v2905_v31 = vmul.f32 %v2781_v54, %v9386_v39  ;;  %v2906_v4 = vmul.f32 %v2782_v27, %v9387_v52  ;;  %v2907_v9 = vmul.f32 %v2783_v13, %v9388_v10  ;;  %v9392_v17 = vld [vmem:[#allocation118_spill] sm:$0xff]  ;;  %v9403_v52 = vld [vmem:[#allocation53_spill] sm:$0xff]  ;;  %v9405_v7 = vld [vmem:[#allocation55_spill] sm:$0xff] }
 0x3c1   :  { %v3135_v5 = vsel %vm927_vm6, %v3134_v46, %v3133_v34  ;;  %v7572_v60 = vadd.f32 %v2900_v11, %v9389_v40  ;;  %v7576_v23 = vadd.f32 %v2901_v24, %v9391_v30  ;;  %v7579_v37 = vadd.f32 %v2902_v28, %v9392_v17  ;;  %v9395_v46 = vld [vmem:[#allocation121_spill] sm:$0xff]  ;;  %v9397_v27 = vld [vmem:[#allocation122_spill] sm:$0xff]  ;;  %v9399_v11 = vld [vmem:[#allocation123_spill] sm:$0xff] }
 0x3c2   :  { %v3137_v50 = vsel %vm9390_vm12, %v3136_v8, %v3135_v5  ;;  %v7582_v56 = vadd.f32 %v2903_v16, %v9393_v49  ;;  %v7586_v54 = vadd.f32 %v2904_v20, %v9395_v46  ;;  %v7589_v13 = vadd.f32 %v2905_v31, %v9397_v27  ;;  %v9401_v5 = vld [vmem:[#allocation124_spill] sm:$0xff]  ;;  %v9404_v39 = vld [vmem:[#allocation54_spill] sm:$0xff]  ;;  %vm9466_vm12 = vmmov %vm9415_vm7 }
 0x3c3   :  { %v3200_v34 = vsel %vm9394_vm0, %v3137_v50, -inf  ;;  %v7592_v40 = vadd.f32 %v2906_v4, %v9399_v11  ;;  %v7595_v8 = vadd.f32 %v2907_v9, %v9401_v5  ;;  %v3110_v28 = vrot.slane %v7576_v23, 7 }
 0x3c4   :  { %9396 = vst [vmem:[#allocation153_spill] sm:$0xff] %v7586_v54  ;;  %3201 = vmax.xlane.f32.xlu2 %v3200_v34  ;;  %v3112_v16 = vrot.slane %v7579_v37, 6  ;;  %v3114_v24 = vrot.slane %v7582_v56, 5  ;;  %v3116_v50 = vrot.slane %v7586_v54, 4  ;;  %v3118_v20 = vrot.slane %v7589_v13, 3  ;;  %v9408_v54 = vld [vmem:[#allocation58_spill] sm:$0xff] }
 0x3c5   :  { %9398 = vst [vmem:[#allocation154_spill] sm:$0xff] %v7589_v13  ;;  %v3120_v31 = vrot.slane %v7592_v40, 2  ;;  %v2805_v30 = vrot.slane %v7442_v35, 1  ;;  %v3111_v4 = vsel %vm917_vm1, %v3110_v28, %v7572_v60  ;;  %v3122_v9 = vrot.slane %v7595_v8, 1 }
 0x3c6   :  { %9400 = vst [vmem:[#allocation141_spill] sm:$0xff] %v7592_v40  ;;  %v2806_v17 = vrot.slane %v7442_v35, 2  ;;  %v2807_v49 = vrot.slane %v7442_v35, 3  ;;  %v3113_v34 = vsel %vm919_vm2, %v3112_v16, %v3111_v4  ;;  %v2808_v46 = vrot.slane %v7442_v35, 4  ;;  %v9406_v16 = vld [vmem:[#allocation56_spill] sm:$0xff] }
 0x3c7   :  { %9402 = vst [vmem:[#allocation142_spill] sm:$0xff] %v7595_v8  ;;  %v2809_v27 = vrot.slane %v7442_v35, 5  ;;  %v2810_v11 = vrot.slane %v7442_v35, 6  ;;  %v3115_v5 = vsel %vm921_vm3, %v3114_v24, %v3113_v34  ;;  %v2811_v10 = vrot.slane %v7442_v35, 7  ;;  %v9407_v8 = vld [vmem:[#allocation57_spill] sm:$0xff]  ;;  %v9409_v24 = vld [vmem:[#allocation59_spill] sm:$0xff] }
 0x3c8   :  { %v2932_v28 = vmul.f32 %v7442_v35, %v9403_v52  ;;  %v2933_v3 = vmul.f32 %v2805_v30, %v9404_v39  ;;  %v3117_v21 = vsel %vm923_vm4, %v3116_v50, %v3115_v5  ;;  %v2934_v63 = vmul.f32 %v2806_v17, %v9405_v7  ;;  %v9411_v52 = vld [vmem:[#allocation114_spill] sm:$0xff]  ;;  %v9412_v50 = vld [vmem:[#allocation109_spill] sm:$0xff]  ;;  %v9430_v39 = vld [vmem:[#allocation48_spill] sm:$0xff] }
 0x3c9   :  { %v2935_v4 = vmul.f32 %v2807_v49, %v9406_v16  ;;  %v2936_v40 = vmul.f32 %v2808_v46, %v9407_v8  ;;  %v3119_v13 = vsel %vm925_vm5, %v3118_v20, %v3117_v21  ;;  %v2937_v2 = vmul.f32 %v2809_v27, %v9408_v54  ;;  %v9413_v17 = vld [vmem:[#allocation110_spill] sm:$0xff]  ;;  %v9416_v21 = vld [vmem:[#allocation111_spill] sm:$0xff]  ;;  %v9418_v27 = vld [vmem:[#allocation112_spill] sm:$0xff] }
 0x3ca   :  { %v2938_v34 = vmul.f32 %v2810_v11, %v9409_v24  ;;  %v2939_v62 = vmul.f32 %v2811_v10, %v9410_v18  ;;  %v3121_v35 = vsel %vm927_vm6, %v3120_v31, %v3119_v13  ;;  %v7628_v30 = vadd.f32 %v2932_v28, %v9411_v52  ;;  %v9420_v10 = vld [vmem:[#allocation113_spill] sm:$0xff]  ;;  %v9423_v13 = vld [vmem:[#allocation115_spill] sm:$0xff]  ;;  %v9427_v24 = vld [vmem:[#allocation28_spill] sm:$0xff] }
 0x3cb   :  { %v7631_v5 = vadd.f32 %v2933_v3, %v9412_v50  ;;  %v7634_v49 = vadd.f32 %v2934_v63, %v9413_v17  ;;  %v3123_v46 = vsel %vm9415_vm7, %v3122_v9, %v3121_v35  ;;  %v7638_v20 = vadd.f32 %v2935_v4, %v9416_v21  ;;  %v9425_v3 = vld [vmem:[#allocation116_spill] sm:$0xff]  ;;  %v9429_v8 = vld [vmem:[#allocation47_spill] sm:$0xff] }
 0x3cc   :  { %v7641_v11 = vadd.f32 %v2936_v40, %v9418_v27  ;;  %v7644_v18 = vadd.f32 %v2937_v2, %v9420_v10  ;;  %v3197_v52 = vsel %vm9422_vm13, %v3123_v46, -inf  ;;  %v7648_v31 = vadd.f32 %v2938_v34, %v9423_v13  ;;  %vm9474_vm13 = vmmov %vm9394_vm0 }
 0x3cd   :  { %9414 = vst [vmem:[#allocation143_spill] sm:$0xff] %v7634_v49  ;;  %v7651_v28 = vadd.f32 %v2939_v62, %v9425_v3  ;;  %v3166_v63 = vrot.slane %v7631_v5, 7  ;;  %3198 = vmax.xlane.f32.xlu0 %v3197_v52  ;;  %v3168_v9 = vrot.slane %v7634_v49, 6  ;;  %v3170_v4 = vrot.slane %v7638_v20, 5 }
 0x3ce   :  { %9417 = vst [vmem:[#allocation145_spill] sm:$0xff] %v7638_v20  ;;  %v3172_v40 = vrot.slane %v7641_v11, 4  ;;  %v3174_v2 = vrot.slane %v7644_v18, 3  ;;  %v3176_v34 = vrot.slane %v7648_v31, 2  ;;  %v2798_v62 = vrot.slane %v7340_v22, 1  ;;  %v9433_v20 = vld [vmem:[#allocation51_spill] sm:$0xff] }
 0x3cf   :  { %9419 = vst [vmem:[#allocation146_spill] sm:$0xff] %v7641_v11  ;;  %v3167_v35 = vsel %vm917_vm1, %v3166_v63, %v7628_v30  ;;  %v3178_v50 = vrot.slane %v7651_v28, 1  ;;  %v2799_v46 = vrot.slane %v7340_v22, 2  ;;  %v2800_v21 = vrot.slane %v7340_v22, 3 }
 0x3d0   :  { %9421 = vst [vmem:[#allocation147_spill] sm:$0xff] %v7644_v18  ;;  %v3169_v17 = vsel %vm919_vm2, %v3168_v9, %v3167_v35  ;;  %v2801_v27 = vrot.slane %v7340_v22, 4  ;;  %v2802_v52 = vrot.slane %v7340_v22, 5  ;;  %v2803_v13 = vrot.slane %v7340_v22, 6  ;;  %v9428_v9 = vld [vmem:[#allocation29_spill] sm:$0xff] }
 0x3d1   :  { %9424 = vst [vmem:[#allocation148_spill] sm:$0xff] %v7648_v31  ;;  %v3171_v10 = vsel %vm921_vm3, %v3170_v4, %v3169_v17  ;;  %v2804_v3 = vrot.slane %v7340_v22, 7  ;;  %v2924_v54 = vmul.f32 %v7340_v22, %v9427_v24  ;;  %v2925_v35 = vmul.f32 %v2798_v62, %v9428_v9  ;;  %v9431_v4 = vld [vmem:[#allocation49_spill] sm:$0xff]  ;;  %v9432_v31 = vld [vmem:[#allocation50_spill] sm:$0xff] }
 0x3d2   :  { %9426 = vst [vmem:[#allocation149_spill] sm:$0xff] %v7651_v28  ;;  %v3173_v63 = vsel %vm923_vm4, %v3172_v40, %v3171_v10  ;;  %v2926_v16 = vmul.f32 %v2799_v46, %v9429_v8  ;;  %v2927_v28 = vmul.f32 %v2800_v21, %v9430_v39  ;;  %v2928_v17 = vmul.f32 %v2801_v27, %v9431_v4  ;;  %v9434_v40 = vld [vmem:[#allocation52_spill] sm:$0xff]  ;;  %v9436_v24 = vld [vmem:[#allocation125_spill] sm:$0xff]  ;;  %v9437_v46 = vld [vmem:[#allocation126_spill] sm:$0xff] }
 0x3d3   :  { %v3175_v7 = vsel %vm925_vm5, %v3174_v2, %v3173_v63  ;;  %v2929_v18 = vmul.f32 %v2802_v52, %v9432_v31  ;;  %v2930_v49 = vmul.f32 %v2803_v13, %v9433_v20  ;;  %v2931_v10 = vmul.f32 %v2804_v3, %v9434_v40  ;;  %v9438_v2 = vld [vmem:[#allocation127_spill] sm:$0xff]  ;;  %v9440_v52 = vld [vmem:[#allocation128_spill] sm:$0xff]  ;;  %v9442_v13 = vld [vmem:[#allocation130_spill] sm:$0xff] }
 0x3d4   :  { %v3177_v11 = vsel %vm927_vm6, %v3176_v34, %v3175_v7  ;;  %v7685_v62 = vadd.f32 %v2925_v35, %v9436_v24  ;;  %v7688_v8 = vadd.f32 %v2926_v16, %v9437_v46  ;;  %v7691_v21 = vadd.f32 %v2927_v28, %v9438_v2  ;;  %v9441_v7 = vld [vmem:[#allocation129_spill] sm:$0xff]  ;;  %v9444_v28 = vld [vmem:[#allocation132_spill] sm:$0xff] }
 0x3d5   :  { %v3179_v22 = vsel %vm9435_vm14, %v3178_v50, %v3177_v11  ;;  %v7695_v63 = vadd.f32 %v2928_v17, %v9440_v52  ;;  %v7698_v34 = vadd.f32 %v2924_v54, %v9441_v7  ;;  %v7701_v11 = vadd.f32 %v2929_v18, %v9442_v13  ;;  %v9443_v50 = vld [vmem:[#allocation131_spill] sm:$0xff]  ;;  %vm9488_vm14 = vmmov %vm9415_vm7 }
 0x3d6   :  { %v3209_v27 = vsel %vm9439_vm15, %v3179_v22, -inf  ;;  %v3152_v24 = vrot.slane %v7685_v62, 7  ;;  %v3154_v16 = vrot.slane %v7688_v8, 6  ;;  %v7706_v3 = vadd.f32 %v2930_v49, %v9443_v50  ;;  %vm9491_vm15 = vmmov %vm9394_vm0 }
 0x3d7   :  { %3210 = vmax.xlane.f32.xlu1 %v3209_v27  ;;  %v7709_v35 = vadd.f32 %v2931_v10, %v9444_v28  ;;  %v3156_v22 = vrot.slane %v7691_v21, 5  ;;  %v3158_v18 = vrot.slane %v7695_v63, 4  ;;  %v3160_v2 = vrot.slane %v7701_v11, 3 }
 0x3d8   :  { %v3153_v17 = vsel %vm917_vm1, %v3152_v24, %v7698_v34  ;;  %v3162_v49 = vrot.slane %v7706_v3, 2 }
 0x3d9   :  { %v3155_v54 = vsel %vm919_vm2, %v3154_v16, %v3153_v17  ;;  %v3164_v52 = vrot.slane %v7709_v35, 1 }
 0x3da   :  { %v3157_v46 = vsel %vm921_vm3, %v3156_v22, %v3155_v54 }
 0x3db   :  { %v3159_v27 = vsel %vm923_vm4, %v3158_v18, %v3157_v46 }
 0x3dc   :  { %v3161_v10 = vsel %vm925_vm5, %v3160_v2, %v3159_v27 }
 0x3dd   :  { %v3163_v7 = vsel %vm927_vm6, %v3162_v49, %v3161_v10 }
 0x3de   :  { %v3165_v13 = vsel %vm9445_vm8, %v3164_v52, %v3163_v7  ;;  %vm9496_vm8 = vmmov %vm9415_vm7 }
 0x3df   :  { %v3206_v24 = vsel %vm9446_vm9, %v3165_v13, -inf  ;;  %vm9498_vm9 = vmmov %vm9394_vm0 }
 0x3e0   :  { %3207 = vmax.xlane.f32.xlu2 %v3206_v24 }
 0x406   :  { %v7725_v16 = vpop.xlane.xlu0 %3189 }
 0x407   :  { %v3220_v50 = vrot.slane %v7725_v16, 1  ;;  %v3221_v17 = vrot.slane %v7725_v16, 2  ;;  %v3340_v54 = vsub.f32 %v7248_v38, %v7725_v16  ;;  %v3222_v49 = vrot.slane %v7725_v16, 3 }
 0x409   :  { %v3341_v46 = vsub.f32 %v7251_v59, %v3220_v50  ;;  %v3342_v2 = vsub.f32 %v7254_v45, %v3221_v17  ;;  %v3404_v52 = vmul.f32 1.442695, %v3340_v54  ;;  %v3343_v38 = vsub.f32 %v7257_v26, %v3222_v49 }
 0x40b   :  { %v3406_v24 = vmul.f32 1.442695, %v3341_v46  ;;  %v3408_v40 = vmul.f32 1.442695, %v3342_v2  ;;  %4610 = vpow2.f32 %v3404_v52  ;;  %v7741_v17 = vmul.f32 1.442695, %v3343_v38 }
 0x40d   :  { %4612 = vpow2.f32 %v3406_v24 }
 0x40e   :  { %4614 = vpow2.f32 %v3408_v40 }
 0x417   :  { %v3193_v28 = vpop.xlane.xlu1 %3192 }
 0x418   :  { %v3227_v22 = vrot.slane %v3193_v28, 1  ;;  %v3228_v18 = vrot.slane %v3193_v28, 2  ;;  %v3348_v27 = vsub.f32 %v7333_v47, %v3193_v28  ;;  %v3229_v7 = vrot.slane %v3193_v28, 3 }
 0x419   :  { %v3223_v47 = vrot.slane %v7725_v16, 4  ;;  %v3230_v50 = vrot.slane %v3193_v28, 4  ;;  %v3231_v54 = vrot.slane %v3193_v28, 5 }
 0x41a   :  { %v3349_v10 = vsub.f32 %v7338_v41, %v3227_v22  ;;  %v3350_v13 = vsub.f32 %v7343_v61, %v3228_v18  ;;  %v3420_v20 = vmul.f32 1.442695, %v3348_v27  ;;  %v3351_v59 = vsub.f32 %v7347_v57, %v3229_v7 }
 0x41b   :  { %v3224_v41 = vrot.slane %v7725_v16, 5  ;;  %v3232_v27 = vrot.slane %v3193_v28, 6  ;;  %v3233_v7 = vrot.slane %v3193_v28, 7 }
 0x41c   :  { %v3422_v31 = vmul.f32 1.442695, %v3349_v10  ;;  %v3424_v45 = vmul.f32 1.442695, %v3350_v13  ;;  %4616 = vpow2.f32 %v3420_v20  ;;  %v3426_v18 = vmul.f32 1.442695, %v3351_v59  ;;  %v7750_v20 = vpop.eup %4610 }
 0x41d   :  { %v7755_v49 = vpop.eup %4612  ;;  %v3225_v13 = vrot.slane %v7725_v16, 6  ;;  %v3352_v59 = vsub.f32 %v7350_v51, %v3230_v50 }
 0x41e   :  { %4618 = vpow2.f32 %v3422_v31  ;;  %v7759_v24 = vpop.eup %4614 }
 0x41f   :  { %4620 = vpow2.f32 %v3424_v45  ;;  %v3226_v45 = vrot.slane %v7725_v16, 7 }
 0x423   :  { %v7743_v61 = vpop.xlane.xlu0 %3204 }
 0x424   :  { %v3255_v26 = vrot.slane %v7743_v61, 1  ;;  %v3256_v22 = vrot.slane %v7743_v61, 2  ;;  %v3257_v57 = vrot.slane %v7743_v61, 3  ;;  %v3380_v40 = vsub.f32 %v7401_v43, %v7743_v61 }
 0x426   :  { %v3381_v2 = vsub.f32 %v7404_v33, %v3255_v26  ;;  %v3382_v31 = vsub.f32 %v7407_v58, %v3256_v22  ;;  %v3383_v10 = vsub.f32 %v7410_v48, %v3257_v57  ;;  %v3484_v52 = vmul.f32 1.442695, %v3380_v40  ;;  %v7763_v33 = vpop.eup %4616  ;;  %v9447_v48 = vld [vmem:[#allocation140_spill] sm:$0xff]  ;;  %v9448_v40 = vld [vmem:[#allocation133_spill] sm:$0xff] }
 0x427   :  { %v3353_v58 = vsub.f32 %v7353_v55, %v3231_v54  ;;  %v3354_v26 = vsub.f32 %v7356_v6, %v3232_v27  ;;  %v3355_v22 = vsub.f32 %v9447_v48, %v3233_v7  ;;  %v7768_v28 = vpop.eup %4618  ;;  %v3428_v57 = vmul.f32 1.442695, %v3352_v59  ;;  %v9450_v27 = vld [vmem:[#allocation138_spill] sm:$0xff] }
 0x428   :  { %v3486_v43 = vmul.f32 1.442695, %v3381_v2  ;;  %v3488_v38 = vmul.f32 1.442695, %v3382_v31  ;;  %4622 = vpow2.f32 %v3484_v52  ;;  %v3344_v2 = vsub.f32 %v9448_v40, %v3223_v47  ;;  %v9449_v31 = vld [vmem:[#allocation137_spill] sm:$0xff]  ;;  %v7772_v51 = vpop.eup %4620 }
 0x429   :  { %v3345_v46 = vsub.f32 %v9449_v31, %v3224_v41  ;;  %v7775_v50 = vmul.f32 1.442695, %v3383_v10  ;;  %v3430_v55 = vmul.f32 1.442695, %v3353_v58  ;;  %v3432_v6 = vmul.f32 1.442695, %v3354_v26 }
 0x42a   :  { %4624 = vpow2.f32 %v3486_v43  ;;  %v3434_v54 = vmul.f32 1.442695, %v3355_v22  ;;  %v3346_v52 = vsub.f32 %v9450_v27, %v3225_v13  ;;  %v9451_v43 = vld [vmem:[#allocation139_spill] sm:$0xff]  ;;  %v3412_v59 = vmul.f32 1.442695, %v3344_v2 }
 0x42b   :  { %4626 = vpow2.f32 %v3488_v38  ;;  %v3347_v47 = vsub.f32 %v9451_v43, %v3226_v45  ;;  %v7781_v41 = vmul.f32 1.442695, %v3345_v46 }
 0x42c   :  { %4628 = vpow2.f32 %v3426_v18  ;;  %v7792_v45 = vmul.f32 1.442695, %v3346_v52 }
 0x42d   :  { %v7778_v7 = vpop.xlane.xlu1 %3195  ;;  %4630 = vpow2.f32 %v3428_v57  ;;  %v7801_v27 = vmul.f32 1.442695, %v3347_v47  ;;  %v3596_v47 = vrot.slane %v7755_v49, 7 }
 0x42e   :  { %v3234_v48 = vrot.slane %v7778_v7, 1  ;;  %v3235_v38 = vrot.slane %v7778_v7, 2  ;;  %v3236_v10 = vrot.slane %v7778_v7, 3  ;;  %v3237_v18 = vrot.slane %v7778_v7, 4  ;;  %v7787_v58 = vpop.eup %4622 }
 0x42f   :  { %v3356_v26 = vsub.f32 %v7460_v32, %v7778_v7  ;;  %4632 = vpow2.f32 %v3430_v55 }
 0x430   :  { %v7794_v46 = vpop.eup %4624  ;;  %v3357_v22 = vsub.f32 %v7464_v14, %v3234_v48  ;;  %v3358_v57 = vsub.f32 %v7467_v44, %v3235_v38  ;;  %v3359_v40 = vsub.f32 %v7470_v0, %v3236_v10  ;;  %4634 = vpow2.f32 %v3432_v6 }
 0x431   :  { %v7799_v2 = vpop.eup %4626  ;;  %v3436_v31 = vmul.f32 1.442695, %v3356_v26  ;;  %4636 = vpow2.f32 %v3434_v54  ;;  %v3610_v44 = vrot.slane %v7768_v28, 7  ;;  %v3612_v0 = vrot.slane %v7772_v51, 6 }
 0x432   :  { %v7804_v55 = vpop.eup %4628  ;;  %v3438_v52 = vmul.f32 1.442695, %v3357_v22  ;;  %v3440_v43 = vmul.f32 1.442695, %v3358_v57  ;;  %v7806_v16 = vmul.f32 1.442695, %v3359_v40  ;;  %4638 = vpow2.f32 %v7741_v17 }
 0x433   :  { %9452 = vst [vmem:[#allocation81_spill] sm:$0xff] %v7804_v55  ;;  %v7809_v14 = vpop.eup %4630  ;;  %4640 = vpow2.f32 %v3436_v31  ;;  %v3614_v6 = vrot.slane %v7804_v55, 5  ;;  %v3598_v48 = vrot.slane %v7759_v24, 6  ;;  %v3611_v17 = vsel %vm917_vm1, %v3610_v44, %v7763_v33 }
 0x434   :  { %9453 = vst [vmem:[#allocation77_spill] sm:$0xff] %v7809_v14  ;;  %4642 = vpow2.f32 %v3438_v52  ;;  %v3616_v54 = vrot.slane %v7809_v14, 4  ;;  %v3240_v10 = vrot.slane %v7778_v7, 7  ;;  %v3360_v26 = vsub.f32 %v7474_v1, %v3237_v18 }
 0x435   :  { %v7817_v38 = vpop.eup %4632  ;;  %4644 = vpow2.f32 %v3440_v43  ;;  %v3613_v40 = vsel %vm919_vm2, %v3612_v0, %v3611_v17  ;;  %v3597_v52 = vsel %vm917_vm1, %v3596_v47, %v7750_v20 }
 0x436   :  { %9454 = vst [vmem:[#allocation78_spill] sm:$0xff] %v7817_v38  ;;  %v7823_v22 = vpop.eup %4634  ;;  %v3618_v31 = vrot.slane %v7817_v38, 3  ;;  %4646 = vpow2.f32 %v3412_v59  ;;  %v3615_v17 = vsel %vm921_vm3, %v3614_v6, %v3613_v40 }
 0x437   :  { %9455 = vst [vmem:[#allocation79_spill] sm:$0xff] %v7823_v22  ;;  %v7825_v57 = vpop.xlane.xlu2 %3201  ;;  %v7831_v43 = vpop.eup %4636  ;;  %v3620_v47 = vrot.slane %v7823_v22, 2  ;;  %v3617_v18 = vsel %vm923_vm4, %v3616_v54, %v3615_v17  ;;  %4648 = vpow2.f32 %v7781_v41  ;;  %v3599_v54 = vsel %vm919_vm2, %v3598_v48, %v3597_v52 }
 0x438   :  { %v3248_v44 = vrot.slane %v7825_v57, 1  ;;  %v3249_v32 = vrot.slane %v7825_v57, 2  ;;  %v3250_v1 = vrot.slane %v7825_v57, 3  ;;  %v7837_v13 = vpop.eup %4638  ;;  %v3372_v59 = vsub.f32 %v7516_v29, %v7825_v57 }
 0x439   :  { %v7844_v4 = vpop.eup %4640  ;;  %v3619_v55 = vsel %vm925_vm5, %v3618_v31, %v3617_v18  ;;  %v3622_v29 = vrot.slane %v7831_v43, 1  ;;  %v3600_v31 = vrot.slane %v7837_v13, 5  ;;  %v3363_v48 = vsub.f32 %v7483_v15, %v3240_v10 }
 0x43a   :  { %v3373_v39 = vsub.f32 %v7519_v19, %v3248_v44  ;;  %v3374_v9 = vsub.f32 %v7522_v36, %v3249_v32  ;;  %v3375_v38 = vsub.f32 %v7526_v25, %v3250_v1  ;;  %v7850_v14 = vpop.eup %4642  ;;  %v3468_v0 = vmul.f32 1.442695, %v3372_v59 }
 0x43b   :  { %v7855_v6 = vpop.eup %4644  ;;  %v3621_v36 = vsel %vm927_vm6, %v3620_v47, %v3619_v55  ;;  %v3601_v55 = vsel %vm921_vm3, %v3600_v31, %v3599_v54  ;;  %v3444_v18 = vmul.f32 1.442695, %v3360_v26 }
 0x43c   :  { %9456 = vst [vmem:[#allocation80_spill] sm:$0xff] %v7855_v6  ;;  %v3470_v40 = vmul.f32 1.442695, %v3373_v39  ;;  %v3472_v22 = vmul.f32 1.442695, %v3374_v9  ;;  %v7860_v25 = vpop.eup %4646  ;;  %4650 = vpow2.f32 %v3468_v0  ;;  %v3623_v32 = vsel %vm9457_vm10, %v3622_v29, %v3621_v36  ;;  %vm9503_vm10 = vmmov %vm9415_vm7 }
 0x43d   :  { %v7857_v19 = vmul.f32 1.442695, %v3375_v38  ;;  %v3719_v41 = vsel %vm9458_vm11, %v3623_v32, 0.0  ;;  %v3602_v44 = vrot.slane %v7860_v25, 4  ;;  %v9459_v39 = vrot.slane %v7778_v7, 5  ;;  %v7877_v59 = vpop.eup %4648  ;;  %vm9507_vm11 = vmmov %vm9394_vm0 }
 0x43e   :  { %4652 = vpow2.f32 %v3470_v40  ;;  %3720 = vadd.xlane.f32.xlu0 %v3719_v41  ;;  %v9460_v38 = vrot.slane %v7778_v7, 6  ;;  %v3624_v7 = vrot.slane %v7850_v14, 7 }
 0x43f   :  { %v3361_v9 = vsub.f32 %v7477_v53, %v9459_v39  ;;  %4654 = vpow2.f32 %v3472_v22  ;;  %v3603_v52 = vsel %vm923_vm4, %v3602_v44, %v3601_v55  ;;  %v3450_v22 = vmul.f32 1.442695, %v3363_v48 }
 0x440   :  { %v3362_v1 = vsub.f32 %v7480_v42, %v9460_v38  ;;  %4656 = vpow2.f32 %v7792_v45  ;;  %v7879_v17 = vpop.xlane.xlu0 %3198  ;;  %v3253_v38 = vrot.slane %v7825_v57, 6  ;;  %v3254_v48 = vrot.slane %v7825_v57, 7 }
 0x441   :  { %v3446_v0 = vmul.f32 1.442695, %v3361_v9  ;;  %4658 = vpow2.f32 %v7801_v27  ;;  %v3241_v42 = vrot.slane %v7879_v17, 1  ;;  %v3242_v15 = vrot.slane %v7879_v17, 2 }
 0x442   :  { %v3448_v53 = vmul.f32 1.442695, %v3362_v1  ;;  %v3243_v45 = vrot.slane %v7879_v17, 3  ;;  %v7887_v26 = vpop.eup %4650  ;;  %v3364_v29 = vsub.f32 %v7572_v60, %v7879_v17  ;;  %v3604_v27 = vrot.slane %v7877_v59, 3 }
 0x443   :  { %4660 = vpow2.f32 %v7806_v16  ;;  %v3365_v36 = vsub.f32 %v7576_v23, %v3241_v42  ;;  %v3366_v32 = vsub.f32 %v7579_v37, %v3242_v15  ;;  %v3625_v60 = vsel %vm917_vm1, %v3624_v7, %v7844_v4  ;;  %v9464_v15 = vld [vmem:[#allocation150_spill] sm:$0xff] }
 0x444   :  { %v7894_v40 = vpop.eup %4652  ;;  %v3367_v54 = vsub.f32 %v7582_v56, %v3243_v45  ;;  %4662 = vpow2.f32 %v3444_v18  ;;  %v3452_v41 = vmul.f32 1.442695, %v3364_v29  ;;  %v3605_v44 = vsel %vm925_vm5, %v3604_v27, %v3603_v52 }
 0x445   :  { %v7899_v31 = vpop.eup %4654  ;;  %4664 = vpow2.f32 %v3446_v0  ;;  %v3454_v16 = vmul.f32 1.442695, %v3365_v36  ;;  %v3456_v9 = vmul.f32 1.442695, %v3366_v32  ;;  %v3626_v56 = vrot.slane %v7855_v6, 6  ;;  %v9467_v32 = vld [vmem:[#allocation151_spill] sm:$0xff] }
 0x446   :  { %v7904_v39 = vpop.eup %4656  ;;  %v7906_v55 = vmul.f32 1.442695, %v3367_v54  ;;  %4666 = vpow2.f32 %v3448_v53  ;;  %v9461_v52 = vrot.slane %v7825_v57, 4  ;;  %v9463_v42 = vrot.slane %v7825_v57, 5 }
 0x447   :  { %v7908_v23 = vpop.eup %4658  ;;  %4668 = vpow2.f32 %v3452_v41  ;;  %v3606_v37 = vrot.slane %v7904_v39, 2  ;;  %v3627_v7 = vsel %vm919_vm2, %v3626_v56, %v3625_v60  ;;  %v3378_v54 = vsub.f32 %v9467_v32, %v3253_v38 }
 0x448   :  { %4670 = vpow2.f32 %v3454_v16  ;;  %v3608_v1 = vrot.slane %v7908_v23, 1  ;;  %v3376_v18 = vsub.f32 %v7529_v12, %v9461_v52  ;;  %v3377_v45 = vsub.f32 %v9464_v15, %v9463_v42  ;;  %v9471_v15 = vld [vmem:[#allocation145_spill] sm:$0xff]  ;;  %v9472_v16 = vld [vmem:[#allocation152_spill] sm:$0xff] }
 0x449   :  { %v7918_v0 = vpop.eup %4660  ;;  %4672 = vpow2.f32 %v3456_v9  ;;  %v3607_v53 = vsel %vm927_vm6, %v3606_v37, %v3605_v44 }
 0x44a   :  { %9462 = vst [vmem:[#allocation82_spill] sm:$0xff] %v7918_v0  ;;  %v7925_v29 = vpop.eup %4662  ;;  %v7927_v27 = vpop.xlane.xlu1 %3210  ;;  %v3609_v36 = vsel %vm9466_vm12, %v3608_v1, %v3607_v53  ;;  %4674 = vpow2.f32 %v3450_v22  ;;  %v3628_v12 = vrot.slane %v7918_v0, 5  ;;  %v9470_v53 = vld [vmem:[#allocation143_spill] sm:$0xff]  ;;  %vm9509_vm12 = vmmov %vm9415_vm7 }
 0x44b   :  { %9465 = vst [vmem:[#allocation83_spill] sm:$0xff] %v7925_v29  ;;  %v7932_v41 = vpop.eup %4664  ;;  %v3269_v44 = vrot.slane %v7927_v27, 1  ;;  %v3270_v60 = vrot.slane %v7927_v27, 2  ;;  %v3271_v57 = vrot.slane %v7927_v27, 3  ;;  %v3396_v22 = vsub.f32 %v7628_v30, %v7927_v27 }
 0x44c   :  { %9468 = vst [vmem:[#allocation84_spill] sm:$0xff] %v7932_v41  ;;  %v7938_v9 = vpop.eup %4666  ;;  %v3716_v56 = vsel %vm9394_vm0, %v3609_v36, 0.0  ;;  %v3629_v38 = vsel %vm921_vm3, %v3628_v12, %v3627_v7  ;;  %v3630_v47 = vrot.slane %v7925_v29, 4  ;;  %v3632_v30 = vrot.slane %v7932_v41, 3 }
 0x44d   :  { %9469 = vst [vmem:[#allocation75_spill] sm:$0xff] %v7938_v9  ;;  %v7945_v1 = vpop.eup %4668  ;;  %v3397_v52 = vsub.f32 %v7631_v5, %v3269_v44  ;;  %v3398_v42 = vsub.f32 %v9470_v53, %v3270_v60  ;;  %v3399_v32 = vsub.f32 %v9471_v15, %v3271_v57  ;;  %3717 = vadd.xlane.f32.xlu2 %v3716_v56  ;;  %v3516_v37 = vmul.f32 1.442695, %v3396_v22 }
 0x44e   :  { %v7951_v10 = vpop.eup %4670  ;;  %v3634_v36 = vrot.slane %v7938_v9, 2  ;;  %v3379_v7 = vsub.f32 %v9472_v16, %v3254_v48  ;;  %v3631_v60 = vsel %vm923_vm4, %v3630_v47, %v3629_v38  ;;  %v3476_v22 = vmul.f32 1.442695, %v3376_v18 }
 0x44f   :  { %v7956_v12 = vpop.eup %4672  ;;  %v3518_v0 = vmul.f32 1.442695, %v3397_v52  ;;  %v3520_v5 = vmul.f32 1.442695, %v3398_v42  ;;  %v7958_v44 = vmul.f32 1.442695, %v3399_v32  ;;  %4676 = vpow2.f32 %v3516_v37 }
 0x450   :  { %v7961_v57 = vpop.eup %4674  ;;  %v3633_v56 = vsel %vm925_vm5, %v3632_v30, %v3631_v60  ;;  %v3478_v53 = vmul.f32 1.442695, %v3377_v45  ;;  %v3480_v16 = vmul.f32 1.442695, %v3378_v54  ;;  %v3482_v52 = vmul.f32 1.442695, %v3379_v7 }
 0x451   :  { %9473 = vst [vmem:[#allocation69_spill] sm:$0xff] %v7961_v57  ;;  %4678 = vpow2.f32 %v3518_v0  ;;  %v3635_v15 = vsel %vm927_vm6, %v3634_v36, %v3633_v56  ;;  %v3636_v48 = vrot.slane %v7961_v57, 1  ;;  %v3652_v42 = vrot.slane %v7894_v40, 7  ;;  %v9476_v30 = vld [vmem:[#allocation134_spill] sm:$0xff]  ;;  %v9481_v57 = vld [vmem:[#allocation135_spill] sm:$0xff] }
 0x452   :  { %4680 = vpow2.f32 %v3520_v5  ;;  %v3654_v32 = vrot.slane %v7899_v31, 6  ;;  %v3260_v37 = vrot.slane %v7743_v61, 6  ;;  %v3261_v18 = vrot.slane %v7743_v61, 7 }
 0x453   :  { %v3637_v47 = vsel %vm9415_vm7, %v3636_v48, %v3635_v15  ;;  %4682 = vpow2.f32 %v7857_v19  ;;  %v7972_v0 = vpop.xlane.xlu2 %3207  ;;  %v3653_v54 = vsel %vm917_vm1, %v3652_v42, %v7887_v26  ;;  %v9475_v38 = vrot.slane %v7743_v61, 4 }
 0x454   :  { %v3722_v45 = vsel %vm9474_vm13, %v3637_v47, 0.0  ;;  %4684 = vpow2.f32 %v3476_v22  ;;  %v3262_v7 = vrot.slane %v7972_v0, 1  ;;  %v3263_v19 = vrot.slane %v7972_v0, 2  ;;  %vm9514_vm13 = vmmov %vm9394_vm0 }
 0x455   :  { %v3384_v36 = vsub.f32 %v9476_v30, %v9475_v38  ;;  %v3264_v5 = vrot.slane %v7972_v0, 3  ;;  %3723 = vadd.xlane.f32.xlu0 %v3722_v45  ;;  %v7984_v56 = vpop.eup %4676  ;;  %v3388_v15 = vsub.f32 %v7698_v34, %v7972_v0  ;;  %4686 = vpow2.f32 %v3478_v53  ;;  %v9482_v53 = vld [vmem:[#allocation136_spill] sm:$0xff] }
 0x456   :  { %9477 = vst [vmem:[#allocation70_spill] sm:$0xff] %v7984_v56  ;;  %v3655_v48 = vsel %vm919_vm2, %v3654_v32, %v3653_v54  ;;  %v3389_v47 = vsub.f32 %v7685_v62, %v3262_v7  ;;  %v3390_v38 = vsub.f32 %v7688_v8, %v3263_v19  ;;  %4688 = vpow2.f32 %v3480_v16  ;;  %v9483_v8 = vld [vmem:[#allocation144_spill] sm:$0xff] }
 0x457   :  { %v7990_v42 = vpop.eup %4678  ;;  %v3391_v30 = vsub.f32 %v7691_v21, %v3264_v5  ;;  %v3500_v60 = vmul.f32 1.442695, %v3388_v15  ;;  %4690 = vpow2.f32 %v3482_v52  ;;  %v9480_v22 = vrot.slane %v7743_v61, 5 }
 0x458   :  { %9478 = vst [vmem:[#allocation71_spill] sm:$0xff] %v7990_v42  ;;  %v7995_v45 = vpop.eup %4680  ;;  %v3386_v9 = vsub.f32 %v9482_v53, %v3260_v37  ;;  %v3502_v54 = vmul.f32 1.442695, %v3389_v47  ;;  %v3504_v41 = vmul.f32 1.442695, %v3390_v38  ;;  %v3387_v7 = vsub.f32 %v9483_v8, %v3261_v18 }
 0x459   :  { %9479 = vst [vmem:[#allocation72_spill] sm:$0xff] %v7995_v45  ;;  %v3385_v34 = vsub.f32 %v9481_v57, %v9480_v22  ;;  %v8001_v32 = vpop.eup %4682  ;;  %v8003_v62 = vmul.f32 1.442695, %v3391_v30  ;;  %4692 = vpow2.f32 %v3500_v60  ;;  %v3492_v52 = vmul.f32 1.442695, %v3384_v36 }
 0x45a   :  { %v8006_v21 = vpop.eup %4684  ;;  %v3656_v16 = vrot.slane %v8001_v32, 5  ;;  %4694 = vpow2.f32 %v3502_v54  ;;  %v3496_v57 = vmul.f32 1.442695, %v3386_v9  ;;  %v3498_v37 = vmul.f32 1.442695, %v3387_v7 }
 0x45b   :  { %v3494_v19 = vmul.f32 1.442695, %v3385_v34  ;;  %v3658_v61 = vrot.slane %v8006_v21, 4  ;;  %v8010_v5 = vpop.eup %4686  ;;  %4696 = vpow2.f32 %v3504_v41  ;;  %v3666_v15 = vrot.slane %v7794_v46, 7 }
 0x45c   :  { %v3657_v22 = vsel %vm921_vm3, %v3656_v16, %v3655_v48  ;;  %v3668_v18 = vrot.slane %v7799_v2, 6  ;;  %v8015_v47 = vpop.eup %4688  ;;  %v3660_v36 = vrot.slane %v8010_v5, 3  ;;  %4698 = vpow2.f32 %v7775_v50  ;;  %v9485_v16 = vld [vmem:[#allocation146_spill] sm:$0xff] }
 0x45d   :  { %v3659_v60 = vsel %vm923_vm4, %v3658_v61, %v3657_v22  ;;  %v3274_v9 = vrot.slane %v7927_v27, 6  ;;  %v8021_v38 = vpop.eup %4690  ;;  %v3662_v41 = vrot.slane %v8015_v47, 2  ;;  %4700 = vpow2.f32 %v3492_v52  ;;  %v9487_v22 = vld [vmem:[#allocation147_spill] sm:$0xff] }
 0x45e   :  { %v3667_v48 = vsel %vm917_vm1, %v3666_v15, %v7787_v58  ;;  %v3275_v30 = vrot.slane %v7927_v27, 7  ;;  %v3661_v34 = vsel %vm925_vm5, %v3660_v36, %v3659_v60  ;;  %v3664_v53 = vrot.slane %v8021_v38, 1  ;;  %v9490_v36 = vld [vmem:[#allocation149_spill] sm:$0xff] }
 0x45f   :  { %4702 = vpow2.f32 %v3494_v19  ;;  %v3669_v54 = vsel %vm919_vm2, %v3668_v18, %v3667_v48  ;;  %v8030_v50 = vpop.eup %4692  ;;  %v3663_v8 = vsel %vm927_vm6, %v3662_v41, %v3661_v34  ;;  %v9484_v7 = vrot.slane %v7927_v27, 4  ;;  %v9489_v19 = vld [vmem:[#allocation148_spill] sm:$0xff] }
 0x460   :  { %4704 = vpow2.f32 %v3496_v57  ;;  %v9486_v61 = vrot.slane %v7927_v27, 5  ;;  %v8039_v29 = vpop.eup %4694  ;;  %v3665_v60 = vsel %vm9488_vm14, %v3664_v53, %v3663_v8  ;;  %v3402_v18 = vsub.f32 %v9489_v19, %v3274_v9  ;;  %vm9531_vm14 = vmmov %vm9415_vm7 }
 0x461   :  { %v3400_v52 = vsub.f32 %v9485_v16, %v9484_v7  ;;  %4706 = vpow2.f32 %v3498_v37  ;;  %v3403_v48 = vsub.f32 %v9490_v36, %v3275_v30  ;;  %v8044_v6 = vpop.eup %4696  ;;  %v3728_v57 = vsel %vm9491_vm15, %v3665_v60, 0.0  ;;  %vm9534_vm15 = vmmov %vm9394_vm0 }
 0x462   :  { %v3401_v15 = vsub.f32 %v9487_v22, %v9486_v61  ;;  %4708 = vpow2.f32 %v7958_v44  ;;  %v8048_v27 = vpop.eup %4698  ;;  %3729 = vadd.xlane.f32.xlu1 %v3728_v57  ;;  %v3528_v7 = vmul.f32 1.442695, %v3402_v18  ;;  %v3694_v53 = vrot.slane %v7990_v42, 7 }
 0x463   :  { %v3524_v41 = vmul.f32 1.442695, %v3400_v52  ;;  %v3530_v16 = vmul.f32 1.442695, %v3403_v48  ;;  %v3696_v37 = vrot.slane %v7995_v45, 6  ;;  %v8052_v9 = vpop.eup %4700  ;;  %v3670_v30 = vrot.slane %v8048_v27, 5 }
 0x464   :  { %v3526_v34 = vmul.f32 1.442695, %v3401_v15  ;;  %v3267_v8 = vrot.slane %v7972_v0, 6  ;;  %v3268_v44 = vrot.slane %v7972_v0, 7  ;;  %v3672_v61 = vrot.slane %v8052_v9, 4 }
 0x465   :  { %4710 = vpow2.f32 %v3524_v41  ;;  %v8057_v52 = vpop.eup %4702  ;;  %v3695_v22 = vsel %vm917_vm1, %v3694_v53, %v7984_v56  ;;  %v9492_v15 = vrot.slane %v7972_v0, 4  ;;  %v3671_v18 = vsel %vm921_vm3, %v3670_v30, %v3669_v54 }
 0x466   :  { %4712 = vpow2.f32 %v3526_v34  ;;  %v8065_v19 = vpop.eup %4704  ;;  %v3674_v36 = vrot.slane %v8057_v52, 3  ;;  %v3697_v48 = vsel %vm919_vm2, %v3696_v37, %v3695_v22  ;;  %v3673_v41 = vsel %vm923_vm4, %v3672_v61, %v3671_v18 }
 0x467   :  { %v3392_v60 = vsub.f32 %v7695_v63, %v9492_v15  ;;  %4714 = vpow2.f32 %v3528_v7  ;;  %v8070_v57 = vpop.eup %4706  ;;  %v3676_v34 = vrot.slane %v8065_v19, 2  ;;  %v9493_v53 = vrot.slane %v7972_v0, 5 }
 0x468   :  { %4716 = vpow2.f32 %v3530_v16  ;;  %v8077_v15 = vpop.eup %4708  ;;  %v3675_v54 = vsel %vm925_vm5, %v3674_v36, %v3673_v41  ;;  %v3678_v30 = vrot.slane %v8070_v57, 1  ;;  %v3394_v7 = vsub.f32 %v7706_v3, %v3267_v8 }
 0x469   :  { %v3393_v63 = vsub.f32 %v7701_v11, %v9493_v53  ;;  %9494 = vst [vmem:[#allocation73_spill] sm:$0xff] %v8077_v15  ;;  %v3395_v37 = vsub.f32 %v7709_v35, %v3268_v44  ;;  %v3677_v22 = vsel %vm927_vm6, %v3676_v34, %v3675_v54  ;;  %v3698_v61 = vrot.slane %v8077_v15, 5 }
 0x46a   :  { %4718 = vpow2.f32 %v8003_v62  ;;  %v3508_v16 = vmul.f32 1.442695, %v3392_v60  ;;  %v3679_v11 = vsel %vm9496_vm8, %v3678_v30, %v3677_v22  ;;  %v3512_v53 = vmul.f32 1.442695, %v3394_v7  ;;  %vm9537_vm8 = vmmov %vm9415_vm7 }
 0x46b   :  { %v8086_v0 = vpop.eup %4710  ;;  %v3510_v18 = vmul.f32 1.442695, %v3393_v63  ;;  %v3514_v36 = vmul.f32 1.442695, %v3395_v37  ;;  %v3731_v3 = vsel %vm9498_vm9, %v3679_v11, 0.0  ;;  %v3699_v35 = vsel %vm921_vm3, %v3698_v61, %v3697_v48  ;;  %vm9541_vm9 = vmmov %vm9394_vm0 }
 0x46c   :  { %9495 = vst [vmem:[#allocation74_spill] sm:$0xff] %v8086_v0  ;;  %v8089_v41 = vpop.eup %4712  ;;  %v3700_v8 = vrot.slane %v8086_v0, 4  ;;  %4720 = vpow2.f32 %v3508_v16  ;;  %3732 = vadd.xlane.f32.xlu2 %v3731_v3  ;;  %v3680_v60 = vrot.slane %v8039_v29, 7  ;;  %v3682_v34 = vrot.slane %v8044_v6, 6  ;;  %v9502_v3 = vld [vmem:[#allocation153_spill] sm:$0xff] }
 0x46d   :  { %9497 = vst [vmem:[#allocation76_spill] sm:$0xff] %v8089_v41  ;;  %v8094_v44 = vpop.eup %4714  ;;  %v3702_v62 = vrot.slane %v8089_v41, 3  ;;  %4722 = vpow2.f32 %v3510_v18  ;;  %v3246_v48 = vrot.slane %v7879_v17, 6  ;;  %v3247_v18 = vrot.slane %v7879_v17, 7 }
 0x46e   :  { %9499 = vst [vmem:[#allocation107_spill] sm:$0xff] %v8094_v44  ;;  %v8099_v63 = vpop.eup %4716  ;;  %v3701_v54 = vsel %vm923_vm4, %v3700_v8, %v3699_v35  ;;  %v3704_v30 = vrot.slane %v8094_v44, 2  ;;  %4724 = vpow2.f32 %v3512_v53  ;;  %v3681_v22 = vsel %vm917_vm1, %v3680_v60, %v8030_v50 }
 0x46f   :  { %9500 = vst [vmem:[#allocation101_spill] sm:$0xff] %v8099_v63  ;;  %v3703_v7 = vsel %vm925_vm5, %v3702_v62, %v3701_v54  ;;  %v3706_v37 = vrot.slane %v8099_v63, 1  ;;  %4726 = vpow2.f32 %v3514_v36  ;;  %v3683_v11 = vsel %vm919_vm2, %v3682_v34, %v3681_v22  ;;  %v9505_v54 = vld [vmem:[#allocation154_spill] sm:$0xff]  ;;  %v9506_v63 = vld [vmem:[#allocation141_spill] sm:$0xff] }
 0x470   :  { %v8108_v61 = vpop.eup %4718  ;;  %v3705_v16 = vsel %vm927_vm6, %v3704_v30, %v3703_v7  ;;  %v9501_v53 = vrot.slane %v7879_v17, 4  ;;  %v9504_v36 = vrot.slane %v7879_v17, 5  ;;  %v3370_v44 = vsub.f32 %v9506_v63, %v3246_v48  ;;  %v9508_v30 = vld [vmem:[#allocation142_spill] sm:$0xff] }
 0x471   :  { %v3707_v8 = vsel %vm9503_vm10, %v3706_v37, %v3705_v16  ;;  %v3684_v62 = vrot.slane %v8108_v61, 5  ;;  %v3371_v7 = vsub.f32 %v9508_v30, %v3247_v18  ;;  %4728 = vpow2.f32 %v7906_v55  ;;  %vm9548_vm10 = vmmov %vm9415_vm7 }
 0x472   :  { %v3368_v35 = vsub.f32 %v9502_v3, %v9501_v53  ;;  %v3369_v60 = vsub.f32 %v9505_v54, %v9504_v36  ;;  %v8122_v41 = vpop.eup %4720  ;;  %v3737_v34 = vsel %vm9507_vm11, %v3707_v8, 0.0  ;;  %v3464_v3 = vmul.f32 1.442695, %v3370_v44  ;;  %vm9552_vm11 = vmmov %vm9394_vm0 }
 0x473   :  { %v8127_v53 = vpop.eup %4722  ;;  %3738 = vadd.xlane.f32.xlu0 %v3737_v34  ;;  %v3685_v37 = vsel %vm921_vm3, %v3684_v62, %v3683_v11  ;;  %v3686_v17 = vrot.slane %v8122_v41, 4  ;;  %v3466_v48 = vmul.f32 1.442695, %v3371_v7  ;;  %v3638_v18 = vrot.slane %v7951_v10, 7 }
 0x474   :  { %v3460_v22 = vmul.f32 1.442695, %v3368_v35  ;;  %v3462_v16 = vmul.f32 1.442695, %v3369_v60  ;;  %v8131_v36 = vpop.eup %4724  ;;  %v3688_v63 = vrot.slane %v8127_v53, 3  ;;  %v3640_v11 = vrot.slane %v7956_v12, 6 }
 0x475   :  { %v8135_v8 = vpop.eup %4726  ;;  %v3687_v55 = vsel %vm923_vm4, %v3686_v17, %v3685_v37  ;;  %v3690_v35 = vrot.slane %v8131_v36, 2  ;;  %v3639_v54 = vsel %vm917_vm1, %v3638_v18, %v7945_v1 }
 0x476   :  { %4730 = vpow2.f32 %v3460_v22  ;;  %v3689_v62 = vsel %vm925_vm5, %v3688_v63, %v3687_v55  ;;  %v3692_v44 = vrot.slane %v8135_v8, 1  ;;  %v3641_v7 = vsel %vm919_vm2, %v3640_v11, %v3639_v54 }
 0x477   :  { %4732 = vpow2.f32 %v3462_v16  ;;  %v3691_v60 = vsel %vm927_vm6, %v3690_v35, %v3689_v62  ;;  %v8145_v34 = vpop.eup %4728 }
 0x478   :  { %4734 = vpow2.f32 %v3464_v3  ;;  %v3693_v30 = vsel %vm9509_vm12, %v3692_v44, %v3691_v60  ;;  %v3642_v37 = vrot.slane %v8145_v34, 5  ;;  %vm9565_vm12 = vmmov %vm9415_vm7 }
 0x479   :  { %4736 = vpow2.f32 %v3466_v48  ;;  %v3734_v22 = vsel %vm9394_vm0, %v3693_v30, 0.0 }
 0x47a   :  { %3735 = vadd.xlane.f32.xlu1 %v3734_v22  ;;  %v3643_v3 = vsel %vm921_vm3, %v3642_v37, %v3641_v7 }
 0x47c   :  { %v8151_v17 = vpop.eup %4730 }
 0x47d   :  { %9510 = vst [vmem:[#allocation102_spill] sm:$0xff] %v8151_v17  ;;  %v8153_v16 = vpop.eup %4732  ;;  %v3644_v63 = vrot.slane %v8151_v17, 4 }
 0x47e   :  { %9511 = vst [vmem:[#allocation103_spill] sm:$0xff] %v8153_v16  ;;  %v8157_v48 = vpop.eup %4734  ;;  %v3646_v18 = vrot.slane %v8153_v16, 3  ;;  %v9516_v16 = vld [vmem:[#allocation22_spill] sm:$0xff] }
 0x47f   :  { %9512 = vst [vmem:[#allocation104_spill] sm:$0xff] %v8157_v48  ;;  %v8160_v55 = vpop.eup %4736  ;;  %v3645_v35 = vsel %vm923_vm4, %v3644_v63, %v3643_v3  ;;  %v3648_v11 = vrot.slane %v8157_v48, 2 }
 0x480   :  { %9513 = vst [vmem:[#allocation105_spill] sm:$0xff] %v8160_v55  ;;  %v3647_v62 = vsel %vm925_vm5, %v3646_v18, %v3645_v35  ;;  %v3650_v44 = vrot.slane %v8160_v55, 1 }
 0x481   :  { %v3649_v54 = vsel %vm927_vm6, %v3648_v11, %v3647_v62 }
 0x482   :  { %v3651_v60 = vsel %vm9415_vm7, %v3650_v44, %v3649_v54 }
 0x483   :  { %v3725_v30 = vsel %vm9514_vm13, %v3651_v60, 0.0  ;;  %vm9579_vm13 = vmmov %vm9394_vm0 }
 0x484   :  { %3726 = vadd.xlane.f32.xlu2 %v3725_v30 }
 0x4b1   :  { %v3721_v7 = vpop.xlane.xlu0 %3720 }
 0x4c0   :  { %v3718_v22 = vpop.xlane.xlu2 %3717 }
 0x4c1   :  { %4738 = vrcp.f32 %v3718_v22 }
 0x4c2   :  { %4740 = vrcp.f32 %v3721_v7 }
 0x4c7   :  { %v4739_v0 = vpop.eup %4738 }
 0x4c8   :  { %v3724_v37 = vpop.xlane.xlu0 %3723  ;;  %v3756_v3 = vrot.slane %v4739_v0, 1  ;;  %v3757_v63 = vrot.slane %v4739_v0, 2  ;;  %v3758_v15 = vrot.slane %v4739_v0, 3  ;;  %v3759_v18 = vrot.slane %v4739_v0, 4  ;;  %v4741_v55 = vpop.eup %4740 }
 0x4c9   :  { %4742 = vrcp.f32 %v3724_v37  ;;  %v3760_v35 = vrot.slane %v4739_v0, 5  ;;  %v3761_v45 = vrot.slane %v4739_v0, 6  ;;  %v3762_v42 = vrot.slane %v4739_v0, 7  ;;  %v9515_v37 = vld [vmem:[#allocation21_spill] sm:$0xff] }
 0x4ca   :  { %v3876_v11 = vmul.f32 %v4739_v0, %v7750_v20  ;;  %v3877_v62 = vmul.f32 %v7755_v49, %v3756_v3  ;;  %v3878_v44 = vmul.f32 %v7759_v24, %v3757_v63  ;;  %v3879_v54 = vmul.f32 %v7837_v13, %v3758_v15  ;;  %v9517_v0 = vld [vmem:[#allocation23_spill] sm:$0xff]  ;;  %v9518_v3 = vld [vmem:[#allocation24_spill] sm:$0xff]  ;;  %v9519_v63 = vld [vmem:[#allocation25_spill] sm:$0xff] }
 0x4cb   :  { %v3880_v60 = vmul.f32 %v7860_v25, %v3759_v18  ;;  %v3881_v30 = vmul.f32 %v7877_v59, %v3760_v35  ;;  %v3882_v7 = vmul.f32 %v7904_v39, %v3761_v45  ;;  %v3883_v22 = vmul.f32 %v7908_v23, %v3762_v42  ;;  %v9520_v25 = vld [vmem:[#allocation26_spill] sm:$0xff]  ;;  %v9521_v39 = vld [vmem:[#allocation27_spill] sm:$0xff] }
 0x4cc   :  { %v3940_v56 = vmul.f32 %v3876_v11, %v9515_v37  ;;  %v3941_v20 = vmul.f32 %v3877_v62, %v9516_v16  ;;  %v3942_v49 = vmul.f32 %v3878_v44, %v9517_v0  ;;  %v3943_v24 = vmul.f32 %v3879_v54, %v9518_v3  ;;  %v9522_v23 = vld [vmem:[#allocation30_spill] sm:$0xff] }
 0x4cd   :  { %v3944_v13 = vmul.f32 %v3880_v60, %v9519_v63  ;;  %v3945_v59 = vmul.f32 %v3881_v30, %v9520_v25  ;;  %v3946_v45 = vmul.f32 %v3882_v7, %v9521_v39  ;;  %v3947_v42 = vmul.f32 %v3883_v22, %v9522_v23 }
 0x4ce   :  { %v4068_v18 = vrot.slane %v3941_v20, 7  ;;  %v4070_v35 = vrot.slane %v3942_v49, 6  ;;  %v4072_v11 = vrot.slane %v3943_v24, 5  ;;  %v3763_v0 = vrot.slane %v4741_v55, 1 }
 0x4cf   :  { %v8182_v15 = vpop.eup %4742  ;;  %v4074_v37 = vrot.slane %v3944_v13, 4  ;;  %v4076_v16 = vrot.slane %v3945_v59, 3  ;;  %v4078_v62 = vrot.slane %v3946_v45, 2  ;;  %v4080_v44 = vrot.slane %v3947_v42, 1  ;;  %v9524_v45 = vld [vmem:[#allocation77_spill] sm:$0xff]  ;;  %v9525_v42 = vld [vmem:[#allocation78_spill] sm:$0xff] }
 0x4d0   :  { %v4069_v54 = vsel %vm917_vm1, %v4068_v18, %v3940_v56  ;;  %v3764_v60 = vrot.slane %v4741_v55, 2  ;;  %v3765_v3 = vrot.slane %v4741_v55, 3  ;;  %v3766_v63 = vrot.slane %v4741_v55, 4  ;;  %v9523_v56 = vld [vmem:[#allocation81_spill] sm:$0xff] }
 0x4d1   :  { %v3767_v30 = vrot.slane %v4741_v55, 5  ;;  %v3768_v25 = vrot.slane %v4741_v55, 6  ;;  %v3769_v7 = vrot.slane %v4741_v55, 7  ;;  %v3884_v20 = vmul.f32 %v4741_v55, %v7763_v33  ;;  %v9527_v33 = vld [vmem:[#allocation13_spill] sm:$0xff] }
 0x4d2   :  { %v3885_v49 = vmul.f32 %v7768_v28, %v3763_v0  ;;  %v3886_v24 = vmul.f32 %v7772_v51, %v3764_v60  ;;  %v3887_v39 = vmul.f32 %v9523_v56, %v3765_v3  ;;  %v3888_v23 = vmul.f32 %v9524_v45, %v3766_v63  ;;  %v9528_v0 = vld [vmem:[#allocation14_spill] sm:$0xff]  ;;  %v9530_v3 = vld [vmem:[#allocation16_spill] sm:$0xff] }
 0x4d3   :  { %v3889_v18 = vmul.f32 %v9525_v42, %v3767_v30  ;;  %v3948_v55 = vmul.f32 %v3884_v20, %v9527_v33  ;;  %v9532_v30 = vld [vmem:[#allocation17_spill] sm:$0xff]  ;;  %v9536_v56 = vld [vmem:[#allocation20_spill] sm:$0xff] }
 0x4d4   :  { %v3949_v60 = vmul.f32 %v3885_v49, %v9528_v0 }
 0x4d5   :  { %v3730_v48 = vpop.xlane.xlu1 %3729 }
 0x4d6   :  { %4744 = vrcp.f32 %v3730_v48  ;;  %v4071_v48 = vsel %vm919_vm2, %v4070_v35, %v4069_v54  ;;  %v9526_v54 = vld [vmem:[#allocation79_spill] sm:$0xff] }
 0x4d7   :  { %v4073_v22 = vsel %vm921_vm3, %v4072_v11, %v4071_v48  ;;  %v3890_v17 = vmul.f32 %v9526_v54, %v3768_v25  ;;  %v3891_v11 = vmul.f32 %v7831_v43, %v3769_v7  ;;  %v9535_v7 = vld [vmem:[#allocation19_spill] sm:$0xff] }
 0x4d8   :  { %v4075_v59 = vsel %vm923_vm4, %v4074_v37, %v4073_v22  ;;  %v9529_v37 = vld [vmem:[#allocation15_spill] sm:$0xff]  ;;  %v3951_v22 = vmul.f32 %v3887_v39, %v9530_v3 }
 0x4d9   :  { %v4077_v35 = vsel %vm925_vm5, %v4076_v16, %v4075_v59  ;;  %v3950_v48 = vmul.f32 %v3886_v24, %v9529_v37  ;;  %v3952_v16 = vmul.f32 %v3888_v23, %v9532_v30  ;;  %v9533_v59 = vld [vmem:[#allocation18_spill] sm:$0xff]  ;;  %v3954_v20 = vmul.f32 %v3890_v17, %v9535_v7 }
 0x4da   :  { %v4079_v51 = vsel %vm927_vm6, %v4078_v62, %v4077_v35  ;;  %v3953_v25 = vmul.f32 %v3889_v18, %v9533_v59  ;;  %v3955_v45 = vmul.f32 %v3891_v11, %v9536_v56  ;;  %v4082_v62 = vrot.slane %v3949_v60, 7  ;;  %v9539_v56 = vld [vmem:[#allocation40_spill] sm:$0xff] }
 0x4db   :  { %v4081_v63 = vsel %vm9531_vm14, %v4080_v44, %v4079_v51  ;;  %v4084_v49 = vrot.slane %v3950_v48, 6  ;;  %v4086_v42 = vrot.slane %v3951_v22, 5  ;;  %v4088_v24 = vrot.slane %v3952_v16, 4  ;;  %vm9586_vm14 = vmmov %vm9415_vm7 }
 0x4dc   :  { %v4745_v13 = vpop.eup %4744  ;;  %v4188_v43 = vsel %vm9534_vm15, %v4081_v63, 0.0  ;;  %v4090_v35 = vrot.slane %v3953_v25, 3  ;;  %v4083_v39 = vsel %vm917_vm1, %v4082_v62, %v3948_v55  ;;  %v4092_v54 = vrot.slane %v3954_v20, 2  ;;  %v9540_v62 = vld [vmem:[#allocation41_spill] sm:$0xff]  ;;  %vm9590_vm15 = vmmov %vm9394_vm0 }
 0x4dd   :  { %4189 = vadd.xlane.f32.xlu1 %v4188_v43  ;;  %v4094_v44 = vrot.slane %v3955_v45, 1  ;;  %v3784_v33 = vrot.slane %v4745_v13, 1  ;;  %v4085_v23 = vsel %vm919_vm2, %v4084_v49, %v4083_v39  ;;  %v3785_v18 = vrot.slane %v4745_v13, 2  ;;  %v9542_v49 = vld [vmem:[#allocation42_spill] sm:$0xff] }
 0x4de   :  { %v3787_v51 = vrot.slane %v4745_v13, 4  ;;  %v4087_v17 = vsel %vm921_vm3, %v4086_v42, %v4085_v23  ;;  %v3788_v11 = vrot.slane %v4745_v13, 5  ;;  %v3789_v60 = vrot.slane %v4745_v13, 6  ;;  %v9543_v42 = vld [vmem:[#allocation43_spill] sm:$0xff] }
 0x4df   :  { %v3733_v28 = vpop.xlane.xlu2 %3732  ;;  %v3790_v37 = vrot.slane %v4745_v13, 7  ;;  %v4089_v3 = vsel %vm923_vm4, %v4088_v24, %v4087_v17  ;;  %v3908_v55 = vmul.f32 %v4745_v13, %v7887_v26  ;;  %v3909_v22 = vmul.f32 %v7894_v40, %v3784_v33 }
 0x4e0   :  { %4746 = vrcp.f32 %v3733_v28  ;;  %v3786_v28 = vrot.slane %v4745_v13, 3  ;;  %v4091_v63 = vsel %vm925_vm5, %v4090_v35, %v4089_v3  ;;  %v3910_v30 = vmul.f32 %v7899_v31, %v3785_v18  ;;  %v9538_v13 = vld [vmem:[#allocation39_spill] sm:$0xff]  ;;  %v9544_v35 = vld [vmem:[#allocation44_spill] sm:$0xff] }
 0x4e1   :  { %v3912_v59 = vmul.f32 %v8006_v21, %v3787_v51  ;;  %v4093_v25 = vsel %vm927_vm6, %v4092_v54, %v4091_v63  ;;  %v3913_v43 = vmul.f32 %v8010_v5, %v3788_v11  ;;  %v3914_v7 = vmul.f32 %v8015_v47, %v3789_v60  ;;  %v9545_v47 = vld [vmem:[#allocation45_spill] sm:$0xff] }
 0x4e2   :  { %v3911_v16 = vmul.f32 %v8001_v32, %v3786_v28  ;;  %v3915_v20 = vmul.f32 %v8021_v38, %v3790_v37  ;;  %v4095_v26 = vsel %vm9537_vm8, %v4094_v44, %v4093_v25  ;;  %v3972_v40 = vmul.f32 %v3908_v55, %v9538_v13  ;;  %v9546_v38 = vld [vmem:[#allocation46_spill] sm:$0xff]  ;;  %vm9606_vm8 = vmmov %vm9415_vm7 }
 0x4e3   :  { %v3973_v45 = vmul.f32 %v3909_v22, %v9539_v56  ;;  %v3974_v31 = vmul.f32 %v3910_v30, %v9540_v62  ;;  %v4191_v32 = vsel %vm9541_vm9, %v4095_v26, 0.0  ;;  %v3976_v24 = vmul.f32 %v3912_v59, %v9543_v42  ;;  %v9550_v42 = vld [vmem:[#allocation7_spill] sm:$0xff]  ;;  %vm9609_vm9 = vmmov %vm9394_vm0 }
 0x4e4   :  { %v3975_v21 = vmul.f32 %v3911_v16, %v9542_v49  ;;  %v3977_v5 = vmul.f32 %v3913_v43, %v9544_v35  ;;  %4192 = vadd.xlane.f32.xlu2 %v4191_v32  ;;  %v3978_v39 = vmul.f32 %v3914_v7, %v9545_v47  ;;  %v3979_v54 = vmul.f32 %v3915_v20, %v9546_v38  ;;  %v9547_v49 = vld [vmem:[#allocation5_spill] sm:$0xff] }
 0x4e5   :  { %v4124_v44 = vrot.slane %v3973_v45, 7  ;;  %v4126_v33 = vrot.slane %v3974_v31, 6  ;;  %v4130_v51 = vrot.slane %v3976_v24, 4  ;;  %v9551_v24 = vld [vmem:[#allocation8_spill] sm:$0xff] }
 0x4e6   :  { %v3739_v0 = vpop.xlane.xlu0 %3738  ;;  %v4747_v48 = vpop.eup %4746  ;;  %v4128_v28 = vrot.slane %v3975_v21, 5  ;;  %v4134_v60 = vrot.slane %v3978_v39, 2  ;;  %v4136_v37 = vrot.slane %v3979_v54, 1  ;;  %v9556_v54 = vld [vmem:[#allocation12_spill] sm:$0xff] }
 0x4e7   :  { %4748 = vrcp.f32 %v3739_v0  ;;  %v4132_v0 = vrot.slane %v3977_v5, 3  ;;  %v3791_v17 = vrot.slane %v4747_v48, 1  ;;  %v4125_v11 = vsel %vm917_vm1, %v4124_v44, %v3972_v40  ;;  %v9553_v5 = vld [vmem:[#allocation9_spill] sm:$0xff] }
 0x4e8   :  { %v4127_v3 = vsel %vm919_vm2, %v4126_v33, %v4125_v11  ;;  %v3792_v55 = vrot.slane %v4747_v48, 2  ;;  %v3793_v22 = vrot.slane %v4747_v48, 3  ;;  %v3794_v63 = vrot.slane %v4747_v48, 4 }
 0x4e9   :  { %v4129_v30 = vsel %vm921_vm3, %v4128_v28, %v4127_v3  ;;  %v3795_v16 = vrot.slane %v4747_v48, 5  ;;  %v3796_v59 = vrot.slane %v4747_v48, 6  ;;  %v3797_v25 = vrot.slane %v4747_v48, 7 }
 0x4ea   :  { %v4131_v43 = vsel %vm923_vm4, %v4130_v51, %v4129_v30  ;;  %v3916_v7 = vmul.f32 %v4747_v48, %v7787_v58  ;;  %v3917_v20 = vmul.f32 %v7794_v46, %v3791_v17  ;;  %v3918_v26 = vmul.f32 %v7799_v2, %v3792_v55  ;;  %v9549_v2 = vld [vmem:[#allocation6_spill] sm:$0xff] }
 0x4eb   :  { %v4133_v13 = vsel %vm925_vm5, %v4132_v0, %v4131_v43  ;;  %v3919_v40 = vmul.f32 %v8048_v27, %v3793_v22  ;;  %v3920_v56 = vmul.f32 %v8052_v9, %v3794_v63  ;;  %v3921_v45 = vmul.f32 %v8057_v52, %v3795_v16 }
 0x4ec   :  { %v4135_v62 = vsel %vm927_vm6, %v4134_v60, %v4133_v13  ;;  %v3922_v31 = vmul.f32 %v8065_v19, %v3796_v59  ;;  %v3923_v32 = vmul.f32 %v8070_v57, %v3797_v25  ;;  %v3980_v58 = vmul.f32 %v3916_v7, %v9547_v49  ;;  %v9554_v19 = vld [vmem:[#allocation10_spill] sm:$0xff]  ;;  %v9555_v57 = vld [vmem:[#allocation11_spill] sm:$0xff]  ;;  %v9560_v49 = vld [vmem:[#allocation84_spill] sm:$0xff] }
 0x4ed   :  { %v8235_v23 = vpop.eup %4748  ;;  %v3736_v18 = vpop.xlane.xlu1 %3735  ;;  %v4137_v46 = vsel %vm9548_vm10, %v4136_v37, %v4135_v62  ;;  %v3981_v21 = vmul.f32 %v3917_v20, %v9549_v2  ;;  %v3982_v27 = vmul.f32 %v3918_v26, %v9550_v42  ;;  %v3983_v9 = vmul.f32 %v3919_v40, %v9551_v24  ;;  %v9557_v26 = vld [vmem:[#allocation80_spill] sm:$0xff]  ;;  %v9558_v40 = vld [vmem:[#allocation82_spill] sm:$0xff]  ;;  %v9563_v42 = vld [vmem:[#allocation31_spill] sm:$0xff] }
 0x4ee   :  { %4750 = vrcp.f32 %v3736_v18  ;;  %v4200_v52 = vsel %vm9552_vm11, %v4137_v46, 0.0  ;;  %v3984_v47 = vmul.f32 %v3920_v56, %v9553_v5  ;;  %v3985_v39 = vmul.f32 %v3921_v45, %v9554_v19  ;;  %v9561_v46 = vld [vmem:[#allocation75_spill] sm:$0xff]  ;;  %v9567_v5 = vld [vmem:[#allocation34_spill] sm:$0xff]  ;;  %vm9613_vm10 = vmmov %vm9415_vm7 }
 0x4ef   :  { %v3986_v38 = vmul.f32 %v3922_v31, %v9555_v57  ;;  %4201 = vadd.xlane.f32.xlu0 %v4200_v52  ;;  %v3987_v44 = vmul.f32 %v3923_v32, %v9556_v54  ;;  %v4138_v33 = vrot.slane %v3981_v21, 7  ;;  %v4140_v18 = vrot.slane %v3982_v27, 6  ;;  %v9559_v31 = vld [vmem:[#allocation83_spill] sm:$0xff]  ;;  %v9564_v27 = vld [vmem:[#allocation32_spill] sm:$0xff]  ;;  %vm9614_vm11 = vmmov %vm9394_vm0 }
 0x4f0   :  { %v4142_v28 = vrot.slane %v3983_v9, 5  ;;  %v4144_v51 = vrot.slane %v3984_v47, 4  ;;  %v4146_v0 = vrot.slane %v3985_v39, 3  ;;  %v3770_v37 = vrot.slane %v8182_v15, 1  ;;  %v9568_v19 = vld [vmem:[#allocation35_spill] sm:$0xff] }
 0x4f1   :  { %v4148_v17 = vrot.slane %v3986_v38, 2  ;;  %v4139_v11 = vsel %vm917_vm1, %v4138_v33, %v3980_v58  ;;  %v4150_v60 = vrot.slane %v3987_v44, 1  ;;  %v3771_v3 = vrot.slane %v8182_v15, 2  ;;  %v9569_v38 = vld [vmem:[#allocation36_spill] sm:$0xff]  ;;  %v9570_v44 = vld [vmem:[#allocation37_spill] sm:$0xff] }
 0x4f2   :  { %v4141_v55 = vsel %vm919_vm2, %v4140_v18, %v4139_v11  ;;  %v3772_v22 = vrot.slane %v8182_v15, 3  ;;  %v3773_v63 = vrot.slane %v8182_v15, 4  ;;  %v3774_v30 = vrot.slane %v8182_v15, 5  ;;  %v9571_v18 = vld [vmem:[#allocation38_spill] sm:$0xff] }
 0x4f3   :  { %v4143_v16 = vsel %vm921_vm3, %v4142_v28, %v4141_v55  ;;  %v3775_v59 = vrot.slane %v8182_v15, 6  ;;  %v3776_v25 = vrot.slane %v8182_v15, 7  ;;  %v3892_v43 = vmul.f32 %v8182_v15, %v7844_v4  ;;  %v9562_v15 = vld [vmem:[#allocation69_spill] sm:$0xff] }
 0x4f4   :  { %v8252_v48 = vpop.eup %4750  ;;  %v4145_v7 = vsel %vm923_vm4, %v4144_v51, %v4143_v16  ;;  %v3893_v20 = vmul.f32 %v7850_v14, %v3770_v37  ;;  %v3894_v13 = vmul.f32 %v9557_v26, %v3771_v3  ;;  %v3895_v56 = vmul.f32 %v9558_v40, %v3772_v22 }
 0x4f5   :  { %v4147_v62 = vsel %vm925_vm5, %v4146_v0, %v4145_v7  ;;  %v3896_v32 = vmul.f32 %v9559_v31, %v3773_v63  ;;  %v3897_v58 = vmul.f32 %v9560_v49, %v3774_v30  ;;  %v3898_v2 = vmul.f32 %v9561_v46, %v3775_v59 }
 0x4f6   :  { %v4149_v4 = vsel %vm927_vm6, %v4148_v17, %v4147_v62  ;;  %v3899_v21 = vmul.f32 %v9562_v15, %v3776_v25  ;;  %v3956_v14 = vmul.f32 %v3892_v43, %v9563_v42  ;;  %v3957_v24 = vmul.f32 %v3893_v20, %v9564_v27  ;;  %v9576_v42 = vld [vmem:[#allocation49_spill] sm:$0xff] }
 0x4f7   :  { %v3727_v35 = vpop.xlane.xlu2 %3726  ;;  %v4151_v9 = vsel %vm9565_vm12, %v4150_v60, %v4149_v4  ;;  %v3959_v47 = vmul.f32 %v3895_v56, %v9567_v5  ;;  %v3960_v39 = vmul.f32 %v3896_v32, %v9568_v19  ;;  %v3961_v54 = vmul.f32 %v3897_v58, %v9569_v38  ;;  %v9574_v4 = vld [vmem:[#allocation47_spill] sm:$0xff] }
 0x4f8   :  { %4752 = vrcp.f32 %v3727_v35  ;;  %v9566_v35 = vld [vmem:[#allocation33_spill] sm:$0xff]  ;;  %v4203_v57 = vsel %vm9394_vm0, %v4151_v9, 0.0  ;;  %v3962_v33 = vmul.f32 %v3898_v2, %v9570_v44  ;;  %v3963_v28 = vmul.f32 %v3899_v21, %v9571_v18  ;;  %v9572_v2 = vld [vmem:[#allocation28_spill] sm:$0xff] }
 0x4f9   :  { %v3958_v52 = vmul.f32 %v3894_v13, %v9566_v35  ;;  %4204 = vadd.xlane.f32.xlu1 %v4203_v57  ;;  %v4096_v51 = vrot.slane %v3957_v24, 7  ;;  %v4100_v17 = vrot.slane %v3959_v47, 5  ;;  %v4102_v11 = vrot.slane %v3960_v39, 4  ;;  %v9575_v21 = vld [vmem:[#allocation48_spill] sm:$0xff]  ;;  %v9578_v24 = vld [vmem:[#allocation51_spill] sm:$0xff] }
 0x4fa   :  { %v4104_v60 = vrot.slane %v3961_v54, 3  ;;  %v4106_v37 = vrot.slane %v3962_v33, 2  ;;  %v4108_v3 = vrot.slane %v3963_v28, 1  ;;  %v3798_v55 = vrot.slane %v8252_v48, 1  ;;  %v9580_v9 = vld [vmem:[#allocation52_spill] sm:$0xff] }
 0x4fb   :  { %v4098_v0 = vrot.slane %v3958_v52, 6  ;;  %v4097_v22 = vsel %vm917_vm1, %v4096_v51, %v3956_v14  ;;  %v3799_v63 = vrot.slane %v8252_v48, 2  ;;  %v3800_v30 = vrot.slane %v8252_v48, 3  ;;  %v9577_v14 = vld [vmem:[#allocation50_spill] sm:$0xff] }
 0x4fc   :  { %v3801_v16 = vrot.slane %v8252_v48, 4  ;;  %v3802_v25 = vrot.slane %v8252_v48, 5  ;;  %v3803_v43 = vrot.slane %v8252_v48, 6  ;;  %v3804_v7 = vrot.slane %v8252_v48, 7 }
 0x4fd   :  { %v4099_v59 = vsel %vm919_vm2, %v4098_v0, %v4097_v22  ;;  %v3924_v26 = vmul.f32 %v8252_v48, %v8030_v50  ;;  %v3925_v13 = vmul.f32 %v8039_v29, %v3798_v55  ;;  %v3926_v40 = vmul.f32 %v8044_v6, %v3799_v63  ;;  %v9573_v48 = vld [vmem:[#allocation29_spill] sm:$0xff] }
 0x4fe   :  { %v8279_v45 = vpop.eup %4752  ;;  %v4101_v20 = vsel %vm921_vm3, %v4100_v17, %v4099_v59  ;;  %v3927_v62 = vmul.f32 %v8108_v61, %v3800_v30  ;;  %v3928_v31 = vmul.f32 %v8122_v41, %v3801_v16  ;;  %v3929_v32 = vmul.f32 %v8127_v53, %v3802_v25  ;;  %v9581_v16 = vld [vmem:[#allocation102_spill] sm:$0xff]  ;;  %v9582_v25 = vld [vmem:[#allocation103_spill] sm:$0xff] }
 0x4ff   :  { %v4103_v56 = vsel %vm923_vm4, %v4102_v11, %v4101_v20  ;;  %v3930_v58 = vmul.f32 %v8131_v36, %v3803_v43  ;;  %v3931_v46 = vmul.f32 %v8135_v8, %v3804_v7  ;;  %v3988_v50 = vmul.f32 %v3924_v26, %v9572_v2  ;;  %v9583_v7 = vld [vmem:[#allocation104_spill] sm:$0xff]  ;;  %v9592_v2 = vld [vmem:[#allocation66_spill] sm:$0xff] }
 0x500   :  { %v4105_v49 = vsel %vm925_vm5, %v4104_v60, %v4103_v56  ;;  %v3989_v6 = vmul.f32 %v3925_v13, %v9573_v48  ;;  %v3990_v15 = vmul.f32 %v3926_v40, %v9574_v4  ;;  %v3991_v61 = vmul.f32 %v3927_v62, %v9575_v21  ;;  %v9584_v13 = vld [vmem:[#allocation105_spill] sm:$0xff]  ;;  %v9587_v56 = vld [vmem:[#allocation63_spill] sm:$0xff]  ;;  %v9588_v62 = vld [vmem:[#allocation64_spill] sm:$0xff] }
 0x501   :  { %v4107_v29 = vsel %vm927_vm6, %v4106_v37, %v4105_v49  ;;  %v3992_v53 = vmul.f32 %v3928_v31, %v9576_v42  ;;  %v3993_v27 = vmul.f32 %v3929_v32, %v9577_v14  ;;  %v3994_v36 = vmul.f32 %v3930_v58, %v9578_v24  ;;  %v9589_v31 = vld [vmem:[#allocation65_spill] sm:$0xff] }
 0x502   :  { %v4109_v41 = vsel %vm9415_vm7, %v4108_v3, %v4107_v29  ;;  %v3995_v35 = vmul.f32 %v3931_v46, %v9580_v9  ;;  %v4152_v52 = vrot.slane %v3989_v6, 7  ;;  %v4154_v5 = vrot.slane %v3990_v15, 6  ;;  %v9591_v58 = vld [vmem:[#allocation61_spill] sm:$0xff]  ;;  %v9593_v29 = vld [vmem:[#allocation67_spill] sm:$0xff]  ;;  %v9594_v6 = vld [vmem:[#allocation68_spill] sm:$0xff] }
 0x503   :  { %v4194_v8 = vsel %vm9579_vm13, %v4109_v41, 0.0  ;;  %v4156_v47 = vrot.slane %v3991_v61, 5  ;;  %v4158_v19 = vrot.slane %v3992_v53, 4  ;;  %v4160_v39 = vrot.slane %v3993_v27, 3 }
 0x504   :  { %4195 = vadd.xlane.f32.xlu2 %v4194_v8  ;;  %v4162_v57 = vrot.slane %v3994_v36, 2  ;;  %v4153_v38 = vsel %vm917_vm1, %v4152_v52, %v3988_v50  ;;  %v4164_v54 = vrot.slane %v3995_v35, 1  ;;  %v3777_v44 = vrot.slane %v8279_v45, 1 }
 0x505   :  { %v3778_v33 = vrot.slane %v8279_v45, 2  ;;  %v4155_v18 = vsel %vm919_vm2, %v4154_v5, %v4153_v38  ;;  %v3779_v28 = vrot.slane %v8279_v45, 3  ;;  %v3780_v51 = vrot.slane %v8279_v45, 4 }
 0x506   :  { %v3781_v0 = vrot.slane %v8279_v45, 5  ;;  %v4157_v17 = vsel %vm921_vm3, %v4156_v47, %v4155_v18  ;;  %v3782_v11 = vrot.slane %v8279_v45, 6  ;;  %v3783_v60 = vrot.slane %v8279_v45, 7  ;;  %v9598_v18 = vld [vmem:[#allocation73_spill] sm:$0xff] }
 0x507   :  { %v3900_v37 = vmul.f32 %v8279_v45, %v7945_v1  ;;  %v4159_v3 = vsel %vm923_vm4, %v4158_v19, %v4157_v17  ;;  %v3901_v55 = vmul.f32 %v7951_v10, %v3777_v44  ;;  %v3902_v22 = vmul.f32 %v7956_v12, %v3778_v33  ;;  %v9585_v45 = vld [vmem:[#allocation62_spill] sm:$0xff]  ;;  %v9600_v17 = vld [vmem:[#allocation76_spill] sm:$0xff] }
 0x508   :  { %v3903_v63 = vmul.f32 %v8145_v34, %v3779_v28  ;;  %v4161_v30 = vsel %vm925_vm5, %v4160_v39, %v4159_v3  ;;  %v3904_v59 = vmul.f32 %v9581_v16, %v3780_v51  ;;  %v3905_v43 = vmul.f32 %v9582_v25, %v3781_v0  ;;  %v9595_v19 = vld [vmem:[#allocation70_spill] sm:$0xff]  ;;  %v9601_v3 = vld [vmem:[#allocation107_spill] sm:$0xff] }
 0x509   :  { %v3906_v20 = vmul.f32 %v9583_v7, %v3782_v11  ;;  %v4163_v26 = vsel %vm927_vm6, %v4162_v57, %v4161_v30  ;;  %v3907_v1 = vmul.f32 %v9584_v13, %v3783_v60  ;;  %v3965_v40 = vmul.f32 %v3901_v55, %v9585_v45  ;;  %v9596_v57 = vld [vmem:[#allocation71_spill] sm:$0xff]  ;;  %v9599_v51 = vld [vmem:[#allocation74_spill] sm:$0xff] }
 0x50a   :  { %v4165_v10 = vsel %vm9586_vm14, %v4164_v54, %v4163_v26  ;;  %v3966_v12 = vmul.f32 %v3902_v22, %v9587_v56  ;;  %v3967_v34 = vmul.f32 %v3903_v63, %v9588_v62  ;;  %v3968_v32 = vmul.f32 %v3904_v59, %v9589_v31  ;;  %v9597_v54 = vld [vmem:[#allocation72_spill] sm:$0xff]  ;;  %v9602_v22 = vld [vmem:[#allocation101_spill] sm:$0xff]  ;;  %v9603_v30 = vld [vmem:[#allocation54_spill] sm:$0xff] }
 0x50b   :  { %v4206_v49 = vsel %vm9590_vm15, %v4165_v10, 0.0  ;;  %v3964_v46 = vmul.f32 %v3900_v37, %v9591_v58  ;;  %v3969_v50 = vmul.f32 %v3905_v43, %v9592_v2  ;;  %v3970_v48 = vmul.f32 %v3906_v20, %v9593_v29  ;;  %v9604_v59 = vld [vmem:[#allocation55_spill] sm:$0xff]  ;;  %v9605_v43 = vld [vmem:[#allocation56_spill] sm:$0xff]  ;;  %v9607_v26 = vld [vmem:[#allocation53_spill] sm:$0xff] }
 0x50c   :  { %4207 = vadd.xlane.f32.xlu0 %v4206_v49  ;;  %v3971_v4 = vmul.f32 %v3907_v1, %v9594_v6  ;;  %v4110_v15 = vrot.slane %v3965_v40, 7  ;;  %v4112_v21 = vrot.slane %v3966_v12, 6  ;;  %v4114_v61 = vrot.slane %v3967_v34, 5  ;;  %v9608_v1 = vld [vmem:[#allocation57_spill] sm:$0xff]  ;;  %v9610_v10 = vld [vmem:[#allocation58_spill] sm:$0xff]  ;;  %v9611_v34 = vld [vmem:[#allocation59_spill] sm:$0xff] }
 0x50d   :  { %v4116_v41 = vrot.slane %v3968_v32, 4  ;;  %v4118_v42 = vrot.slane %v3969_v50, 3  ;;  %v4120_v53 = vrot.slane %v3970_v48, 2  ;;  %v3805_v14 = vrot.slane %v8235_v23, 1  ;;  %v9612_v32 = vld [vmem:[#allocation60_spill] sm:$0xff] }
 0x50e   :  { %v4111_v27 = vsel %vm917_vm1, %v4110_v15, %v3964_v46  ;;  %v3806_v24 = vrot.slane %v8235_v23, 2  ;;  %v3807_v36 = vrot.slane %v8235_v23, 3  ;;  %v3808_v8 = vrot.slane %v8235_v23, 4 }
 0x50f   :  { %v4113_v9 = vsel %vm919_vm2, %v4112_v21, %v4111_v27  ;;  %v3809_v35 = vrot.slane %v8235_v23, 5  ;;  %v3810_v52 = vrot.slane %v8235_v23, 6  ;;  %v3811_v5 = vrot.slane %v8235_v23, 7 }
 0x510   :  { %v4115_v47 = vsel %vm921_vm3, %v4114_v61, %v4113_v9  ;;  %v3932_v39 = vmul.f32 %v8235_v23, %v9595_v19  ;;  %v3933_v38 = vmul.f32 %v9596_v57, %v3805_v14  ;;  %v3934_v44 = vmul.f32 %v9597_v54, %v3806_v24 }
 0x511   :  { %v4117_v33 = vsel %vm923_vm4, %v4116_v41, %v4115_v47  ;;  %v3935_v28 = vmul.f32 %v9598_v18, %v3807_v36  ;;  %v3936_v0 = vmul.f32 %v9599_v51, %v3808_v8  ;;  %v3937_v11 = vmul.f32 %v9600_v17, %v3809_v35 }
 0x512   :  { %v4119_v60 = vsel %vm925_vm5, %v4118_v42, %v4117_v33  ;;  %v4122_v37 = vrot.slane %v3971_v4, 1  ;;  %v3938_v55 = vmul.f32 %v9601_v3, %v3810_v52  ;;  %v3939_v63 = vmul.f32 %v9602_v22, %v3811_v5 }
 0x513   :  { %v4121_v23 = vsel %vm927_vm6, %v4120_v53, %v4119_v60  ;;  %v3997_v16 = vmul.f32 %v3933_v38, %v9603_v30  ;;  %v3998_v25 = vmul.f32 %v3934_v44, %v9604_v59  ;;  %v3999_v7 = vmul.f32 %v3935_v28, %v9605_v43 }
 0x514   :  { %v4123_v20 = vsel %vm9606_vm8, %v4122_v37, %v4121_v23  ;;  %v3996_v13 = vmul.f32 %v3932_v39, %v9607_v26  ;;  %v4000_v45 = vmul.f32 %v3936_v0, %v9608_v1  ;;  %v4001_v56 = vmul.f32 %v3937_v11, %v9610_v10 }
 0x515   :  { %v4197_v40 = vsel %vm9609_vm9, %v4123_v20, 0.0  ;;  %v4166_v12 = vrot.slane %v3997_v16, 7  ;;  %v4168_v62 = vrot.slane %v3998_v25, 6  ;;  %v4002_v31 = vmul.f32 %v3938_v55, %v9611_v34 }
 0x516   :  { %4198 = vadd.xlane.f32.xlu1 %v4197_v40  ;;  %v4003_v49 = vmul.f32 %v3939_v63, %v9612_v32  ;;  %v4170_v46 = vrot.slane %v3999_v7, 5  ;;  %v4172_v50 = vrot.slane %v4000_v45, 4  ;;  %v4174_v48 = vrot.slane %v4001_v56, 3 }
 0x517   :  { %v4167_v58 = vsel %vm917_vm1, %v4166_v12, %v3996_v13  ;;  %v4176_v4 = vrot.slane %v4002_v31, 2  ;;  %v4356_v60 = vlaneseq }
 0x518   :  { %v4169_v2 = vsel %vm919_vm2, %v4168_v62, %v4167_v58  ;;  %v4178_v21 = vrot.slane %v4003_v49, 1 }
 0x519   :  { %v4171_v29 = vsel %vm921_vm3, %v4170_v46, %v4169_v2  ;;  %v8469_v16 = vand.u32 127, %v4356_v60 }
 0x51a   :  { %v4173_v6 = vsel %vm923_vm4, %v4172_v50, %v4171_v29 }
 0x51b   :  { %v4175_v15 = vsel %vm925_vm5, %v4174_v48, %v4173_v6  ;;  %v8489_v10 = vadd.s32 4294967288, %v8469_v16 }
 0x51c   :  { %v4177_v61 = vsel %vm927_vm6, %v4176_v4, %v4175_v15 }
 0x51d   :  { %v4179_v41 = vsel %vm9613_vm10, %v4178_v21, %v4177_v61 }
 0x51e   :  { %v4209_v42 = vsel %vm9614_vm11, %v4179_v41, 0.0 }
 0x51f   :  { %4210 = vadd.xlane.f32.xlu2 %v4209_v42 }
 0x550   :  { %v4190_v53 = vpop.xlane.xlu1 %4189 }
 0x551   :  { %v4212_v27 = vmul.f32 %v4190_v53, %v4190_v53 }
 0x553   :  { %v8405_v36 = vadd.f32 1e-09, %v4212_v27  ;;  %v4228_v17 = vadd.f32 1.0, %v4212_v27  ;;  %v4220_v62 = vmul.f32 %v4212_v27, %v4190_v53 }
 0x555   :  { %4754 = vrsqrt.f32 %v8405_v36  ;;  %vm4266_vm3 = vweird.f32 %v8405_v36 }
 0x557   :  { %v8401_v14 = vpop.xlane.xlu2 %4192 }
 0x558   :  { %v4213_v24 = vmul.f32 %v8401_v14, %v8401_v14 }
 0x55a   :  { %v8407_v8 = vadd.f32 1e-09, %v4213_v24  ;;  %v4229_v55 = vadd.f32 1.0, %v4213_v24  ;;  %v4221_v50 = vmul.f32 %v4213_v24, %v8401_v14 }
 0x55b   :  { %v8429_v39 = vpop.eup %4754 }
 0x55c   :  { %4756 = vrsqrt.f32 %v8407_v8  ;;  %v4261_v18 = vmul.f32 %v8429_v39, %v8405_v36  ;;  %vm4267_vm2 = vweird.f32 %v8429_v39  ;;  %vm4276_vm6 = vweird.f32 %v8407_v8 }
 0x55d   :  { %vm8509_vm5 = vmor %vm4266_vm3, %vm4267_vm2 }
 0x55e   :  { %v4262_v11 = vmul.f32 %v8429_v39, %v4261_v18 }
 0x560   :  { %v4263_v63 = vmul.f32 0.5, %v4262_v11 }
 0x562   :  { %v8409_v9 = vpop.xlane.xlu0 %4201  ;;  %v8437_v54 = vpop.eup %4756  ;;  %v4264_v26 = vsub.f32 1.5, %v4263_v63 }
 0x563   :  { %v8423_v47 = vmul.f32 %v8409_v9, %v8409_v9  ;;  %v4271_v51 = vmul.f32 %v8437_v54, %v8407_v8  ;;  %vm4277_vm4 = vweird.f32 %v8437_v54 }
 0x564   :  { %v4265_v31 = vmul.f32 %v8429_v39, %v4264_v26  ;;  %vm8526_vm12 = vmor %vm4276_vm6, %vm4277_vm4 }
 0x565   :  { %v8435_v38 = vadd.f32 1e-09, %v8423_v47  ;;  %v4272_v37 = vmul.f32 %v8437_v54, %v4271_v51  ;;  %v4232_v29 = vadd.f32 1.0, %v8423_v47 }
 0x566   :  { %v4269_v53 = vsel %vm8509_vm5, %v8429_v39, %v4265_v31 }
 0x567   :  { %v4273_v59 = vmul.f32 0.5, %v4272_v37  ;;  %vm4306_vm15 = vweird.f32 %v8435_v38 }
 0x569   :  { %v4274_v56 = vsub.f32 1.5, %v4273_v59 }
 0x56b   :  { %v4275_v48 = vmul.f32 %v8437_v54, %v4274_v56 }
 0x56c   :  { %v8411_v35 = vpop.xlane.xlu1 %4204 }
 0x56d   :  { %v8419_v5 = vmul.f32 %v8411_v35, %v8411_v35  ;;  %v4279_v39 = vsel %vm8526_vm12, %v8437_v54, %v4275_v48  ;;  %v4224_v54 = vmul.f32 %v8423_v47, %v8409_v9 }
 0x56f   :  { %v8432_v57 = vadd.f32 1e-09, %v8419_v5  ;;  %v4233_v32 = vadd.f32 1.0, %v8419_v5  ;;  %v4225_v37 = vmul.f32 %v8419_v5, %v8411_v35 }
 0x571   :  { %4758 = vrsqrt.f32 %v8432_v57  ;;  %vm4316_vm7 = vweird.f32 %v8432_v57 }
 0x572   :  { %4760 = vrsqrt.f32 %v8435_v38 }
 0x577   :  { %v8414_v52 = vpop.xlane.xlu2 %4195  ;;  %v8461_v3 = vpop.eup %4758 }
 0x578   :  { %v8427_v19 = vmul.f32 %v8414_v52, %v8414_v52  ;;  %v8463_v22 = vpop.eup %4760  ;;  %v4311_v25 = vmul.f32 %v8461_v3, %v8432_v57  ;;  %vm4317_vm0 = vweird.f32 %v8461_v3 }
 0x579   :  { %v4301_v20 = vmul.f32 %v8463_v22, %v8435_v38  ;;  %vm4307_vm13 = vweird.f32 %v8463_v22  ;;  %vm8557_vm8 = vmor %vm4316_vm7, %vm4317_vm0  ;;  %vm4361_vm7 = vcmask 130112  }
 0x57a   :  { %v8440_v44 = vadd.f32 1e-09, %v8427_v19  ;;  %v4312_v12 = vmul.f32 %v8461_v3, %v4311_v25  ;;  %v4230_v4 = vadd.f32 1.0, %v8427_v19  ;;  %v4222_v31 = vmul.f32 %v8427_v19, %v8414_v52  ;;  %vm8569_vm11 = vmor %vm4306_vm15, %vm4307_vm13 }
 0x57b   :  { %v4302_v34 = vmul.f32 %v8463_v22, %v4301_v20  ;;  %vm4365_vm15 = vcmask 195712  }
 0x57c   :  { %4762 = vrsqrt.f32 %v8440_v44  ;;  %v4313_v6 = vmul.f32 0.5, %v4312_v12  ;;  %vm4286_vm10 = vweird.f32 %v8440_v44 }
 0x57d   :  { %v4303_v61 = vmul.f32 0.5, %v4302_v34 }
 0x57f   :  { %v8442_v33 = vpop.xlane.xlu0 %4207 }
 0x580   :  { %v8448_v28 = vmul.f32 %v8442_v33, %v8442_v33 }
 0x582   :  { %v8455_v0 = vadd.f32 1e-09, %v8448_v28  ;;  %v8465_v23 = vpop.eup %4762  ;;  %v4234_v42 = vadd.f32 1.0, %v8448_v28  ;;  %v4226_v19 = vmul.f32 %v8448_v28, %v8442_v33 }
 0x583   :  { %v4281_v13 = vmul.f32 %v8465_v23, %v8440_v44  ;;  %vm4287_vm14 = vweird.f32 %v8465_v23 }
 0x584   :  { %4764 = vrsqrt.f32 %v8455_v0  ;;  %vm8579_vm3 = vmor %vm4286_vm10, %vm4287_vm14  ;;  %vm4326_vm4 = vweird.f32 %v8455_v0 }
 0x585   :  { %4766 = vrcp.f32 %v4228_v17  ;;  %v4282_v49 = vmul.f32 %v8465_v23, %v4281_v13  ;;  %v4314_v17 = vsub.f32 1.5, %v4313_v6 }
 0x586   :  { %4768 = vrcp.f32 %v4229_v55  ;;  %v4304_v55 = vsub.f32 1.5, %v4303_v61 }
 0x587   :  { %v4283_v14 = vmul.f32 0.5, %v4282_v49  ;;  %v4315_v13 = vmul.f32 %v8461_v3, %v4314_v17 }
 0x589   :  { %v8467_v30 = vpop.xlane.xlu1 %4198  ;;  %v4284_v63 = vsub.f32 1.5, %v4283_v14  ;;  %v4319_v49 = vsel %vm8557_vm8, %v8461_v3, %v4315_v13  ;;  %vm4369_vm8 = vcmask 261312  }
 0x58a   :  { %v8475_v43 = vmul.f32 %v8467_v30, %v8467_v30  ;;  %v8477_v7 = vpop.eup %4764 }
 0x58b   :  { %v4321_v45 = vmul.f32 %v8477_v7, %v8455_v0  ;;  %v4767_v40 = vpop.eup %4766  ;;  %v4285_v47 = vmul.f32 %v8465_v23, %v4284_v63  ;;  %vm4327_vm9 = vweird.f32 %v8477_v7 }
 0x58c   :  { %v8484_v1 = vadd.f32 1e-09, %v8475_v43  ;;  %v4769_v46 = vpop.eup %4768  ;;  %v4244_v2 = vmul.f32 %v4767_v40, %v4220_v62  ;;  %v4231_v18 = vadd.f32 1.0, %v8475_v43  ;;  %vm8594_vm6 = vmor %vm4326_vm4, %vm4327_vm9  ;;  %v4223_v0 = vmul.f32 %v8475_v43, %v8467_v30 }
 0x58d   :  { %v4322_v58 = vmul.f32 %v8477_v7, %v4321_v45  ;;  %v4245_v36 = vmul.f32 %v4769_v46, %v4221_v50  ;;  %v4305_v45 = vmul.f32 %v8463_v22, %v4304_v55  ;;  %v4289_v33 = vsel %vm8579_vm3, %v8465_v23, %v4285_v47 }
 0x58e   :  { %4770 = vrsqrt.f32 %v8484_v1  ;;  %v8539_v60 = vmul.f32 %v4269_v53, %v4244_v2  ;;  %vm4296_vm5 = vweird.f32 %v8484_v1  ;;  %v4363_v23 = vadd.s32 4294967280, %v8469_v16 }
 0x58f   :  { %4772 = vrcp.f32 %v4233_v32  ;;  %v4323_v27 = vmul.f32 0.5, %v4322_v58  ;;  %v8545_v20 = vmul.f32 %v4279_v39, %v4245_v36  ;;  %v4309_v46 = vsel %vm8569_vm11, %v8463_v22, %v4305_v45 }
 0x590   :  { %4774 = vrcp.f32 %v4232_v29  ;;  %v4367_v43 = vadd.s32 4294967272, %v8469_v16  ;;  %vm4380_vm9 = vcmask 254976  }
 0x591   :  { %4776 = vrcp.f32 %v4230_v4  ;;  %v4324_v25 = vsub.f32 1.5, %v4323_v27  ;;  %v4360_v27 = vperm.slane %v8545_v20, %v8489_v10 }
 0x592   :  { %v8505_v15 = vpop.xlane.xlu2 %4210  ;;  %4778 = vrcp.f32 %v4234_v42 }
 0x593   :  { %v8516_v41 = vmul.f32 %v8505_v15, %v8505_v15  ;;  %v4325_v12 = vmul.f32 %v8477_v7, %v4324_v25 }
 0x594   :  { %v8522_v24 = vpop.eup %4770 }
 0x595   :  { %v8532_v51 = vadd.f32 1e-09, %v8516_v41  ;;  %v4291_v11 = vmul.f32 %v8522_v24, %v8484_v1  ;;  %v4773_v26 = vpop.eup %4772  ;;  %v4235_v40 = vadd.f32 1.0, %v8516_v41  ;;  %vm4297_vm2 = vweird.f32 %v8522_v24 }
 0x596   :  { %v4775_v5 = vpop.eup %4774  ;;  %v4249_v34 = vmul.f32 %v4773_v26, %v4225_v37  ;;  %vm4298_vm12 = vmor %vm4296_vm5, %vm4297_vm2  ;;  %v4329_v22 = vsel %vm8594_vm6, %v8477_v7, %v4325_v12  ;;  %v4358_v7 = vperm.slane %v8539_v60, %v8469_v16 }
 0x597   :  { %v4292_v59 = vmul.f32 %v8522_v24, %v4291_v11  ;;  %4780 = vrsqrt.f32 %v8532_v51  ;;  %v4777_v56 = vpop.eup %4776  ;;  %v4248_v28 = vmul.f32 %v4775_v5, %v4224_v54  ;;  %vm4336_vm13 = vweird.f32 %v8532_v51 }
 0x598   :  { %4782 = vrcp.f32 %v4231_v18  ;;  %v4779_v62 = vpop.eup %4778  ;;  %v4246_v1 = vmul.f32 %v4777_v56, %v4222_v31  ;;  %v4345_v6 = vmul.f32 %v4319_v49, %v4249_v34  ;;  %v4227_v18 = vmul.f32 %v8516_v41, %v8505_v15 }
 0x599   :  { %v4293_v35 = vmul.f32 0.5, %v4292_v59  ;;  %4784 = vrcp.f32 %v4235_v40  ;;  %v4250_v48 = vmul.f32 %v4779_v62, %v4226_v19  ;;  %v4344_v4 = vmul.f32 %v4309_v46, %v4248_v28 }
 0x59a   :  { %v4342_v61 = vmul.f32 %v4289_v33, %v4246_v1  ;;  %v4372_v36 = vperm.slane %v4345_v6, %v8489_v10  ;;  %v4362_v59 = vsel %vm4361_vm7, %v4360_v27, %v4358_v7 }
 0x59b   :  { %v4294_v57 = vsub.f32 1.5, %v4293_v35  ;;  %v4346_v30 = vmul.f32 %v4329_v22, %v4250_v48  ;;  %v4371_v8 = vperm.slane %v4344_v4, %v8469_v16 }
 0x59c   :  { %v4364_v39 = vperm.slane %v4342_v61, %v4363_v23 }
 0x59d   :  { %v4781_v32 = vpop.eup %4780  ;;  %v4295_v52 = vmul.f32 %v8522_v24, %v4294_v57  ;;  %v4374_v11 = vperm.slane %v4346_v30, %v4363_v23  ;;  %v4373_v10 = vsel %vm4361_vm7, %v4372_v36, %v4371_v8 }
 0x59e   :  { %v4783_v44 = vpop.eup %4782  ;;  %v4331_v3 = vmul.f32 %v4781_v32, %v8532_v51  ;;  %vm4337_vm0 = vweird.f32 %v4781_v32  ;;  %v4366_v25 = vsel %vm4365_vm15, %v4364_v39, %v4362_v59 }
 0x59f   :  { %v4299_v50 = vsel %vm4298_vm12, %v8522_v24, %v4295_v52  ;;  %v4247_v21 = vmul.f32 %v4783_v44, %v4223_v0  ;;  %v4785_v14 = vpop.eup %4784  ;;  %vm4338_vm14 = vmor %vm4336_vm13, %vm4337_vm0  ;;  %v4375_v16 = vsel %vm4365_vm15, %v4374_v11, %v4373_v10 }
 0x5a0   :  { %v4332_v29 = vmul.f32 %v4781_v32, %v4331_v3  ;;  %v4251_v60 = vmul.f32 %v4785_v14, %v4227_v18 }
 0x5a1   :  { %v4343_v53 = vmul.f32 %v4299_v50, %v4247_v21 }
 0x5a2   :  { %v4333_v42 = vmul.f32 0.5, %v4332_v29 }
 0x5a3   :  { %v4368_v37 = vperm.slane %v4343_v53, %v4367_v43 }
 0x5a4   :  { %v4334_v24 = vsub.f32 1.5, %v4333_v42 }
 0x5a5   :  { %v4370_v41 = vsel %vm4369_vm8, %v4368_v37, %v4366_v25 }
 0x5a6   :  { %v4335_v17 = vmul.f32 %v4781_v32, %v4334_v24 }
 0x5a8   :  { %v4339_v55 = vsel %vm4338_vm14, %v4781_v32, %v4335_v17 }
 0x5a9   :  { %v4347_v63 = vmul.f32 %v4339_v55, %v4251_v60 }
 0x5ab   :  { %v4376_v15 = vperm.slane %v4347_v63, %v4367_v43 }
 0x5ad   :  { %v4377_v51 = vsel %vm4369_vm8, %v4376_v15, %v4375_v16 }
 0x5ae   :  { %v4378_v20 = vsel %vm917_vm1, %v4377_v51, %v4370_v41 }
 0x5af   :  { %4381 = vst.msk [vmem:[#allocation2] sm:$0x3] %vm4380_vm9, %v4378_v20 }
 0x5b0   :  { %4392 = dma.vmem_to_hbm [thread:$0]  %s4388_s12, 32, %s4390_s15, [#allocation3]  }
 0x5b1   :  { %4814 = dma.done.wait [#allocation3], 32  }
 0x5b2   :  { %4815 = vsyncadd [#allocation3], 4294967264 }
 0x5b3   :  { %4397 = vsyncpa [#allocation3], 1 }

</bundles_post_ra>
